<compile_context>
chip_gen: v6e
topology: v6e:2x2x1
jax: 0.10.0
libtpu: 0.0.40
codegen_flags: <defaults>
</compile_context>

<pallas_src>
import functools

import jax
import jax.numpy as jnp
from jax import lax
from jax.experimental import pallas as pl
from jax.experimental.pallas import tpu as pltpu


# ----------------------------------------------------------------------------
# Kernel
# ----------------------------------------------------------------------------
def _double_conv_kernel(x_ref, w1_ref, b1_ref, w2_ref, b2_ref, o_ref,
                        xp_ref, y1p_ref, *, H, W, Cin, Cin_p, Cout_p, TH):
    """Fused (conv3x3 + BN + ReLU) x 2 for one (batch, row-tile) grid step.

    x_ref   : (1, H, W, Cin)        input image (whole image per batch elem)
    w1_ref  : (9*Cin_p, Cout_p)     conv1 weights, BN scale folded in, bf16
    b1_ref  : (1, Cout_p)           conv1 folded bias (f32)
    w2_ref  : (9*Cout_p, Cout_p)    conv2 weights, BN scale folded in, bf16
    b2_ref  : (1, Cout_p)           conv2 folded bias (f32)
    o_ref   : (1, TH, W, Cout_p)    output row tile (lane-dense, 128 lanes)
    xp_ref  : (H+4, W+2, Cin_p)     padded input scratch (built at t == 0)
    y1p_ref : (TH+2, W+2, Cout_p)   stage-1 activation + 1-pixel zero halo
    """
    t = pl.program_id(1)
    n_t = pl.num_programs(1)
    R1 = TH + 2  # stage-1 rows computed per tile (1-row halo each side, recomputed)

    # ---- once per image: build the zero-padded input in VMEM (in-kernel padding)
    @pl.when(t == 0)
    def _():
        xp_ref[...] = jnp.zeros(xp_ref.shape, xp_ref.dtype)
        y1p_ref[...] = jnp.zeros(y1p_ref.shape, y1p_ref.dtype)  # zero W-halo cols
        xp_ref[2:H + 2, 1:W + 1, :Cin] = x_ref[0]

    # ---- stage 1: conv3x3 (+ folded BN) + ReLU over TH+2 rows -----------------
    r0 = pl.multiple_of(t * TH, TH)
    x_t = xp_ref[pl.ds(r0, TH + 4), :, :]                 # (TH+4, W+2, Cin_p) f32
    taps1 = [x_t[dy:dy + R1, dx:dx + W, :]
             for dy in range(3) for dx in range(3)]       # 9 x (R1, W, Cin_p)
    # im2col patch matrix -> ONE MXU matmul with K = 9*Cin_p (lane-aligned concat)
    p1 = jnp.concatenate(taps1, axis=-1).reshape(R1 * W, 9 * Cin_p)
    acc1 = jnp.dot(p1.astype(jnp.bfloat16), w1_ref[...],
                   preferred_element_type=jnp.float32)    # (R1*W, Cout_p) f32
    y1 = jnp.maximum(acc1 + b1_ref[0], 0.0).reshape(R1, W, Cout_p)
    # stage-1 activation stays in VMEM (fused); its zero W-halo lives in y1p_ref.
    y1p_ref[:, 1:W + 1, :] = y1

    # conv2's zero padding applies to conv1's *output*: rows outside the image
    # must be exactly zero (not conv1 evaluated on padded input).
    @pl.when(t == 0)
    def _():
        y1p_ref[0, :, :] = jnp.zeros((W + 2, Cout_p), jnp.float32)

    @pl.when(t == n_t - 1)
    def _():
        y1p_ref[R1 - 1, :, :] = jnp.zeros((W + 2, Cout_p), jnp.float32)

    # ---- stage 2: conv3x3 (+ folded BN) + ReLU over the TH output rows --------
    y1p = y1p_ref[...]                                    # (TH+2, W+2, Cout_p) f32
    taps2 = [y1p[dy:dy + TH, dx:dx + W, :]
             for dy in range(3) for dx in range(3)]
    p2 = jnp.concatenate(taps2, axis=-1).reshape(TH * W, 9 * Cout_p)
    acc2 = jnp.dot(p2.astype(jnp.bfloat16), w2_ref[...],
                   preferred_element_type=jnp.float32)    # (TH*W, Cout_p) f32
    y2 = jnp.maximum(acc2 + b2_ref[0], 0.0)
    o_ref[0] = y2.reshape(TH, W, Cout_p).astype(o_ref.dtype)   # lane-dense store


# ----------------------------------------------------------------------------
# Wrapper
# ----------------------------------------------------------------------------
def _round_up(v, m):
    return (v + m - 1) // m * m


def _fold_and_pad_params(p, in_channels, out_channels):
    """Fold conv bias + eval-mode BN into (weights, bias) and pad channels to 128."""
    cin_p = _round_up(max(in_channels, 1), 128)
    cout_p = _round_up(max(out_channels, 1), 128)

    def fold(w_hwio, conv_b, gamma, beta, mean, var, cin, cin_pad):
        scale = gamma / jnp.sqrt(var + 1e-5)              # (Cout,)
        w = w_hwio * scale                                # BN scale folded into weights
        b = beta + (conv_b - mean) * scale                # folded bias
        wp = jnp.zeros((3, 3, cin_pad, cout_p), jnp.float32)
        wp = wp.at[:, :, :cin, :out_channels].set(w)
        bp = jnp.zeros((1, cout_p), jnp.float32)
        bp = bp.at[0, :out_channels].set(b)
        # (dy, dx, cin) flattened major->minor to match the kernel's tap ordering.
        return wp.reshape(9 * cin_pad, cout_p).astype(jnp.bfloat16), bp

    w1, b1 = fold(p["w1"], p["b1"], p["gamma1"], p["beta1"], p["mean1"], p["var1"],
                  in_channels, cin_p)
    w2, b2 = fold(p["w2"], p["b2"], p["gamma2"], p["beta2"], p["mean2"], p["var2"],
                  out_channels, cout_p)
    return w1, b1, w2, b2, cin_p, cout_p


def double_conv(x_nchw, p, tile_h=8):
    """Forward pass of DoubleConv.  Input/output are NCHW like PyTorch."""
    N, Cin, H, W = x_nchw.shape
    Cout = p["w1"].shape[-1]
    TH = min(tile_h, H)
    assert H % TH == 0, "H must be divisible by the row tile"  # TODO(synk): ragged tiles

    x = jnp.transpose(x_nchw, (0, 2, 3, 1))  # NCHW -> NHWC
    w1, b1, w2, b2, cin_p, cout_p = _fold_and_pad_params(p, Cin, Cout)

    kernel = functools.partial(_double_conv_kernel, H=H, W=W, Cin=Cin,
                               Cin_p=cin_p, Cout_p=cout_p, TH=TH)

    out = pl.pallas_call(
        kernel,
        out_shape=jax.ShapeDtypeStruct((N, H, W, cout_p), jnp.float32),
        grid=(N, H // TH),
        in_specs=[
            # whole image per batch element; same block across t -> DMA elided.
            pl.BlockSpec((1, H, W, Cin), lambda n, t: (n, 0, 0, 0)),
            pl.BlockSpec(memory_space=pltpu.MemorySpace.VMEM),  # w1 (bf16)
            pl.BlockSpec(memory_space=pltpu.MemorySpace.VMEM),  # b1 (f32)
            pl.BlockSpec(memory_space=pltpu.MemorySpace.VMEM),  # w2 (bf16)
            pl.BlockSpec(memory_space=pltpu.MemorySpace.VMEM),  # b2 (f32)
        ],
        out_specs=pl.BlockSpec((1, TH, W, cout_p), lambda n, t: (n, t, 0, 0)),
        scratch_shapes=[
            pltpu.VMEM((H + 4, W + 2, cin_p), jnp.float32),      # padded input
            pltpu.VMEM((TH + 2, W + 2, cout_p), jnp.float32),    # stage-1 act + halo
        ],
        compiler_params=pltpu.CompilerParams(
            dimension_semantics=("parallel", "arbitrary"),
            vmem_limit_bytes=48 * 1024 * 1024,
        ),
    )(x, w1, b1, w2, b2)

    out = out[..., :Cout]                      # drop channel padding
    return jnp.transpose(out, (0, 3, 1, 2))    # NHWC -> NCHW


# ----------------------------------------------------------------------------
# Parameters / reference
# ----------------------------------------------------------------------------
def init_double_conv_params(key, in_channels, out_channels):
    ks = jax.random.split(key, 8)
    p = {}
    # Conv weights stored as HWIO (3,3,Cin,Cout); PyTorch uses OIHW.
    p["w1"] = 0.1 * jax.random.normal(ks[0], (3, 3, in_channels, out_channels),
                                      jnp.float32)
    p["b1"] = 0.05 * jax.random.normal(ks[1], (out_channels,), jnp.float32)
    p["gamma1"] = 1.0 + 0.1 * jax.random.normal(ks[2], (out_channels,), jnp.float32)
    p["beta1"] = 0.1 * jax.random.normal(ks[3], (out_channels,), jnp.float32)
    p["mean1"] = jnp.zeros((out_channels,), jnp.float32)
    p["var1"] = jnp.ones((out_channels,), jnp.float32)

    p["w2"] = 0.1 * jax.random.normal(ks[4], (3, 3, out_channels, out_channels),
                                      jnp.float32)
    p["b2"] = 0.05 * jax.random.normal(ks[5], (out_channels,), jnp.float32)
    p["gamma2"] = 1.0 + 0.1 * jax.random.normal(ks[6], (out_channels,), jnp.float32)
    p["beta2"] = 0.1 * jax.random.normal(ks[7], (out_channels,), jnp.float32)
    p["mean2"] = jnp.zeros((out_channels,), jnp.float32)
    p["var2"] = jnp.ones((out_channels,), jnp.float32)
    return p


def _reference_double_conv(x_nchw, p):
    """Plain-JAX f32 reference (lax conv) for correctness checking."""
    x = jnp.transpose(x_nchw, (0, 2, 3, 1))
    dn = ("NHWC", "HWIO", "NHWC")

    def block(x, w, cb, g, bta, mu, var):
        y = lax.conv_general_dilated(x, w, (1, 1), "SAME",
                                     dimension_numbers=dn) + cb
        y = g * (y - mu) / jnp.sqrt(var + 1e-5) + bta
        return jnp.maximum(y, 0.0)

    y = block(x, p["w1"], p["b1"], p["gamma1"], p["beta1"], p["mean1"], p["var1"])
    y = block(y, p["w2"], p["b2"], p["gamma2"], p["beta2"], p["mean2"], p["var2"])
    return jnp.transpose(y, (0, 3, 1, 2))


if __name__ == "__main__":
    N, Cin, H, W = 2, 4, 16, 16
    Cout = 8

    key = jax.random.PRNGKey(0)
    kx, kp = jax.random.split(key)
    x = jax.random.normal(kx, (N, Cin, H, W), jnp.float32)
    params = init_double_conv_params(kp, Cin, Cout)

    out = double_conv(x, params, tile_h=8)
    out = jax.block_until_ready(out)

    ref = _reference_double_conv(x, params)
    assert out.shape == (N, Cout, H, W)
    # Kernel uses bf16 MXU operands (f32 accumulation/epilogue); compare against
    # the pure-f32 reference with a tolerance covering bf16 operand rounding.
    assert jnp.allclose(out, ref, atol=3e-2, rtol=3e-2), "mismatch vs reference"

    print("KERNEL_OK")
</pallas_src>

<mosaic_0001>
module attributes {stable_mosaic.version = 11 : i64} {
  func.func @_double_conv_kernel(%arg0: i32, %arg1: i32, %arg2: memref<1x16x16x4xf32, #tpu.memory_space<vmem>>, %arg3: memref<1152x128xbf16, #tpu.memory_space<vmem>>, %arg4: memref<1x128xf32, #tpu.memory_space<vmem>>, %arg5: memref<1152x128xbf16, #tpu.memory_space<vmem>>, %arg6: memref<1x128xf32, #tpu.memory_space<vmem>>, %arg7: memref<1x8x16x128xf32, #tpu.memory_space<vmem>>, %arg8: memref<20x18x128xf32, #tpu.memory_space<vmem>>, %arg9: memref<10x18x128xf32, #tpu.memory_space<vmem>>) attributes {dimension_semantics = [#tpu.dimension_semantics<parallel>, #tpu.dimension_semantics<arbitrary>], iteration_bounds = array<i64: 2, 2>, scalar_prefetch = 0 : i64, scratch_operands = 2 : i64, tpu.core_type = #tpu.core_type<tc>, window_params = [{transform_indices = @transform_0, window_bounds = array<i64: 1, 16, 16, 4>}, {pipeline_mode = #tpu.pipeline_mode<synchronous>, transform_indices = @transform_1, window_bounds = array<i64: 1152, 128>}, {pipeline_mode = #tpu.pipeline_mode<synchronous>, transform_indices = @transform_2, window_bounds = array<i64: 1, 128>}, {pipeline_mode = #tpu.pipeline_mode<synchronous>, transform_indices = @transform_3, window_bounds = array<i64: 1152, 128>}, {pipeline_mode = #tpu.pipeline_mode<synchronous>, transform_indices = @transform_4, window_bounds = array<i64: 1, 128>}, {transform_indices = @transform_5, window_bounds = array<i64: 1, 8, 16, 128>}]} {
    %c0_i32 = arith.constant 0 : i32
    %0 = arith.cmpi eq, %arg1, %c0_i32 : i32
    %1 = arith.extui %0 : i1 to i32
    %c0_i32_0 = arith.constant 0 : i32
    %2 = arith.cmpi ne, %1, %c0_i32_0 : i32
    scf.if %2 {
      %cst_25 = arith.constant 0.000000e+00 : f32
      %62 = vector.broadcast %cst_25 : f32 to vector<20x18x128xf32>
      %c0_26 = arith.constant 0 : index
      %c0_27 = arith.constant 0 : index
      %c0_28 = arith.constant 0 : index
      %63 = vector.load %arg8[%c0_26, %c0_27, %c0_28] : memref<20x18x128xf32, #tpu.memory_space<vmem>>, vector<20x18x128xf32>
      tpu.vector_store %arg8[%c0_26, %c0_27, %c0_28], %62 {strides = array<i32>} : memref<20x18x128xf32, #tpu.memory_space<vmem>>, vector<20x18x128xf32>,
      %cst_29 = arith.constant 0.000000e+00 : f32
      %64 = vector.broadcast %cst_29 : f32 to vector<10x18x128xf32>
      %c0_30 = arith.constant 0 : index
      %c0_31 = arith.constant 0 : index
      %c0_32 = arith.constant 0 : index
      %65 = vector.load %arg9[%c0_30, %c0_31, %c0_32] : memref<10x18x128xf32, #tpu.memory_space<vmem>>, vector<10x18x128xf32>
      tpu.vector_store %arg9[%c0_30, %c0_31, %c0_32], %64 {strides = array<i32>} : memref<10x18x128xf32, #tpu.memory_space<vmem>>, vector<10x18x128xf32>,
      %c0_33 = arith.constant 0 : index
      %c0_34 = arith.constant 0 : index
      %c0_35 = arith.constant 0 : index
      %c0_36 = arith.constant 0 : index
      %66 = vector.load %arg2[%c0_33, %c0_34, %c0_35, %c0_36] : memref<1x16x16x4xf32, #tpu.memory_space<vmem>>, vector<1x16x16x4xf32>
      %67 = vector.shape_cast %66 : vector<1x16x16x4xf32> to vector<16x16x4xf32>
      %c2 = arith.constant 2 : index
      %c1_37 = arith.constant 1 : index
      %c0_38 = arith.constant 0 : index
      %68 = vector.load %arg8[%c2, %c1_37, %c0_38] : memref<20x18x128xf32, #tpu.memory_space<vmem>>, vector<16x16x4xf32>
      tpu.vector_store %arg8[%c2, %c1_37, %c0_38], %67 {strides = array<i32>} : memref<20x18x128xf32, #tpu.memory_space<vmem>>, vector<16x16x4xf32>,
    } else {
    }
    %c8_i32 = arith.constant 8 : i32
    %3 = arith.muli %arg1, %c8_i32 : i32
    %4 = tpu.assume_multiple %3, 8 : i32
    %5 = arith.index_cast %4 : i32 to index
    %c0 = arith.constant 0 : index
    %c0_1 = arith.constant 0 : index
    %6 = vector.load %arg8[%5, %c0, %c0_1] : memref<20x18x128xf32, #tpu.memory_space<vmem>>, vector<12x18x128xf32>
    %7 = vector.extract_strided_slice %6 {offsets = [0, 0, 0], sizes = [10, 16, 128], strides = [1, 1, 1]} : vector<12x18x128xf32> to vector<10x16x128xf32>
    %8 = vector.extract_strided_slice %6 {offsets = [0, 1, 0], sizes = [10, 16, 128], strides = [1, 1, 1]} : vector<12x18x128xf32> to vector<10x16x128xf32>
    %9 = vector.extract_strided_slice %6 {offsets = [0, 2, 0], sizes = [10, 16, 128], strides = [1, 1, 1]} : vector<12x18x128xf32> to vector<10x16x128xf32>
    %10 = vector.extract_strided_slice %6 {offsets = [1, 0, 0], sizes = [10, 16, 128], strides = [1, 1, 1]} : vector<12x18x128xf32> to vector<10x16x128xf32>
    %11 = vector.extract_strided_slice %6 {offsets = [1, 1, 0], sizes = [10, 16, 128], strides = [1, 1, 1]} : vector<12x18x128xf32> to vector<10x16x128xf32>
    %12 = vector.extract_strided_slice %6 {offsets = [1, 2, 0], sizes = [10, 16, 128], strides = [1, 1, 1]} : vector<12x18x128xf32> to vector<10x16x128xf32>
    %13 = vector.extract_strided_slice %6 {offsets = [2, 0, 0], sizes = [10, 16, 128], strides = [1, 1, 1]} : vector<12x18x128xf32> to vector<10x16x128xf32>
    %14 = vector.extract_strided_slice %6 {offsets = [2, 1, 0], sizes = [10, 16, 128], strides = [1, 1, 1]} : vector<12x18x128xf32> to vector<10x16x128xf32>
    %15 = vector.extract_strided_slice %6 {offsets = [2, 2, 0], sizes = [10, 16, 128], strides = [1, 1, 1]} : vector<12x18x128xf32> to vector<10x16x128xf32>
    %16 = tpu.concatenate %7, %8, %9, %10, %11, %12, %13, %14, %15 in 2 : vector<10x16x128xf32>, vector<10x16x128xf32>, vector<10x16x128xf32>, vector<10x16x128xf32>, vector<10x16x128xf32>, vector<10x16x128xf32>, vector<10x16x128xf32>, vector<10x16x128xf32>, vector<10x16x128xf32> -> vector<10x16x1152xf32>
    %17 = vector.shape_cast %16 : vector<10x16x1152xf32> to vector<160x1152xf32>
    %18 = arith.truncf %17 : vector<160x1152xf32> to vector<160x1152xbf16>
    %c0_2 = arith.constant 0 : index
    %c0_3 = arith.constant 0 : index
    %19 = vector.load %arg3[%c0_2, %c0_3] : memref<1152x128xbf16, #tpu.memory_space<vmem>>, vector<1152x128xbf16>
    %cst = arith.constant dense<0.000000e+00> : vector<160x128xf32>
    %20 = tpu.matmul %18, %19, %cst {dimension_numbers = #tpu.dot_dimension_numbers<[1], [0], [0], [1], [0, 0, 1, 1], [], []>} : vector<160x1152xbf16>, vector<1152x128xbf16>, vector<160x128xf32> -> vector<160x128xf32>
    %c0_4 = arith.constant 0 : index
    %c0_5 = arith.constant 0 : index
    %21 = vector.load %arg4[%c0_4, %c0_5] : memref<1x128xf32, #tpu.memory_space<vmem>>, vector<1x128xf32>
    %22 = vector.shape_cast %21 : vector<1x128xf32> to vector<128xf32>
    %23 = vector.shape_cast %22 : vector<128xf32> to vector<1x128xf32>
    %24 = vector.broadcast %23 : vector<1x128xf32> to vector<160x128xf32>
    %25 = arith.addf %20, %24 : vector<160x128xf32>
    %cst_6 = arith.constant 0.000000e+00 : f32
    %26 = vector.broadcast %cst_6 : f32 to vector<160x128xf32>
    %27 = arith.maximumf %25, %26 : vector<160x128xf32>
    %28 = vector.shape_cast %27 : vector<160x128xf32> to vector<10x16x128xf32>
    %c0_7 = arith.constant 0 : index
    %c1 = arith.constant 1 : index
    %c0_8 = arith.constant 0 : index
    %29 = vector.load %arg9[%c0_7, %c1, %c0_8] : memref<10x18x128xf32, #tpu.memory_space<vmem>>, vector<10x16x128xf32>
    tpu.vector_store %arg9[%c0_7, %c1, %c0_8], %28 {strides = array<i32>} : memref<10x18x128xf32, #tpu.memory_space<vmem>>, vector<10x16x128xf32>,
    %c0_i32_9 = arith.constant 0 : i32
    %30 = arith.cmpi eq, %arg1, %c0_i32_9 : i32
    %31 = arith.extui %30 : i1 to i32
    %c0_i32_10 = arith.constant 0 : i32
    %32 = arith.cmpi ne, %31, %c0_i32_10 : i32
    scf.if %32 {
      %cst_25 = arith.constant 0.000000e+00 : f32
      %62 = vector.broadcast %cst_25 : f32 to vector<18x128xf32>
      %c0_26 = arith.constant 0 : index
      %c0_27 = arith.constant 0 : index
      %c0_28 = arith.constant 0 : index
      %63 = vector.load %arg9[%c0_26, %c0_27, %c0_28] : memref<10x18x128xf32, #tpu.memory_space<vmem>>, vector<1x18x128xf32>
      %64 = vector.shape_cast %63 : vector<1x18x128xf32> to vector<18x128xf32>
      %65 = vector.shape_cast %62 : vector<18x128xf32> to vector<1x18x128xf32>
      tpu.vector_store %arg9[%c0_26, %c0_27, %c0_28], %65 {strides = array<i32>} : memref<10x18x128xf32, #tpu.memory_space<vmem>>, vector<1x18x128xf32>,
    } else {
    }
    %c1_i32 = arith.constant 1 : i32
    %33 = arith.cmpi eq, %arg1, %c1_i32 : i32
    %34 = arith.extui %33 : i1 to i32
    %c0_i32_11 = arith.constant 0 : i32
    %35 = arith.cmpi ne, %34, %c0_i32_11 : i32
    scf.if %35 {
      %cst_25 = arith.constant 0.000000e+00 : f32
      %62 = vector.broadcast %cst_25 : f32 to vector<18x128xf32>
      %c9 = arith.constant 9 : index
      %c0_26 = arith.constant 0 : index
      %c0_27 = arith.constant 0 : index
      %63 = vector.load %arg9[%c9, %c0_26, %c0_27] : memref<10x18x128xf32, #tpu.memory_space<vmem>>, vector<1x18x128xf32>
      %64 = vector.shape_cast %63 : vector<1x18x128xf32> to vector<18x128xf32>
      %65 = vector.shape_cast %62 : vector<18x128xf32> to vector<1x18x128xf32>
      tpu.vector_store %arg9[%c9, %c0_26, %c0_27], %65 {strides = array<i32>} : memref<10x18x128xf32, #tpu.memory_space<vmem>>, vector<1x18x128xf32>,
    } else {
    }
    %c0_12 = arith.constant 0 : index
    %c0_13 = arith.constant 0 : index
    %c0_14 = arith.constant 0 : index
    %36 = vector.load %arg9[%c0_12, %c0_13, %c0_14] : memref<10x18x128xf32, #tpu.memory_space<vmem>>, vector<10x18x128xf32>
    %37 = vector.extract_strided_slice %36 {offsets = [0, 0, 0], sizes = [8, 16, 128], strides = [1, 1, 1]} : vector<10x18x128xf32> to vector<8x16x128xf32>
    %38 = vector.extract_strided_slice %36 {offsets = [0, 1, 0], sizes = [8, 16, 128], strides = [1, 1, 1]} : vector<10x18x128xf32> to vector<8x16x128xf32>
    %39 = vector.extract_strided_slice %36 {offsets = [0, 2, 0], sizes = [8, 16, 128], strides = [1, 1, 1]} : vector<10x18x128xf32> to vector<8x16x128xf32>
    %40 = vector.extract_strided_slice %36 {offsets = [1, 0, 0], sizes = [8, 16, 128], strides = [1, 1, 1]} : vector<10x18x128xf32> to vector<8x16x128xf32>
    %41 = vector.extract_strided_slice %36 {offsets = [1, 1, 0], sizes = [8, 16, 128], strides = [1, 1, 1]} : vector<10x18x128xf32> to vector<8x16x128xf32>
    %42 = vector.extract_strided_slice %36 {offsets = [1, 2, 0], sizes = [8, 16, 128], strides = [1, 1, 1]} : vector<10x18x128xf32> to vector<8x16x128xf32>
    %43 = vector.extract_strided_slice %36 {offsets = [2, 0, 0], sizes = [8, 16, 128], strides = [1, 1, 1]} : vector<10x18x128xf32> to vector<8x16x128xf32>
    %44 = vector.extract_strided_slice %36 {offsets = [2, 1, 0], sizes = [8, 16, 128], strides = [1, 1, 1]} : vector<10x18x128xf32> to vector<8x16x128xf32>
    %45 = vector.extract_strided_slice %36 {offsets = [2, 2, 0], sizes = [8, 16, 128], strides = [1, 1, 1]} : vector<10x18x128xf32> to vector<8x16x128xf32>
    %46 = tpu.concatenate %37, %38, %39, %40, %41, %42, %43, %44, %45 in 2 : vector<8x16x128xf32>, vector<8x16x128xf32>, vector<8x16x128xf32>, vector<8x16x128xf32>, vector<8x16x128xf32>, vector<8x16x128xf32>, vector<8x16x128xf32>, vector<8x16x128xf32>, vector<8x16x128xf32> -> vector<8x16x1152xf32>
    %47 = vector.shape_cast %46 : vector<8x16x1152xf32> to vector<128x1152xf32>
    %48 = arith.truncf %47 : vector<128x1152xf32> to vector<128x1152xbf16>
    %c0_15 = arith.constant 0 : index
    %c0_16 = arith.constant 0 : index
    %49 = vector.load %arg5[%c0_15, %c0_16] : memref<1152x128xbf16, #tpu.memory_space<vmem>>, vector<1152x128xbf16>
    %cst_17 = arith.constant dense<0.000000e+00> : vector<128x128xf32>
    %50 = tpu.matmul %48, %49, %cst_17 {dimension_numbers = #tpu.dot_dimension_numbers<[1], [0], [0], [1], [0, 0, 1, 1], [], []>} : vector<128x1152xbf16>, vector<1152x128xbf16>, vector<128x128xf32> -> vector<128x128xf32>
    %c0_18 = arith.constant 0 : index
    %c0_19 = arith.constant 0 : index
    %51 = vector.load %arg6[%c0_18, %c0_19] : memref<1x128xf32, #tpu.memory_space<vmem>>, vector<1x128xf32>
    %52 = vector.shape_cast %51 : vector<1x128xf32> to vector<128xf32>
    %53 = vector.shape_cast %52 : vector<128xf32> to vector<1x128xf32>
    %54 = vector.broadcast %53 : vector<1x128xf32> to vector<128x128xf32>
    %55 = arith.addf %50, %54 : vector<128x128xf32>
    %cst_20 = arith.constant 0.000000e+00 : f32
    %56 = vector.broadcast %cst_20 : f32 to vector<128x128xf32>
    %57 = arith.maximumf %55, %56 : vector<128x128xf32>
    %58 = vector.shape_cast %57 : vector<128x128xf32> to vector<8x16x128xf32>
    %c0_21 = arith.constant 0 : index
    %c0_22 = arith.constant 0 : index
    %c0_23 = arith.constant 0 : index
    %c0_24 = arith.constant 0 : index
    %59 = vector.load %arg7[%c0_21, %c0_22, %c0_23, %c0_24] : memref<1x8x16x128xf32, #tpu.memory_space<vmem>>, vector<1x8x16x128xf32>
    %60 = vector.shape_cast %59 : vector<1x8x16x128xf32> to vector<8x16x128xf32>
    %61 = vector.shape_cast %58 : vector<8x16x128xf32> to vector<1x8x16x128xf32>
    tpu.vector_store %arg7[%c0_21, %c0_22, %c0_23, %c0_24], %61 {strides = array<i32>} : memref<1x8x16x128xf32, #tpu.memory_space<vmem>>, vector<1x8x16x128xf32>,
    return
  }
  func.func @transform_0(%arg0: i32, %arg1: i32) -> (i32, i32, i32, i32) {
    %c0_i32 = arith.constant 0 : i32
    %c0_i32_0 = arith.constant 0 : i32
    %c0_i32_1 = arith.constant 0 : i32
    %c0_i32_2 = arith.constant 0 : i32
    return %arg0, %c0_i32, %c0_i32_0, %c0_i32_1 : i32, i32, i32, i32
  }
  func.func @transform_1(%arg0: i32, %arg1: i32) -> (i32, i32) {
    %c0_i32 = arith.constant 0 : i32
    %c0_i32_0 = arith.constant 0 : i32
    %c0_i32_1 = arith.constant 0 : i32
    return %c0_i32, %c0_i32_0 : i32, i32
  }
  func.func @transform_2(%arg0: i32, %arg1: i32) -> (i32, i32) {
    %c0_i32 = arith.constant 0 : i32
    %c0_i32_0 = arith.constant 0 : i32
    %c0_i32_1 = arith.constant 0 : i32
    return %c0_i32, %c0_i32_0 : i32, i32
  }
  func.func @transform_3(%arg0: i32, %arg1: i32) -> (i32, i32) {
    %c0_i32 = arith.constant 0 : i32
    %c0_i32_0 = arith.constant 0 : i32
    %c0_i32_1 = arith.constant 0 : i32
    return %c0_i32, %c0_i32_0 : i32, i32
  }
  func.func @transform_4(%arg0: i32, %arg1: i32) -> (i32, i32) {
    %c0_i32 = arith.constant 0 : i32
    %c0_i32_0 = arith.constant 0 : i32
    %c0_i32_1 = arith.constant 0 : i32
    return %c0_i32, %c0_i32_0 : i32, i32
  }
  func.func @transform_5(%arg0: i32, %arg1: i32) -> (i32, i32, i32, i32) {
    %c0_i32 = arith.constant 0 : i32
    %c0_i32_0 = arith.constant 0 : i32
    %c0_i32_1 = arith.constant 0 : i32
    return %arg0, %arg1, %c0_i32, %c0_i32_0 : i32, i32, i32, i32
  }
}

</mosaic_0001>

<bundles_post_ra>
// kernel: tpu_custom_call.1
= control target key start
LH: loop header
LB: loop body
LE: loop exit
PB: predicated region body
PF: predicated region fallthrough
CT: control target
= control target key end

     0   :  { %10 = vsyncpa [#allocation5], 0  ;;  %s6141_s0 = inlined_call_operand.vmem [shape: f32[2,16,16,4], index: 0, kind: input, shape index: {}]   ;;  %s6142_s1 = inlined_call_operand.vmem [shape: bf16[1152,128], index: 1, kind: input, shape index: {}]   ;;  %s6143_s2 = inlined_call_operand.vmem [shape: f32[1,128], index: 2, kind: input, shape index: {}]   ;;  %s6144_s3 = inlined_call_operand.hbm [shape: bf16[1152,128], index: 3, kind: input, shape index: {}]   ;;  %s6145_s4 = inlined_call_operand.vmem [shape: f32[1,128], index: 4, kind: input, shape index: {}]   ;;  %s6146_s5 = inlined_call_operand.hbm [shape: f32[2,16,16,128], index: 5, kind: output, shape index: {}]  }
   0x1   :  { %11 = vsyncpa [#allocation6], 0 }
   0x2   :  { %13 = vsyncpa [#allocation6 + $0x1], 0  ;;  %s4562_s18 = smov 0   ;;  %s4564_s19 = smov 0  }
   0x3   :  { %s4566_s20 = smov 0   ;;  %s4568_s21 = smov 0  }
   0x4   :  { %s4570_s22 = smov 0   ;;  %s4572_s23 = smov 0  }
   0x5   :  { %s4574_s24 = smov 0   ;;  %s4576_s25 = smov 0  }
   0x6 LB: > { %s3334_s26 = sadd.s32 4294967295, %s4521_s25   ;;  %s3335_s27 = sadd.s32 4294967294, %s4521_s25   ;;  %s4521_s25 = sphi %s4576_s25, %s19_s25   ;;  %s4517_s24 = sphi %s4574_s24, %s6262_s24   ;;  %s4513_s23 = sphi %s4572_s23, %s6261_s23   ;;  %s4509_s22 = sphi %s4570_s22, %s6260_s22   ;;  %s4505_s21 = sphi %s4568_s21, %s6259_s21   ;;  %s4501_s20 = sphi %s4566_s20, %s6258_s20   ;;  %s4497_s19 = sphi %s4564_s19, %s6257_s19   ;;  %s4493_s18 = sphi %s4562_s18, %s6256_s18  }
   0x7   : > { %s28_s28 = sadd.s32 1, %s4513_s23  ;;  %s31_s29 = sadd.s32 1, %s4517_s24 }
   0x8   : > { %p29_p0 = scmp.ge.s32.totalorder %s28_s28, 2  ;;  %s150_s30 = sadd.s32 1, %s4501_s20 }
   0x9   : > { %p160_p1 = scmp.ne.s32.totalorder %s4501_s20, %s4497_s19  ;;  %p161_p2 = scmp.eq.s32.totalorder %s3334_s26, 3 }
   0xa   : > { %s6264_s28 = smov (%p29_p0, %s28_s28), 0  ;;  %s6266_s29 = smov (!%p29_p0, %s31_s29), %s4517_s24 }
   0xb   : > { %s146_s6 = ssub.s32 %s4513_s23, %s6264_s28  ;;  %p4614_p3 = por %p161_p2, %p160_p1 }
   0xc   : > { %p33_p4 = scmp.ge.s32.totalorder %s6266_s29, 2  ;;  %p166_p5 = scmp.ne.s32.totalorder %s4497_s19, %s4493_s18 }
   0xd   : > { %p167_p6 = scmp.eq.s32.totalorder %s3335_s27, 3  ;;  %p3336_p7 = scmp.ge.s32.totalorder %s4521_s25, 1 }
   0xe   : > { %s6268_s29 = smov (%p33_p4, %s6266_s29), 0  ;;  %p174_p9 = scmp.lt.s32.totalorder %s4521_s25, 5 }
   0xf   : > { %p4623_p8 = por %p167_p6, %p166_p5  ;;  %s145_s9 = ssub.s32 %s4517_s24, %s6268_s29 }
  0x10   : > { %s147_s10 = sor.u32 %s146_s6, %s145_s9  ;;  %p4630_p10 = pnand %p3336_p7, %p174_p9 }
  0x11   : > { %p148_p11 = scmp.eq.s32.totalorder %s147_s10, 0  ;;  %p4634_p12 = scmp.eq.s32.totalorder %s3334_s26, 0 }
  0x12   : > { %p4172_p13 = pneg %p4630_p10  ;;  %s4523_s14 = smov [#allocation4]  }
  0x13   : > { %s4641_s13 = scalar_select %p148_p11, %s4501_s20, %s150_s30  }
  0x14   : > { %s192_s15 = sshll.u32 %s4523_s14, 4  ;;  %p4645_p0 = pnand %p4634_p12, %p4172_p13  ;;  %s193_s15 = int_to_ptr.vmem [resolvable:$true] %s192_s15 }
  0x15   : > { %s4410_s17 = scalar_lea.vmem %s193_s15, 9216  ;;  %p4418_p6 = scmp.lt.s32.totalorder %s193_s15, %s193_s15 }
  0x16   : > { %p4401_p1 = pneg %p4645_p0  ;;  %p4411_p2 = scmp.ne.s32.totalorder %s193_s15, %s4410_s17 }
  0x17   : > { %p4419_p7 = scmp.lt.s32.totalorder %s4410_s17, %s4410_s17 }
  0x18   : > { %p4413_p4 = pnand %p4411_p2, %p4401_p1 }
  0x19   : > { %p4420_p9 = por %p4419_p7, %p4418_p6 }
  0x1a   : > { %p4414_p5 = pneg %p4413_p4 }
  0x1c   : > { %p4421_p11 = pnand %p4420_p9, %p4414_p5 }
  0x1e   : > { %4424 = shalt.err (!%p4421_p11)
}
  0x1f   : > { %s4524_s26 = smov 64   ;;  %s4525_s27 = smov 4  }
  0x20   : > { %4175 = dma.hbm_to_vmem [thread:$0]  (!%p4645_p0), %s6144_s3, 9216, %s193_s15, [#allocation5], %s4524_s26, %s4524_s26, %s4525_s27  }
  0x21   : > { %219 = sbr.rel (%p4630_p10) target bundleno = 953 (0x3b9), region = 40 }
  0x26   : > { %4484 = dma.done.wait (%p4634_p12), [#allocation5], 9216  }
  0x27   : > { %4486 = vsyncadd (%p4634_p12), [#allocation5], 4294958080  ;;  %s6147_s9 = sand.u32 1, %s4497_s19   ;;  %p247_p13 = scmp.lt.s32.totalorder %s4509_s22, 1 }
  0x28   : > { %s3341_s10 = sshll.u32 %s6147_s9, 7  ;;  %p3344_p10 = scmp.ne.s32.totalorder %s4505_s21, 0 }
  0x29   : > { %s248_s14 = scalar_select %p247_p13, %s4509_s22, 1 }
  0x2a   : > { %s4672_s26 = scalar_lea.vmem [#allocation7], %s3341_s10  ;;  %257 = sbr.rel (%p3344_p10) target bundleno = 109 (0x6d), region = 48 }
  0x2b   : > { %s3502_s16 = sshll.u32 %s248_s14, 8 }
  0x2c   : > { %s4670_s11 = scalar_lea.vmem %s6141_s0, %s3502_s16 }
  0x2f   : > { %v4678_v0 = vld [vmem:[%s4670_s11] sm:$0xff]  ;;  %vm381_vm0 = vcmask 31744   ;;  %v4681_v1 = vld [vmem:[%s4670_s11 + $0x8] sm:$0xff]  ;;  %v4684_v2 = vld [vmem:[%s4670_s11 + $0x10] sm:$0xff]  ;;  %v4526_v3 = vmov 0.0  }
  0x30   : > { %264 = vst [vmem:[#allocation2 + $0x30] sm:$0xff] %v4526_v3  ;;  %258 = vst [vmem:[#allocation2] sm:$0xff] %v4526_v3  ;;  %v351_v4 = vld [vmem:[%s4670_s11 + $0x18] sm:$0xff]  ;;  %v352_v5 = vld [vmem:[%s4670_s11 + $0x20] sm:$0xff] }
  0x31   : > { %259 = vst [vmem:[#allocation2 + $0x8] sm:$0xff] %v4526_v3  ;;  %260 = vst [vmem:[#allocation2 + $0x10] sm:$0x3] %v4526_v3  ;;  %v353_v6 = vld [vmem:[%s4670_s11 + $0x28] sm:$0xff]  ;;  %v354_v7 = vld [vmem:[%s4670_s11 + $0x30] sm:$0xff] }
  0x32   : > { %261 = vst [vmem:[#allocation2 + $0x18] sm:$0xff] %v4526_v3  ;;  %262 = vst [vmem:[#allocation2 + $0x20] sm:$0xff] %v4526_v3  ;;  %v355_v8 = vld [vmem:[%s4670_s11 + $0x38] sm:$0xff]  ;;  %v356_v9 = vld [vmem:[%s4670_s11 + $0x40] sm:$0xff] }
  0x33   : > { %263 = vst [vmem:[#allocation2 + $0x28] sm:$0x3] %v4526_v3  ;;  %265 = vst [vmem:[#allocation2 + $0x38] sm:$0xff] %v4526_v3  ;;  %v357_v10 = vld [vmem:[%s4670_s11 + $0x48] sm:$0xff]  ;;  %v358_v11 = vld [vmem:[%s4670_s11 + $0x50] sm:$0xff] }
  0x34   : > { %266 = vst [vmem:[#allocation2 + $0x40] sm:$0x3] %v4526_v3  ;;  %267 = vst [vmem:[#allocation2 + $0x48] sm:$0xff] %v4526_v3  ;;  %v359_v12 = vld [vmem:[%s4670_s11 + $0x58] sm:$0xff]  ;;  %v360_v13 = vld [vmem:[%s4670_s11 + $0x60] sm:$0xff] }
  0x35   : > { %268 = vst [vmem:[#allocation2 + $0x50] sm:$0xff] %v4526_v3  ;;  %269 = vst [vmem:[#allocation2 + $0x58] sm:$0x3] %v4526_v3  ;;  %v361_v14 = vld [vmem:[%s4670_s11 + $0x68] sm:$0xff]  ;;  %v362_v15 = vld [vmem:[%s4670_s11 + $0x70] sm:$0xff] }
  0x36   : > { %270 = vst [vmem:[#allocation2 + $0x60] sm:$0xff] %v4526_v3  ;;  %271 = vst [vmem:[#allocation2 + $0x68] sm:$0xff] %v4526_v3  ;;  %v363_v16 = vld [vmem:[%s4670_s11 + $0x78] sm:$0xff]  ;;  %v364_v17 = vld [vmem:[%s4670_s11 + $0x80] sm:$0xff] }
  0x37   : > { %272 = vst [vmem:[#allocation2 + $0x70] sm:$0x3] %v4526_v3  ;;  %273 = vst [vmem:[#allocation2 + $0x78] sm:$0xff] %v4526_v3  ;;  %v365_v18 = vld [vmem:[%s4670_s11 + $0x88] sm:$0xff]  ;;  %v366_v19 = vld [vmem:[%s4670_s11 + $0x90] sm:$0xff] }
  0x38   : > { %274 = vst [vmem:[#allocation2 + $0x80] sm:$0xff] %v4526_v3  ;;  %275 = vst [vmem:[#allocation2 + $0x88] sm:$0x3] %v4526_v3  ;;  %v367_v20 = vld [vmem:[%s4670_s11 + $0x98] sm:$0xff]  ;;  %v368_v21 = vld [vmem:[%s4670_s11 + $0xa0] sm:$0xff] }
  0x39   : > { %276 = vst [vmem:[#allocation2 + $0x90] sm:$0xff] %v4526_v3  ;;  %277 = vst [vmem:[#allocation2 + $0x98] sm:$0xff] %v4526_v3  ;;  %v369_v22 = vld [vmem:[%s4670_s11 + $0xa8] sm:$0xff]  ;;  %v370_v23 = vld [vmem:[%s4670_s11 + $0xb0] sm:$0xff] }
  0x3a   : > { %278 = vst [vmem:[#allocation2 + $0xa0] sm:$0x3] %v4526_v3  ;;  %279 = vst [vmem:[#allocation2 + $0xa8] sm:$0xff] %v4526_v3  ;;  %v371_v24 = vld [vmem:[%s4670_s11 + $0xb8] sm:$0xff]  ;;  %v372_v25 = vld [vmem:[%s4670_s11 + $0xc0] sm:$0xff] }
  0x3b   : > { %280 = vst [vmem:[#allocation2 + $0xb0] sm:$0xff] %v4526_v3  ;;  %281 = vst [vmem:[#allocation2 + $0xb8] sm:$0x3] %v4526_v3  ;;  %v373_v26 = vld [vmem:[%s4670_s11 + $0xc8] sm:$0xff]  ;;  %v374_v27 = vld [vmem:[%s4670_s11 + $0xd0] sm:$0xff] }
  0x3c   : > { %282 = vst [vmem:[#allocation2 + $0xc0] sm:$0xff] %v4526_v3  ;;  %283 = vst [vmem:[#allocation2 + $0xc8] sm:$0xff] %v4526_v3  ;;  %v375_v28 = vld [vmem:[%s4670_s11 + $0xd8] sm:$0xff]  ;;  %v376_v29 = vld [vmem:[%s4670_s11 + $0xe0] sm:$0xff] }
  0x3d   : > { %284 = vst [vmem:[#allocation2 + $0xd0] sm:$0x3] %v4526_v3  ;;  %285 = vst [vmem:[#allocation2 + $0xd8] sm:$0xff] %v4526_v3  ;;  %v377_v30 = vld [vmem:[%s4670_s11 + $0xe8] sm:$0xff]  ;;  %v378_v31 = vld [vmem:[%s4670_s11 + $0xf0] sm:$0xff] }
  0x3e   : > { %286 = vst [vmem:[#allocation2 + $0xe0] sm:$0xff] %v4526_v3  ;;  %287 = vst [vmem:[#allocation2 + $0xe8] sm:$0x3] %v4526_v3  ;;  %v379_v32 = vld [vmem:[%s4670_s11 + $0xf8] sm:$0xff] }
  0x3f   : > { %288 = vst [vmem:[#allocation2 + $0xf0] sm:$0xff] %v4526_v3  ;;  %289 = vst [vmem:[#allocation2 + $0xf8] sm:$0xff] %v4526_v3 }
  0x40   : > { %290 = vst [vmem:[#allocation2 + $0x100] sm:$0x3] %v4526_v3  ;;  %291 = vst [vmem:[#allocation2 + $0x108] sm:$0xff] %v4526_v3 }
  0x41   : > { %292 = vst [vmem:[#allocation2 + $0x110] sm:$0xff] %v4526_v3  ;;  %293 = vst [vmem:[#allocation2 + $0x118] sm:$0x3] %v4526_v3 }
  0x42   : > { %294 = vst [vmem:[#allocation2 + $0x120] sm:$0xff] %v4526_v3  ;;  %295 = vst [vmem:[#allocation2 + $0x128] sm:$0xff] %v4526_v3 }
  0x43   : > { %296 = vst [vmem:[#allocation2 + $0x130] sm:$0x3] %v4526_v3  ;;  %297 = vst [vmem:[#allocation2 + $0x138] sm:$0xff] %v4526_v3 }
  0x44   : > { %298 = vst [vmem:[#allocation2 + $0x140] sm:$0xff] %v4526_v3  ;;  %299 = vst [vmem:[#allocation2 + $0x148] sm:$0x3] %v4526_v3 }
  0x45   : > { %300 = vst [vmem:[#allocation2 + $0x150] sm:$0xff] %v4526_v3  ;;  %301 = vst [vmem:[#allocation2 + $0x158] sm:$0xff] %v4526_v3 }
  0x46   : > { %302 = vst [vmem:[#allocation2 + $0x160] sm:$0x3] %v4526_v3  ;;  %303 = vst [vmem:[#allocation2 + $0x168] sm:$0xff] %v4526_v3 }
  0x47   : > { %304 = vst [vmem:[#allocation2 + $0x170] sm:$0xff] %v4526_v3  ;;  %305 = vst [vmem:[#allocation2 + $0x178] sm:$0x3] %v4526_v3 }
  0x48   : > { %306 = vst [vmem:[#allocation2 + $0x180] sm:$0xff] %v4526_v3  ;;  %307 = vst [vmem:[#allocation2 + $0x188] sm:$0xff] %v4526_v3 }
  0x49   : > { %308 = vst [vmem:[#allocation2 + $0x190] sm:$0x3] %v4526_v3  ;;  %309 = vst [vmem:[#allocation2 + $0x198] sm:$0xff] %v4526_v3 }
  0x4a   : > { %310 = vst [vmem:[#allocation2 + $0x1a0] sm:$0xff] %v4526_v3  ;;  %311 = vst [vmem:[#allocation2 + $0x1a8] sm:$0x3] %v4526_v3 }
  0x4b   : > { %312 = vst [vmem:[#allocation2 + $0x1b0] sm:$0xff] %v4526_v3  ;;  %313 = vst [vmem:[#allocation2 + $0x1b8] sm:$0xff] %v4526_v3 }
  0x4c   : > { %314 = vst [vmem:[#allocation2 + $0x1c0] sm:$0x3] %v4526_v3  ;;  %315 = vst [vmem:[#allocation2 + $0x1c8] sm:$0xff] %v4526_v3 }
  0x4d   : > { %316 = vst [vmem:[#allocation2 + $0x1d0] sm:$0xff] %v4526_v3  ;;  %317 = vst [vmem:[#allocation2 + $0x1d8] sm:$0x3] %v4526_v3 }
  0x4e   : > { %318 = vst [vmem:[#allocation3] sm:$0xff] %v4526_v3  ;;  %319 = vst [vmem:[#allocation3 + $0x8] sm:$0xff] %v4526_v3 }
  0x4f   : > { %320 = vst [vmem:[#allocation3 + $0x10] sm:$0x3] %v4526_v3  ;;  %321 = vst [vmem:[#allocation3 + $0x18] sm:$0xff] %v4526_v3 }
  0x50   : > { %322 = vst [vmem:[#allocation3 + $0x20] sm:$0xff] %v4526_v3  ;;  %323 = vst [vmem:[#allocation3 + $0x28] sm:$0x3] %v4526_v3 }
  0x51   : > { %324 = vst [vmem:[#allocation3 + $0x30] sm:$0xff] %v4526_v3  ;;  %325 = vst [vmem:[#allocation3 + $0x38] sm:$0xff] %v4526_v3 }
  0x52   : > { %326 = vst [vmem:[#allocation3 + $0x40] sm:$0x3] %v4526_v3  ;;  %327 = vst [vmem:[#allocation3 + $0x48] sm:$0xff] %v4526_v3 }
  0x53   : > { %328 = vst [vmem:[#allocation3 + $0x50] sm:$0xff] %v4526_v3  ;;  %329 = vst [vmem:[#allocation3 + $0x58] sm:$0x3] %v4526_v3 }
  0x54   : > { %330 = vst [vmem:[#allocation3 + $0x60] sm:$0xff] %v4526_v3  ;;  %331 = vst [vmem:[#allocation3 + $0x68] sm:$0xff] %v4526_v3 }
  0x55   : > { %332 = vst [vmem:[#allocation3 + $0x70] sm:$0x3] %v4526_v3  ;;  %333 = vst [vmem:[#allocation3 + $0x78] sm:$0xff] %v4526_v3 }
  0x56   : > { %334 = vst [vmem:[#allocation3 + $0x80] sm:$0xff] %v4526_v3  ;;  %335 = vst [vmem:[#allocation3 + $0x88] sm:$0x3] %v4526_v3 }
  0x57   : > { %336 = vst [vmem:[#allocation3 + $0x90] sm:$0xff] %v4526_v3  ;;  %337 = vst [vmem:[#allocation3 + $0x98] sm:$0xff] %v4526_v3 }
  0x58   : > { %338 = vst [vmem:[#allocation3 + $0xa0] sm:$0x3] %v4526_v3  ;;  %339 = vst [vmem:[#allocation3 + $0xa8] sm:$0xff] %v4526_v3 }
  0x59   : > { %340 = vst [vmem:[#allocation3 + $0xb0] sm:$0xff] %v4526_v3  ;;  %341 = vst [vmem:[#allocation3 + $0xb8] sm:$0x3] %v4526_v3 }
  0x5a   : > { %342 = vst [vmem:[#allocation3 + $0xc0] sm:$0xff] %v4526_v3  ;;  %343 = vst [vmem:[#allocation3 + $0xc8] sm:$0xff] %v4526_v3 }
  0x5b   : > { %344 = vst [vmem:[#allocation3 + $0xd0] sm:$0x3] %v4526_v3  ;;  %345 = vst [vmem:[#allocation3 + $0xd8] sm:$0xff] %v4526_v3 }
  0x5c   : > { %346 = vst [vmem:[#allocation3 + $0xe0] sm:$0xff] %v4526_v3  ;;  %347 = vst [vmem:[#allocation3 + $0xe8] sm:$0x3] %v4526_v3 }
  0x5d   : > { %382 = vst.msk [vmem:[#allocation2 + $0x31] sm:$0xff] %vm381_vm0, %v4678_v0  ;;  %383 = vst.msk [vmem:[#allocation2 + $0x39] sm:$0xff] %vm381_vm0, %v4681_v1 }
  0x5e   : > { %384 = vst.msk [vmem:[#allocation2 + $0x49] sm:$0xff] %vm381_vm0, %v4684_v2  ;;  %385 = vst.msk [vmem:[#allocation2 + $0x51] sm:$0xff] %vm381_vm0, %v351_v4 }
  0x5f   : > { %386 = vst.msk [vmem:[#allocation2 + $0x61] sm:$0xff] %vm381_vm0, %v352_v5  ;;  %387 = vst.msk [vmem:[#allocation2 + $0x69] sm:$0xff] %vm381_vm0, %v353_v6 }
  0x60   : > { %388 = vst.msk [vmem:[#allocation2 + $0x79] sm:$0xff] %vm381_vm0, %v354_v7  ;;  %389 = vst.msk [vmem:[#allocation2 + $0x81] sm:$0xff] %vm381_vm0, %v355_v8 }
  0x61   : > { %390 = vst.msk [vmem:[#allocation2 + $0x91] sm:$0xff] %vm381_vm0, %v356_v9  ;;  %391 = vst.msk [vmem:[#allocation2 + $0x99] sm:$0xff] %vm381_vm0, %v357_v10 }
  0x62   : > { %392 = vst.msk [vmem:[#allocation2 + $0xa9] sm:$0xff] %vm381_vm0, %v358_v11  ;;  %393 = vst.msk [vmem:[#allocation2 + $0xb1] sm:$0xff] %vm381_vm0, %v359_v12 }
  0x63   : > { %394 = vst.msk [vmem:[#allocation2 + $0xc1] sm:$0xff] %vm381_vm0, %v360_v13  ;;  %395 = vst.msk [vmem:[#allocation2 + $0xc9] sm:$0xff] %vm381_vm0, %v361_v14 }
  0x64   : > { %396 = vst.msk [vmem:[#allocation2 + $0xd9] sm:$0xff] %vm381_vm0, %v362_v15  ;;  %397 = vst.msk [vmem:[#allocation2 + $0xe1] sm:$0xff] %vm381_vm0, %v363_v16 }
  0x65   : > { %398 = vst.msk [vmem:[#allocation2 + $0xf1] sm:$0xff] %vm381_vm0, %v364_v17  ;;  %399 = vst.msk [vmem:[#allocation2 + $0xf9] sm:$0xff] %vm381_vm0, %v365_v18 }
  0x66   : > { %400 = vst.msk [vmem:[#allocation2 + $0x109] sm:$0xff] %vm381_vm0, %v366_v19  ;;  %401 = vst.msk [vmem:[#allocation2 + $0x111] sm:$0xff] %vm381_vm0, %v367_v20 }
  0x67   : > { %402 = vst.msk [vmem:[#allocation2 + $0x121] sm:$0xff] %vm381_vm0, %v368_v21  ;;  %403 = vst.msk [vmem:[#allocation2 + $0x129] sm:$0xff] %vm381_vm0, %v369_v22 }
  0x68   : > { %404 = vst.msk [vmem:[#allocation2 + $0x139] sm:$0xff] %vm381_vm0, %v370_v23  ;;  %405 = vst.msk [vmem:[#allocation2 + $0x141] sm:$0xff] %vm381_vm0, %v371_v24 }
  0x69   : > { %406 = vst.msk [vmem:[#allocation2 + $0x151] sm:$0xff] %vm381_vm0, %v372_v25  ;;  %407 = vst.msk [vmem:[#allocation2 + $0x159] sm:$0xff] %vm381_vm0, %v373_v26 }
  0x6a   : > { %408 = vst.msk [vmem:[#allocation2 + $0x169] sm:$0xff] %vm381_vm0, %v374_v27  ;;  %409 = vst.msk [vmem:[#allocation2 + $0x171] sm:$0xff] %vm381_vm0, %v375_v28 }
  0x6b   : > { %410 = vst.msk [vmem:[#allocation2 + $0x181] sm:$0xff] %vm381_vm0, %v376_v29  ;;  %411 = vst.msk [vmem:[#allocation2 + $0x189] sm:$0xff] %vm381_vm0, %v377_v30 }
  0x6c   : > { %412 = vst.msk [vmem:[#allocation2 + $0x199] sm:$0xff] %vm381_vm0, %v378_v31  ;;  %413 = vst.msk [vmem:[#allocation2 + $0x1a1] sm:$0xff] %vm381_vm0, %v379_v32 }
  0x6d PF: > { %v4255_v33 = vld [vmem:[%s6142_s1 + $0x78] sm:$0xff]   ;;  %v4259_v37 = vld [vmem:[%s6142_s1 + $0x70] sm:$0xff]   ;;  %v4263_v41 = vld [vmem:[%s6142_s1 + $0x68] sm:$0xff]   ;;  %s3346_s12 = smul.u32 192, %s4505_s21  ;;  %vm483_vm1 = vcmask 1046528   ;;  %vm554_vm2 = vcmask 1045504  }
  0x6e   : > { %v4256_v34 = vld [vmem:[%s6142_s1 + $0x38] sm:$0xff]   ;;  %3504 = vmatprep.subr.bf16.mxu0 %v4255_v33  ;;  %v4260_v38 = vld [vmem:[%s6142_s1 + $0x30] sm:$0xff]   ;;  %v4264_v42 = vld [vmem:[%s6142_s1 + $0x28] sm:$0xff]  }
  0x6f   : > { %v4257_v35 = vld [vmem:[%s6142_s1 + $0xf8] sm:$0xff]   ;;  %3505 = vmatpush3.bf16.msra.mxu0 %v4256_v34  ;;  %v4261_v39 = vld [vmem:[%s6142_s1 + $0xf0] sm:$0xff]   ;;  %v4265_v43 = vld [vmem:[%s6142_s1 + $0xe8] sm:$0xff]   ;;  %s4934_s6 = scalar_lea.vmem [#allocation2], %s3346_s12 }
  0x70   : > { %v4258_v36 = vld [vmem:[%s6142_s1 + $0xb8] sm:$0xff]   ;;  %3580 = vmatprep.subr.bf16.mxu1 %v4257_v35  ;;  %3506 = vmatprep.subr.bf16.mxu0 %v4259_v37  ;;  %v4262_v40 = vld [vmem:[%s6142_s1 + $0xb0] sm:$0xff]   ;;  %v4266_v44 = vld [vmem:[%s6142_s1 + $0xa8] sm:$0xff]  }
  0x71   : > { %3581 = vmatpush3.bf16.msra.mxu1 %v4258_v36  ;;  %v4267_v45 = vld [vmem:[%s6142_s1 + $0x60] sm:$0xff]   ;;  %v4271_v49 = vld [vmem:[%s6142_s1 + $0x58] sm:$0xff]   ;;  %v4275_v53 = vld [vmem:[%s6142_s1 + $0x50] sm:$0xff]  }
  0x72   : > { %3582 = vmatprep.subr.bf16.mxu1 %v4261_v39  ;;  %v4268_v46 = vld [vmem:[%s6142_s1 + $0x20] sm:$0xff]   ;;  %v4272_v50 = vld [vmem:[%s6142_s1 + $0x18] sm:$0xff]   ;;  %v4276_v54 = vld [vmem:[%s6142_s1 + $0x10] sm:$0xff]  }
  0x73   : > { %3507 = vmatpush3.bf16.msra.mxu0 %v4260_v38  ;;  %v4269_v47 = vld [vmem:[%s6142_s1 + $0xe0] sm:$0xff]   ;;  %v4273_v51 = vld [vmem:[%s6142_s1 + $0xd8] sm:$0xff]   ;;  %v4277_v55 = vld [vmem:[%s6142_s1 + $0xd0] sm:$0xff]  }
  0x74   : > { %3508 = vmatprep.subr.bf16.mxu0 %v4263_v41  ;;  %v4270_v48 = vld [vmem:[%s6142_s1 + $0xa0] sm:$0xff]   ;;  %v4274_v52 = vld [vmem:[%s6142_s1 + $0x98] sm:$0xff]   ;;  %v4278_v56 = vld [vmem:[%s6142_s1 + $0x90] sm:$0xff]  }
  0x75   : > { %3583 = vmatpush3.bf16.msra.mxu1 %v4262_v40  ;;  %v4279_v57 = vld [vmem:[%s6142_s1 + $0x48] sm:$0xff]   ;;  %v4283_v61 = vld [vmem:[%s6142_s1 + $0x40] sm:$0xff]   ;;  %v419_v2 = vld [vmem:[%s4934_s6 + $0x10] sm:$0x3] }
  0x76   : > { %3584 = vmatprep.subr.bf16.mxu1 %v4265_v43  ;;  %v4280_v58 = vld [vmem:[%s6142_s1 + $0x8] sm:$0xff]   ;;  %v4284_v62 = vld [vmem:[%s6142_s1] sm:$0xff]   ;;  %v487_v5 = vrot.slane %v419_v2, 1  ;;  %v558_v6 = vrot.slane %v419_v2, 2  ;;  %v4287_v12 = vld [vmem:[%s6142_s1 + $0x178] sm:$0xff]  }
  0x77   : > { %3509 = vmatpush3.bf16.msra.mxu0 %v4264_v42  ;;  %v4281_v59 = vld [vmem:[%s6142_s1 + $0xc8] sm:$0xff]   ;;  %v4285_v63 = vld [vmem:[%s6142_s1 + $0xc0] sm:$0xff]   ;;  %v420_v13 = vld [vmem:[%s4934_s6 + $0x18] sm:$0xff] }
  0x78   : > { %3510 = vmatprep.subr.bf16.mxu0 %v4267_v45  ;;  %v4282_v60 = vld [vmem:[%s6142_s1 + $0x88] sm:$0xff]   ;;  %v417_v0 = vld [vmem:[%s4934_s6] sm:$0xff]  ;;  %v489_v17 = vrot.slane %v420_v13, 1  ;;  %v560_v18 = vrot.slane %v420_v13, 2  ;;  %v4288_v19 = vld [vmem:[%s6142_s1 + $0x138] sm:$0xff]  }
  0x79   : > { %3585 = vmatpush3.bf16.msra.mxu1 %v4266_v44  ;;  %v418_v1 = vld [vmem:[%s4934_s6 + $0x8] sm:$0xff]  ;;  %v484_v3 = vrot.slane %v417_v0, 1  ;;  %v4286_v7 = vld [vmem:[%s6142_s1 + $0x80] sm:$0xff]   ;;  %v555_v8 = vrot.slane %v417_v0, 2  ;;  %v423_v27 = vld [vmem:[%s4934_s6 + $0x30] sm:$0xff] }
  0x7a   : > { %3586 = vmatprep.subr.bf16.mxu1 %v4269_v47  ;;  %v485_v4 = vrot.slane %v418_v1, 1  ;;  %v659_v11 = vpack.c.bf16 %v418_v1, %v417_v0  ;;  %v556_v14 = vrot.slane %v418_v1, 2  ;;  %v421_v16 = vld [vmem:[%s4934_s6 + $0x20] sm:$0xff]  ;;  %v422_v24 = vld [vmem:[%s4934_s6 + $0x28] sm:$0x3]  ;;  %v424_v28 = vld [vmem:[%s4934_s6 + $0x38] sm:$0xff] }
  0x7b   : > { %3511 = vmatpush3.bf16.msra.mxu0 %v4268_v46  ;;  %v490_v20 = vrot.slane %v421_v16, 1  ;;  %v561_v21 = vrot.slane %v421_v16, 2  ;;  %v662_v22 = vpack.c.bf16 %v421_v16, %v420_v13  ;;  %v492_v26 = vrot.slane %v422_v24, 1  ;;  %v4289_v34 = vld [vmem:[%s6142_s1 + $0x170] sm:$0xff]   ;;  %v425_v41 = vld [vmem:[%s4934_s6 + $0x40] sm:$0x3] }
  0x7c   : > { %3512 = vmatprep.subr.bf16.mxu0 %v4271_v49  ;;  %v486_v9 = vsel %vm483_vm1, %v484_v3, %v485_v4  ;;  %v488_v10 = vsel %vm483_vm1, %v485_v4, %v487_v5  ;;  %v557_v23 = vsel %vm554_vm2, %v555_v8, %v556_v14  ;;  %v559_v25 = vsel %vm554_vm2, %v556_v14, %v558_v6  ;;  %v4290_v37 = vld [vmem:[%s6142_s1 + $0x130] sm:$0xff]   ;;  %v4975_v44 = vld [vmem:[%s4934_s6 + $0x48] sm:$0xff]  ;;  %v4295_v3 = vld [vmem:[%s6142_s1 + $0x1f8] sm:$0xff]  }
  0x7d   : > { %3587 = vmatpush3.bf16.msra.mxu1 %v4270_v48  ;;  %v660_v15 = vpack.c.bf16 %v488_v10, %v486_v9  ;;  %v563_v29 = vrot.slane %v422_v24, 2  ;;  %1423 = vmatprep.mubr.bf16.mxu1 %v662_v22  ;;  %v661_v30 = vpack.c.bf16 %v559_v25, %v557_v23  ;;  %v491_v31 = vsel %vm483_vm1, %v489_v17, %v490_v20  ;;  %v427_v45 = vld [vmem:[%s4934_s6 + $0x50] sm:$0xff]  ;;  %v4291_v46 = vld [vmem:[%s6142_s1 + $0x168] sm:$0xff]   ;;  %v4296_v5 = vld [vmem:[%s6142_s1 + $0x1b8] sm:$0xff]  }
  0x7e   : > { %3588 = vmatprep.subr.bf16.mxu1 %v4273_v51  ;;  %v494_v32 = vrot.slane %v423_v27, 1  ;;  %v495_v33 = vrot.slane %v424_v28, 1  ;;  %v493_v35 = vsel %vm483_vm1, %v490_v20, %v492_v26  ;;  %v4962_v36 = vpack.c.bf16 %v424_v28, %v423_v27  ;;  %v4292_v49 = vld [vmem:[%s6142_s1 + $0x128] sm:$0xff]   ;;  %v5009_v0 = vld [vmem:[%s4934_s6 + $0x70] sm:$0x3]  ;;  %v4297_v8 = vld [vmem:[%s6142_s1 + $0x158] sm:$0xff]  }
  0x7f   : > { %3513 = vmatpush3.bf16.msra.mxu0 %v4272_v50  ;;  %1310 = vmatprep.mubr.bf16.mxu0 %v660_v15  ;;  %v4967_v38 = vpack.c.bf16 %v493_v35, %v491_v31  ;;  %v562_v39 = vsel %vm554_vm2, %v560_v18, %v561_v21  ;;  %v564_v40 = vsel %vm554_vm2, %v561_v21, %v563_v29  ;;  %v497_v43 = vrot.slane %v425_v41, 1  ;;  %v428_v50 = vld [vmem:[%s4934_s6 + $0x58] sm:$0x3]  ;;  %v5018_v4 = vld [vmem:[%s4934_s6 + $0x68] sm:$0xff]  ;;  %v4299_v17 = vld [vmem:[%s6142_s1 + $0x1f0] sm:$0xff]  }
  0x80   : > { %3514 = vmatprep.subr.bf16.mxu0 %v4275_v53  ;;  %v496_v42 = vsel %vm483_vm1, %v494_v32, %v495_v33  ;;  %v4982_v47 = vpack.c.bf16 %v564_v40, %v562_v39  ;;  %v500_v53 = vrot.slane %v427_v45, 1  ;;  %v570_v6 = vrot.slane %v4975_v44, 2  ;;  %v4298_v16 = vld [vmem:[%s6142_s1 + $0x118] sm:$0xff]   ;;  %v4300_v21 = vld [vmem:[%s6142_s1 + $0x1b0] sm:$0xff]   ;;  %v5059_v24 = vld [vmem:[%s4934_s6 + $0x80] sm:$0xff] }
  0x81   : > { %3589 = vmatpush3.bf16.msra.mxu1 %v4274_v52  ;;  %v498_v48 = vsel %vm483_vm1, %v495_v33, %v497_v43  ;;  %v499_v52 = vrot.slane %v4975_v44, 1  ;;  %v571_v13 = vrot.slane %v427_v45, 2  ;;  %v573_v15 = vrot.slane %v428_v50, 2  ;;  %v5050_v20 = vld [vmem:[%s4934_s6 + $0x78] sm:$0xff]  ;;  %v5062_v25 = vld [vmem:[%s4934_s6 + $0x88] sm:$0x3] }
  0x82   : > { %3590 = vmatprep.subr.bf16.mxu1 %v4277_v55  ;;  %v4989_v51 = vpack.c.bf16 %v498_v48, %v496_v42  ;;  %v565_v55 = vrot.slane %v423_v27, 2  ;;  %v4301_v26 = vld [vmem:[%s6142_s1 + $0x150] sm:$0xff]   ;;  %v510_v29 = vrot.slane %v5059_v24, 1  ;;  %v512_v32 = vrot.slane %v5062_v25, 1  ;;  %v4303_v33 = vld [vmem:[%s6142_s1 + $0x1e8] sm:$0xff]  }
  0x83   : > { %3515 = vmatpush3.bf16.msra.mxu0 %v4276_v54  ;;  %v502_v54 = vrot.slane %v428_v50, 1  ;;  %v574_v23 = vsel %vm554_vm2, %v571_v13, %v573_v15  ;;  %v576_v35 = vrot.slane %v5018_v4, 2  ;;  %v578_v39 = vrot.slane %v5009_v0, 2  ;;  %v5089_v40 = vld [vmem:[%s4934_s6 + $0xa0] sm:$0x3]  ;;  %v5097_v43 = vld [vmem:[%s4934_s6 + $0x90] sm:$0xff] }
  0x84   : > { %3516 = vmatprep.subr.bf16.mxu0 %v4279_v57  ;;  %v4993_v57 = vpack.c.bf16 %v427_v45, %v4975_v44  ;;  %v580_v42 = vrot.slane %v5050_v20, 2  ;;  %v5100_v44 = vld [vmem:[%s4934_s6 + $0x98] sm:$0xff]  ;;  %v4305_v45 = vld [vmem:[%s6142_s1 + $0x148] sm:$0xff]  }
  0x85   : > { %3591 = vmatpush3.bf16.msra.mxu1 %v4278_v56  ;;  %v566_v56 = vrot.slane %v424_v28, 2  ;;  %v509_v28 = vrot.slane %v5050_v20, 1  ;;  %v4306_v50 = vld [vmem:[%s6142_s1 + $0x108] sm:$0xff]  }
  0x86   : > { %3592 = vmatprep.subr.bf16.mxu1 %v4281_v59  ;;  %v4293_v59 = vld [vmem:[%s6142_s1 + $0x160] sm:$0xff]  }
  0x87   : > { %3517 = vmatpush3.bf16.msra.mxu0 %v4280_v58  ;;  %v568_v58 = vrot.slane %v425_v41, 2  ;;  %v567_v1 = vsel %vm554_vm2, %v565_v55, %v566_v56  ;;  %v4304_v41 = vld [vmem:[%s6142_s1 + $0x1a8] sm:$0xff]   ;;  %v511_v48 = vsel %vm483_vm1, %v509_v28, %v510_v29  ;;  %v4307_v55 = vld [vmem:[%s6142_s1 + $0x1e0] sm:$0xff]  }
  0x88   : > { %3518 = vmatprep.subr.bf16.mxu0 %v4283_v61  ;;  %v501_v61 = vsel %vm483_vm1, %v499_v52, %v500_v53 }
  0x89   : > { %3593 = vmatpush3.bf16.msra.mxu1 %v4282_v60  ;;  %v4294_v60 = vld [vmem:[%s6142_s1 + $0x120] sm:$0xff]   ;;  %v569_v2 = vsel %vm554_vm2, %v566_v56, %v568_v58  ;;  %v514_v56 = vrot.slane %v5097_v43, 1  ;;  %v515_v58 = vrot.slane %v5100_v44, 1 }
  0x8a   : > { %3594 = vmatprep.subr.bf16.mxu1 %v4285_v63  ;;  %v5006_v63 = vld [vmem:[%s4934_s6 + $0x60] sm:$0xff]  ;;  %v5029_v9 = vpack.c.bf16 %v569_v2, %v567_v1  ;;  %v5133_v1 = vld [vmem:[%s4934_s6 + $0xd8] sm:$0xff] }
  0x8b   : > { %3519 = vmatpush3.bf16.msra.mxu0 %v4284_v62  ;;  %v503_v62 = vsel %vm483_vm1, %v500_v53, %v502_v54  ;;  %v504_v10 = vrot.slane %v5006_v63, 1  ;;  %v5036_v14 = vpack.c.bf16 %v5018_v4, %v5006_v63  ;;  %v579_v53 = vsel %vm554_vm2, %v576_v35, %v578_v39 }
  0x8c   : > { %3656 = vmatprep.subr.bf16.mxu0 %v4287_v12  ;;  %v507_v12 = vrot.slane %v5009_v0, 1  ;;  %v583_v54 = vrot.slane %v5062_v25, 2  ;;  %v4308_v0 = vld [vmem:[%s6142_s1 + $0x1a0] sm:$0xff]   ;;  %v600_v15 = vrot.slane %v5133_v1, 2  ;;  %v446_v25 = vld [vmem:[%s4934_s6 + $0xe8] sm:$0x3] }
  0x8d   : > { %3595 = vmatpush3.bf16.msra.mxu1 %v4286_v7  ;;  %v5024_v7 = vpack.c.bf16 %v503_v62, %v501_v61  ;;  %v586_v61 = vrot.slane %v5100_v44, 2  ;;  %v517_v62 = vrot.slane %v5089_v40, 1  ;;  %v532_v28 = vrot.slane %v446_v25, 1 }
  0x8e   : > { %1311 = vmatmul.mubr.bf16.vlgmr.msra.gmra.mxu0 %v659_v11  ;;  %3732 = vmatprep.subr.bf16.mxu1 %v4295_v3  ;;  %v505_v11 = vrot.slane %v5018_v4, 1  ;;  %v588_v4 = vrot.slane %v5089_v40, 2 }
  0x8f   : > { %3657 = vmatpush3.bf16.msra.mxu0 %v4288_v19  ;;  %1318 = vmatprep.mubr.bf16.mxu0 %v4967_v38 }
  0x90   : > { %1424 = vmatmul.mubr.bf16.vlgmr.msra.gmra.mxu1 %v661_v30  ;;  %3658 = vmatprep.subr.bf16.mxu0 %v4289_v34  ;;  %v506_v18 = vsel %vm483_vm1, %v504_v10, %v505_v11  ;;  %v508_v19 = vsel %vm483_vm1, %v505_v11, %v507_v12  ;;  %v4302_v30 = vld [vmem:[%s6142_s1 + $0x110] sm:$0xff]   ;;  %v575_v34 = vrot.slane %v5006_v63, 2  ;;  %v5127_v63 = vld [vmem:[%s4934_s6 + $0xa8] sm:$0xff]  ;;  %v4309_v12 = vld [vmem:[%s6142_s1 + $0x1d8] sm:$0xff]  }
  0x91   : > { %1431 = vmatprep.mubr.bf16.mxu1 %v4962_v36  ;;  %3733 = vmatpush3.bf16.msra.mxu1 %v4296_v5  ;;  %v5067_v27 = vpack.c.bf16 %v508_v19, %v506_v18  ;;  %v519_v3 = vrot.slane %v5127_v63, 1  ;;  %v5140_v5 = vld [vmem:[%s4934_s6 + $0xe0] sm:$0xff]  ;;  %v5148_v10 = vld [vmem:[%s4934_s6 + $0xb0] sm:$0xff] }
  0x92   : > { %3734 = vmatprep.subr.bf16.mxu1 %v4299_v17  ;;  %v577_v52 = vsel %vm554_vm2, %v575_v34, %v576_v35  ;;  %v530_v11 = vrot.slane %v5140_v5, 1  ;;  %v601_v19 = vrot.slane %v5140_v5, 2 }
  0x93   : > { %3659 = vmatpush3.bf16.msra.mxu0 %v4290_v37  ;;  %v5084_v37 = vpack.c.bf16 %v5059_v24, %v5050_v20  ;;  %v5135_v2 = vpack.c.bf16 %v579_v53, %v577_v52  ;;  %v4311_v20 = vld [vmem:[%s6142_s1 + $0x140] sm:$0xff]   ;;  %v4315_v52 = vld [vmem:[%s6142_s1 + $0x1c8] sm:$0xff]   ;;  %v5208_v53 = vpack.c.bf16 %v5148_v10, %v5127_v63 }
  0x94   : > { %3660 = vmatprep.subr.bf16.mxu0 %v4291_v46  ;;  %v581_v46 = vrot.slane %v5059_v24, 2  ;;  %v4312_v24 = vld [vmem:[%s6142_s1 + $0x1d0] sm:$0xff]   ;;  %v533_v39 = vsel %vm483_vm1, %v530_v11, %v532_v28 }
  0x95   : > { %3735 = vmatpush3.bf16.msra.mxu1 %v4300_v21  ;;  %v516_v21 = vsel %vm483_vm1, %v514_v56, %v515_v58  ;;  %v4316_v56 = vld [vmem:[%s6142_s1 + $0x188] sm:$0xff]  }
  0x96   : > { %1319 = vmatmul.mubr.bf16.gmra.mxu0 %v662_v22  ;;  %v572_v22 = vsel %vm554_vm2, %v570_v6, %v571_v13  ;;  %3736 = vmatprep.subr.bf16.mxu1 %v4303_v33  ;;  %v529_v6 = vrot.slane %v5133_v1, 1  ;;  %v5156_v13 = vld [vmem:[%s4934_s6 + $0xb8] sm:$0x3]  ;;  %v582_v17 = vsel %vm554_vm2, %v580_v42, %v581_v46  ;;  %v584_v18 = vsel %vm554_vm2, %v581_v46, %v583_v54 }
  0x97   : > { %1326 = vmatprep.mubr.bf16.mxu0 %v4989_v51  ;;  %3661 = vmatpush3.bf16.msra.mxu0 %v4292_v49  ;;  %v5074_v31 = vpack.c.bf16 %v574_v23, %v572_v22  ;;  %v513_v49 = vsel %vm483_vm1, %v510_v29, %v512_v32  ;;  %v518_v22 = vsel %vm483_vm1, %v515_v58, %v517_v62  ;;  %v520_v23 = vrot.slane %v5148_v10, 1  ;;  %v4313_v29 = vld [vmem:[%s6142_s1 + $0x100] sm:$0xff]   ;;  %v4314_v32 = vld [vmem:[%s6142_s1 + $0x190] sm:$0xff]   ;;  %v5195_v42 = vld [vmem:[%s4934_s6 + $0xf8] sm:$0xff] }
  0x98   : > { %1432 = vmatmul.mubr.bf16.gmra.mxu1 %v4982_v47  ;;  %3662 = vmatprep.subr.bf16.mxu0 %v4293_v59  ;;  %v5121_v59 = vpack.c.bf16 %v513_v49, %v511_v48  ;;  %v603_v33 = vrot.slane %v446_v25, 2  ;;  %v5187_v34 = vpack.c.bf16 %v518_v22, %v516_v21  ;;  %v522_v35 = vrot.slane %v5156_v13, 1  ;;  %v4317_v62 = vld [vmem:[%s6142_s1 + $0x1c0] sm:$0xff]  }
  0x99   : > { %1439 = vmatprep.mubr.bf16.mxu1 %v4993_v57  ;;  %3737 = vmatpush3.bf16.msra.mxu1 %v4304_v41  ;;  %v5192_v41 = vld [vmem:[%s4934_s6 + $0xf0] sm:$0xff]  ;;  %v629_v49 = vrot.slane %v5195_v42, 1  ;;  %v636_v54 = vrot.slane %v5195_v42, 2 }
  0x9a   : > { %3738 = vmatprep.subr.bf16.mxu1 %v4307_v55  ;;  %v628_v48 = vrot.slane %v5192_v41, 1  ;;  %v604_v55 = vsel %vm554_vm2, %v601_v19, %v603_v33  ;;  %v452_v33 = vld [vmem:[%s4934_s6 + $0x118] sm:$0x3] }
  0x9b   : > { %3663 = vmatpush3.bf16.msra.mxu0 %v4294_v60  ;;  %v585_v60 = vrot.slane %v5097_v43, 2 }
  0x9c   : > { %3664 = vmatprep.subr.bf16.mxu0 %v4297_v8  ;;  %v5145_v8 = vpack.c.bf16 %v5100_v44, %v5097_v43  ;;  %v590_v43 = vrot.slane %v5127_v63, 2  ;;  %v449_v63 = vld [vmem:[%s4934_s6 + $0x100] sm:$0x3] }
  0x9d   : > { %3739 = vmatpush3.bf16.msra.mxu1 %v4308_v0  ;;  %v630_v0 = vsel %vm483_vm1, %v628_v48, %v629_v49  ;;  %v638_v28 = vrot.slane %v449_v63, 2 }
  0x9e   : > { %1327 = vmatmul.mubr.bf16.gmra.mxu0 %v4962_v36  ;;  %3740 = vmatprep.subr.bf16.mxu1 %v4309_v12  ;;  %v521_v12 = vsel %vm483_vm1, %v519_v3, %v520_v23  ;;  %v589_v3 = vsel %vm554_vm2, %v586_v61, %v588_v4  ;;  %v591_v4 = vrot.slane %v5148_v10, 2  ;;  %v5266_v10 = vld [vmem:[%s4934_s6 + $0x108] sm:$0xff] }
  0x9f   : > { %1334 = vmatprep.mubr.bf16.mxu0 %v5024_v7  ;;  %3665 = vmatpush3.bf16.msra.mxu0 %v4298_v16  ;;  %v4310_v16 = vld [vmem:[%s6142_s1 + $0x198] sm:$0xff]   ;;  %v639_v48 = vsel %vm554_vm2, %v636_v54, %v638_v28 }
  0xa0   : > { %1440 = vmatmul.mubr.bf16.gmra.mxu1 %v5029_v9  ;;  %3666 = vmatprep.subr.bf16.mxu0 %v4301_v26  ;;  %v531_v26 = vsel %vm483_vm1, %v529_v6, %v530_v11  ;;  %v443_v6 = vld [vmem:[%s4934_s6 + $0xd0] sm:$0x3] }
  0xa1   : > { %1447 = vmatprep.mubr.bf16.mxu1 %v5036_v14  ;;  %3741 = vmatpush3.bf16.msra.mxu1 %v4310_v16  ;;  %v5198_v46 = vpack.c.bf16 %v533_v39, %v531_v26  ;;  %v441_v16 = vld [vmem:[%s4934_s6 + $0xc0] sm:$0xff]  ;;  %v631_v26 = vrot.slane %v449_v63, 1 }
  0xa2   : > { %3742 = vmatprep.subr.bf16.mxu1 %v4312_v24 }
  0xa3   : > { %3667 = vmatpush3.bf16.msra.mxu0 %v4302_v30  ;;  %v5182_v30 = vpack.c.bf16 %v584_v18, %v582_v17  ;;  %v5232_v17 = vld [vmem:[%s6142_s1 + $0x238] sm:$0xff]   ;;  %v587_v18 = vsel %vm554_vm2, %v585_v60, %v586_v61  ;;  %v524_v60 = vrot.slane %v441_v16, 1  ;;  %v527_v61 = vrot.slane %v443_v6, 1 }
  0xa4   : > { %3668 = vmatprep.subr.bf16.mxu0 %v4305_v45  ;;  %v602_v45 = vsel %vm554_vm2, %v600_v15, %v601_v19  ;;  %v523_v15 = vsel %vm483_vm1, %v520_v23, %v522_v35  ;;  %v4318_v19 = vld [vmem:[%s6142_s1 + $0x180] sm:$0xff]   ;;  %v5253_v40 = vpack.c.bf16 %v589_v3, %v587_v18  ;;  %v593_v23 = vrot.slane %v5156_v13, 2 }
  0xa5   : > { %3743 = vmatpush3.bf16.msra.mxu1 %v4314_v32  ;;  %v5216_v58 = vpack.c.bf16 %v604_v55, %v602_v45  ;;  %v5251_v21 = vpack.c.bf16 %v523_v15, %v521_v12  ;;  %v592_v13 = vsel %vm554_vm2, %v590_v43, %v591_v4  ;;  %v645_v35 = vrot.slane %v5266_v10, 1 }
  0xa6   : > { %1335 = vmatmul.mubr.bf16.gmra.mxu0 %v4993_v57  ;;  %3744 = vmatprep.subr.bf16.mxu1 %v4315_v52  ;;  %v594_v32 = vsel %vm554_vm2, %v591_v4, %v593_v23  ;;  %v632_v45 = vsel %vm483_vm1, %v629_v49, %v631_v26  ;;  %v595_v12 = vrot.slane %v441_v16, 2  ;;  %v5295_v49 = vpack.c.bf16 %v5140_v5, %v5133_v1 }
  0xa7   : > { %1342 = vmatprep.mubr.bf16.mxu0 %v5067_v27  ;;  %3669 = vmatpush3.bf16.msra.mxu0 %v4306_v50  ;;  %v635_v50 = vrot.slane %v5192_v41, 2  ;;  %v5281_v55 = vpack.c.bf16 %v632_v45, %v630_v0  ;;  %v5288_v18 = vpack.c.bf16 %v594_v32, %v592_v13  ;;  %v655_v5 = vrot.slane %v452_v33, 2 }
  0xa8   : > { %1448 = vmatmul.mubr.bf16.gmra.mxu1 %v5074_v31  ;;  %3670 = vmatprep.subr.bf16.mxu0 %v4311_v20  ;;  %v442_v20 = vld [vmem:[%s4934_s6 + $0xc8] sm:$0xff] }
  0xa9   : > { %1455 = vmatprep.mubr.bf16.mxu1 %v5084_v37  ;;  %v637_v11 = vsel %vm554_vm2, %v635_v50, %v636_v54  ;;  %3745 = vmatpush3.bf16.msra.mxu1 %v4316_v56  ;;  %v525_v44 = vrot.slane %v442_v20, 1  ;;  %v5256_v22 = vpack.c.bf16 %v442_v20, %v441_v16  ;;  %v648_v50 = vrot.slane %v452_v33, 1 }
  0xaa   : > { %3746 = vmatprep.subr.bf16.mxu1 %v4317_v62  ;;  %v5283_v56 = vpack.c.bf16 %v639_v48, %v637_v11  ;;  %v596_v15 = vrot.slane %v442_v20, 2  ;;  %v598_v54 = vrot.slane %v443_v6, 2 }
  0xab   : > { %3671 = vmatpush3.bf16.msra.mxu0 %v4313_v29  ;;  %v526_v24 = vsel %vm483_vm1, %v524_v60, %v525_v44  ;;  %v528_v25 = vsel %vm483_vm1, %v525_v44, %v527_v61  ;;  %v5269_v29 = vld [vmem:[%s4934_s6 + $0x110] sm:$0xff]  ;;  %v5319_v44 = vpack.c.bf16 %v5195_v42, %v5192_v41  ;;  %v4322_v42 = vld [vmem:[%s6142_s1 + $0x220] sm:$0xff]  }
  0xac   : > { %4098 = vmatprep.subr.bf16.mxu0 %v5232_v17  ;;  %v646_v39 = vrot.slane %v5269_v29, 1  ;;  %v5279_v52 = vpack.c.bf16 %v528_v25, %v526_v24  ;;  %v597_v11 = vsel %vm554_vm2, %v595_v12, %v596_v15  ;;  %v599_v16 = vsel %vm554_vm2, %v596_v15, %v598_v54  ;;  %v4320_v41 = vld [vmem:[%s6142_s1 + $0x230] sm:$0xff]  }
  0xad   : > { %3747 = vmatpush3.bf16.msra.mxu1 %v4318_v19  ;;  %v652_v19 = vrot.slane %v5266_v10, 2  ;;  %v653_v1 = vrot.slane %v5269_v29, 2  ;;  %v5313_v43 = vpack.c.bf16 %v599_v16, %v597_v11 }
  0xae   : > { %1343 = vmatmul.mubr.bf16.gmra.mxu0 %v5036_v14  ;;  %v5286_v62 = vsel %vm483_vm1, %v645_v35, %v646_v39  ;;  %v5291_v3 = vsel %vm483_vm1, %v646_v39, %v648_v50 }
  0xaf   : > { %1350 = vmatprep.mubr.bf16.mxu0 %v5121_v59  ;;  %v693_v0 = vpack.c.bf16 %v5291_v3, %v5286_v62  ;;  %v5308_v6 = vsel %vm554_vm2, %v652_v19, %v653_v1  ;;  %v5311_v20 = vsel %vm554_vm2, %v653_v1, %v655_v5 }
  0xb0   : > { %1456 = vmatmul.mubr.bf16.gmra.mxu1 %v5135_v2  ;;  %v694_v60 = vpack.c.bf16 %v5311_v20, %v5308_v6 }
  0xb1   : > { %1463 = vmatprep.mubr.bf16.mxu1 %v5145_v8 }
  0xb6   : > { %1351 = vmatmul.mubr.bf16.gmra.mxu0 %v5084_v37 }
  0xb7   : > { %1358 = vmatprep.mubr.bf16.mxu0 %v5187_v34 }
  0xb8   : > { %1464 = vmatmul.mubr.bf16.gmra.mxu1 %v5182_v30 }
  0xb9   : > { %1471 = vmatprep.mubr.bf16.mxu1 %v5208_v53 }
  0xbe   : > { %1359 = vmatmul.mubr.bf16.gmra.mxu0 %v5145_v8 }
  0xbf   : > { %1366 = vmatprep.mubr.bf16.mxu0 %v5251_v21 }
  0xc0   : > { %1472 = vmatmul.mubr.bf16.gmra.mxu1 %v5253_v40 }
  0xc1   : > { %1479 = vmatprep.mubr.bf16.mxu1 %v5256_v22 }
  0xc6   : > { %1367 = vmatmul.mubr.bf16.gmra.mxu0 %v5208_v53 }
  0xc7   : > { %1374 = vmatprep.mubr.bf16.mxu0 %v5279_v52 }
  0xc8   : > { %1480 = vmatmul.mubr.bf16.gmra.mxu1 %v5288_v18 }
  0xc9   : > { %1487 = vmatprep.mubr.bf16.mxu1 %v5295_v49 }
  0xce   : > { %1375 = vmatmul.mubr.bf16.gmra.mxu0 %v5256_v22 }
  0xcf   : > { %1382 = vmatprep.mubr.bf16.mxu0 %v5198_v46 }
  0xd0   : > { %1488 = vmatmul.mubr.bf16.gmra.mxu1 %v5313_v43 }
  0xd1   : > { %1495 = vmatprep.mubr.bf16.mxu1 %v5319_v44 }
  0xd6   : > { %1383 = vmatmul.mubr.bf16.gmra.mxu0 %v5295_v49 }
  0xd7   : > { %1536 = vmatprep.mubr.bf16.mxu0 %v4982_v47  ;;  %v4321_v47 = vld [vmem:[%s6142_s1 + $0x228] sm:$0xff]  }
  0xd8   : > { %1496 = vmatmul.mubr.bf16.gmra.mxu1 %v5216_v58 }
  0xd9   : > { %1649 = vmatprep.mubr.bf16.mxu1 %v4989_v51 }
  0xde   : > { %1537 = vmatmul.mubr.bf16.vlgmr.msra.gmra.mxu0 %v4967_v38  ;;  %v4324_v38 = vld [vmem:[%s6142_s1 + $0x210] sm:$0xff]  }
  0xdf   : > { %4099 = vmatpush3.bf16.msra.mxu0 %v5232_v17  ;;  %1544 = vmatprep.mubr.bf16.mxu0 %v5029_v9 }
  0xe0   : > { %1650 = vmatmul.mubr.bf16.vlgmr.msra.gmra.mxu1 %v4962_v36  ;;  %4100 = vmatprep.subr.bf16.mxu0 %v4320_v41  ;;  %v4323_v36 = vld [vmem:[%s6142_s1 + $0x218] sm:$0xff]  }
  0xe1   : > { %1657 = vmatprep.mubr.bf16.mxu1 %v5024_v7 }
  0xe3   : > { %4101 = vmatpush3.bf16.msra.mxu0 %v4320_v41 }
  0xe4   : > { %4102 = vmatprep.subr.bf16.mxu0 %v4321_v47 }
  0xe6   : > { %1545 = vmatmul.mubr.bf16.gmra.mxu0 %v4989_v51  ;;  %v4325_v51 = vld [vmem:[%s6142_s1 + $0x208] sm:$0xff]  }
  0xe7   : > { %1552 = vmatprep.mubr.bf16.mxu0 %v5074_v31  ;;  %4103 = vmatpush3.bf16.msra.mxu0 %v4321_v47 }
  0xe8   : > { %1658 = vmatmul.mubr.bf16.gmra.mxu1 %v4993_v57  ;;  %4104 = vmatprep.subr.bf16.mxu0 %v4322_v42  ;;  %v4326_v57 = vld [vmem:[%s6142_s1 + $0x200] sm:$0xff]  }
  0xe9   : > { %1665 = vmatprep.mubr.bf16.mxu1 %v5067_v27 }
  0xeb   : > { %4105 = vmatpush3.bf16.msra.mxu0 %v4322_v42 }
  0xec   : > { %4106 = vmatprep.subr.bf16.mxu0 %v4323_v36 }
  0xee   : > { %1553 = vmatmul.mubr.bf16.gmra.mxu0 %v5024_v7  ;;  %v692_v7 = vpack.c.bf16 %v5269_v29, %v5266_v10 }
  0xef   : > { %1560 = vmatprep.mubr.bf16.mxu0 %v5135_v2  ;;  %4107 = vmatpush3.bf16.msra.mxu0 %v4323_v36 }
  0xf0   : > { %1666 = vmatmul.mubr.bf16.gmra.mxu1 %v5036_v14  ;;  %4108 = vmatprep.subr.bf16.mxu0 %v4324_v38 }
  0xf1   : > { %1673 = vmatprep.mubr.bf16.mxu1 %v5121_v59 }
  0xf3   : > { %4109 = vmatpush3.bf16.msra.mxu0 %v4324_v38 }
  0xf4   : > { %4110 = vmatprep.subr.bf16.mxu0 %v4325_v51 }
  0xf6   : > { %1561 = vmatmul.mubr.bf16.gmra.mxu0 %v5067_v27 }
  0xf7   : > { %1568 = vmatprep.mubr.bf16.mxu0 %v5182_v30  ;;  %4111 = vmatpush3.bf16.msra.mxu0 %v4325_v51 }
  0xf8   : > { %1674 = vmatmul.mubr.bf16.gmra.mxu1 %v5084_v37  ;;  %4112 = vmatprep.subr.bf16.mxu0 %v4326_v57 }
  0xf9   : > { %1681 = vmatprep.mubr.bf16.mxu1 %v5187_v34 }
  0xfb   : > { %4113 = vmatpush3.bf16.msra.mxu0 %v4326_v57 }
  0xfe   : > { %1569 = vmatmul.mubr.bf16.gmra.mxu0 %v5121_v59 }
  0xff   : > { %1576 = vmatprep.mubr.bf16.mxu0 %v5253_v40 }
 0x100   : > { %1682 = vmatmul.mubr.bf16.gmra.mxu1 %v5145_v8 }
 0x101   : > { %1689 = vmatprep.mubr.bf16.mxu1 %v5251_v21 }
 0x106   : > { %1577 = vmatmul.mubr.bf16.gmra.mxu0 %v5187_v34 }
 0x107   : > { %1584 = vmatprep.mubr.bf16.mxu0 %v5288_v18 }
 0x108   : > { %1690 = vmatmul.mubr.bf16.gmra.mxu1 %v5208_v53 }
 0x109   : > { %1697 = vmatprep.mubr.bf16.mxu1 %v5279_v52 }
 0x10e   : > { %1585 = vmatmul.mubr.bf16.gmra.mxu0 %v5251_v21 }
 0x10f   : > { %1592 = vmatprep.mubr.bf16.mxu0 %v5313_v43 }
 0x110   : > { %1698 = vmatmul.mubr.bf16.gmra.mxu1 %v5256_v22 }
 0x111   : > { %1705 = vmatprep.mubr.bf16.mxu1 %v5198_v46 }
 0x116   : > { %1593 = vmatmul.mubr.bf16.gmra.mxu0 %v5279_v52 }
 0x117   : > { %1600 = vmatprep.mubr.bf16.mxu0 %v5216_v58 }
 0x118   : > { %1706 = vmatmul.mubr.bf16.gmra.mxu1 %v5295_v49 }
 0x119   : > { %1713 = vmatprep.mubr.bf16.mxu1 %v5281_v55 }
 0x11e   : > { %1601 = vmatmul.mubr.bf16.gmra.mxu0 %v5198_v46 }
 0x11f   : > { %1608 = vmatprep.mubr.bf16.mxu0 %v5283_v56 }
 0x120   : > { %1714 = vmatmul.mubr.bf16.gmra.mxu1 %v5319_v44 }
 0x121   : > { %1721 = vmatprep.mubr.bf16.mxu1 %v693_v0 }
 0x126   : > { %1609 = vmatmul.mubr.bf16.gmra.mxu0 %v5281_v55 }
 0x127   : > { %4114 = vmatprep.mubr.bf16.mxu0 %v5029_v9  ;;  %v5407_v9 = vld [vmem:[%s6143_s2] ss:$0 sm:$0xff] }
 0x128   : > { %1722 = vmatmul.mubr.bf16.gmra.mxu1 %v692_v7 }
 0x12e   : > { %4115 = vmatmul.mubr.bf16.vlgmr.msra.gmra.mxu0 %v5074_v31 }
 0x12f   : > { %4118 = vmatprep.mubr.bf16.mxu0 %v5135_v2 }
 0x136   : > { %4119 = vmatmul.mubr.bf16.gmra.mxu0 %v5182_v30 }
 0x137   : > { %4122 = vmatprep.mubr.bf16.mxu0 %v5253_v40 }
 0x13e   : > { %4123 = vmatmul.mubr.bf16.gmra.mxu0 %v5288_v18 }
 0x13f   : > { %4126 = vmatprep.mubr.bf16.mxu0 %v5313_v43 }
 0x146   : > { %4127 = vmatmul.mubr.bf16.gmra.mxu0 %v5216_v58 }
 0x147   : > { %4130 = vmatprep.mubr.bf16.mxu0 %v5283_v56 }
 0x14e   : > { %v3520_v14 = vpop.f32.mrf.mxu0  ;;  %4131 = vmatmul.mubr.bf16.gmra.mxu0 %v694_v60 }
 0x150   : > { %v3521_v27 = vpop.f32.mrf.mxu0  ;;  %v3596_v31 = vpop.f32.mrf.mxu1 }
 0x151   : > { %v3522_v37 = vadd.f32 %v3521_v27, %v3520_v14 }
 0x152   : > { %v3523_v59 = vpop.f32.mrf.mxu0  ;;  %v3597_v2 = vpop.f32.mrf.mxu1 }
 0x153   : > { %v1313_v8 = vadd.f32 %v3522_v37, %v5407_v9  ;;  %v3598_v30 = vadd.f32 %v3597_v2, %v3596_v31 }
 0x154   : > { %v3524_v34 = vpop.f32.mrf.mxu0  ;;  %v3599_v46 = vpop.f32.mrf.mxu1 }
 0x155   : > { %v5410_v53 = vadd.f32 %v3598_v30, %v1313_v8  ;;  %v3525_v58 = vadd.f32 %v3524_v34, %v3523_v59 }
 0x156   : > { %v3526_v17 = vpop.f32.mrf.mxu0  ;;  %v3600_v21 = vpop.f32.mrf.mxu1 }
 0x157   : > { %v1316_v40 = vadd.f32 %v3525_v58, %v5407_v9  ;;  %v3601_v61 = vadd.f32 %v3600_v21, %v3599_v46 }
 0x158   : > { %v3527_v4 = vpop.f32.mrf.mxu0  ;;  %v3602_v22 = vpop.f32.mrf.mxu1 }
 0x159   : > { %v5413_v23 = vadd.f32 %v3601_v61, %v1316_v40  ;;  %v3528_v63 = vadd.f32 %v3527_v4, %v3526_v17 }
 0x15a   : > { %v3529_v24 = vpop.f32.mrf.mxu0  ;;  %v3603_v25 = vpop.f32.mrf.mxu1 }
 0x15b   : > { %v1321_v26 = vadd.f32 %v3528_v63, %v5407_v9  ;;  %v3604_v28 = vadd.f32 %v3603_v25, %v3602_v22 }
 0x15c   : > { %v3530_v10 = vpop.f32.mrf.mxu0  ;;  %v3605_v29 = vpop.f32.mrf.mxu1 }
 0x15d   : > { %v5416_v13 = vadd.f32 %v3604_v28, %v1321_v26  ;;  %v3531_v32 = vadd.f32 %v3530_v10, %v3529_v24 }
 0x15e   : > { %v3532_v33 = vpop.f32.mrf.mxu0  ;;  %v3606_v35 = vpop.f32.mrf.mxu1 }
 0x15f   : > { %v1324_v39 = vadd.f32 %v3531_v32, %v5407_v9  ;;  %v3607_v45 = vadd.f32 %v3606_v35, %v3605_v29 }
 0x160   : > { %v3533_v48 = vpop.f32.mrf.mxu0  ;;  %v3608_v50 = vpop.f32.mrf.mxu1 }
 0x161   : > { %v5419_v52 = vadd.f32 %v3607_v45, %v1324_v39  ;;  %v3534_v55 = vadd.f32 %v3533_v48, %v3532_v33 }
 0x162   : > { %v3535_v56 = vpop.f32.mrf.mxu0  ;;  %v3609_v62 = vpop.f32.mrf.mxu1 }
 0x163   : > { %v1329_v12 = vadd.f32 %v3534_v55, %v5407_v9  ;;  %v3610_v15 = vadd.f32 %v3609_v62, %v3608_v50 }
 0x164   : > { %v3536_v18 = vpop.f32.mrf.mxu0  ;;  %v3611_v3 = vpop.f32.mrf.mxu1 }
 0x165   : > { %v5422_v49 = vadd.f32 %v3610_v15, %v1329_v12  ;;  %v3537_v54 = vadd.f32 %v3536_v18, %v3535_v56 }
 0x166   : > { %v3538_v0 = vpop.f32.mrf.mxu0  ;;  %v3612_v11 = vpop.f32.mrf.mxu1 }
 0x167   : > { %v1332_v16 = vadd.f32 %v3537_v54, %v5407_v9  ;;  %v3613_v19 = vadd.f32 %v3612_v11, %v3611_v3 }
 0x168   : > { %v3539_v1 = vpop.f32.mrf.mxu0  ;;  %v3614_v5 = vpop.f32.mrf.mxu1 }
 0x169   : > { %v5425_v6 = vadd.f32 %v3613_v19, %v1332_v16  ;;  %v3540_v20 = vadd.f32 %v3539_v1, %v3538_v0 }
 0x16a   : > { %v3541_v43 = vpop.f32.mrf.mxu0  ;;  %v3615_v60 = vpop.f32.mrf.mxu1 }
 0x16b   : > { %v1337_v44 = vadd.f32 %v3540_v20, %v5407_v9  ;;  %v3616_v41 = vadd.f32 %v3615_v60, %v3614_v5 }
 0x16c   : > { %v3542_v47 = vpop.f32.mrf.mxu0  ;;  %v3617_v42 = vpop.f32.mrf.mxu1 }
 0x16d   : > { %v5428_v36 = vadd.f32 %v3616_v41, %v1337_v44  ;;  %v3543_v38 = vadd.f32 %v3542_v47, %v3541_v43 }
 0x16e   : > { %v3544_v51 = vpop.f32.mrf.mxu0  ;;  %v3618_v57 = vpop.f32.mrf.mxu1 }
 0x16f   : > { %v1340_v7 = vadd.f32 %v3543_v38, %v5407_v9  ;;  %v3619_v14 = vadd.f32 %v3618_v57, %v3617_v42 }
 0x170   : > { %v3545_v27 = vpop.f32.mrf.mxu0  ;;  %v3620_v31 = vpop.f32.mrf.mxu1 }
 0x171   : > { %v5431_v37 = vadd.f32 %v3619_v14, %v1340_v7  ;;  %v3546_v59 = vadd.f32 %v3545_v27, %v3544_v51 }
 0x172   : > { %v3547_v2 = vpop.f32.mrf.mxu0  ;;  %v3621_v8 = vpop.f32.mrf.mxu1 }
 0x173   : > { %v1345_v30 = vadd.f32 %v3546_v59, %v5407_v9  ;;  %v3622_v34 = vadd.f32 %v3621_v8, %v3620_v31 }
 0x174   : > { %v3548_v46 = vpop.f32.mrf.mxu0  ;;  %v3623_v58 = vpop.f32.mrf.mxu1 }
 0x175   : > { %v5434_v17 = vadd.f32 %v3622_v34, %v1345_v30  ;;  %v3549_v21 = vadd.f32 %v3548_v46, %v3547_v2 }
 0x176   : > { %v3550_v40 = vpop.f32.mrf.mxu0  ;;  %v3624_v61 = vpop.f32.mrf.mxu1 }
 0x177   : > { %v1348_v4 = vadd.f32 %v3549_v21, %v5407_v9  ;;  %v3625_v22 = vadd.f32 %v3624_v61, %v3623_v58 }
 0x178   : > { %v3551_v63 = vpop.f32.mrf.mxu0  ;;  %v3626_v24 = vpop.f32.mrf.mxu1 }
 0x179   : > { %v5437_v25 = vadd.f32 %v3625_v22, %v1348_v4  ;;  %v3552_v26 = vadd.f32 %v3551_v63, %v3550_v40 }
 0x17a   : > { %v3553_v28 = vpop.f32.mrf.mxu0  ;;  %v3627_v10 = vpop.f32.mrf.mxu1 }
 0x17b   : > { %v1353_v29 = vadd.f32 %v3552_v26, %v5407_v9  ;;  %v3628_v32 = vadd.f32 %v3627_v10, %v3626_v24 }
 0x17c   : > { %v3554_v33 = vpop.f32.mrf.mxu0  ;;  %v3629_v35 = vpop.f32.mrf.mxu1 }
 0x17d   : > { %v5440_v39 = vadd.f32 %v3628_v32, %v1353_v29  ;;  %v3555_v45 = vadd.f32 %v3554_v33, %v3553_v28 }
 0x17e   : > { %v3556_v48 = vpop.f32.mrf.mxu0  ;;  %v3630_v50 = vpop.f32.mrf.mxu1 }
 0x17f   : > { %v1356_v55 = vadd.f32 %v3555_v45, %v5407_v9  ;;  %v3631_v56 = vadd.f32 %v3630_v50, %v3629_v35 }
 0x180   : > { %v3557_v62 = vpop.f32.mrf.mxu0  ;;  %v3632_v12 = vpop.f32.mrf.mxu1 }
 0x181   : > { %v5443_v15 = vadd.f32 %v3631_v56, %v1356_v55  ;;  %v3558_v18 = vadd.f32 %v3557_v62, %v3556_v48 }
 0x182   : > { %v3559_v3 = vpop.f32.mrf.mxu0  ;;  %v3633_v54 = vpop.f32.mrf.mxu1 }
 0x183   : > { %v1361_v0 = vadd.f32 %v3558_v18, %v5407_v9  ;;  %v3634_v11 = vadd.f32 %v3633_v54, %v3632_v12 }
 0x184   : > { %v3560_v16 = vpop.f32.mrf.mxu0  ;;  %v3635_v19 = vpop.f32.mrf.mxu1 }
 0x185   : > { %v5446_v1 = vadd.f32 %v3634_v11, %v1361_v0  ;;  %v3561_v5 = vadd.f32 %v3560_v16, %v3559_v3 }
 0x186   : > { %v3562_v20 = vpop.f32.mrf.mxu0  ;;  %v3636_v43 = vpop.f32.mrf.mxu1 }
 0x187   : > { %6153 = vst [vmem:[#allocation10_spill] sm:$0xff] %v5446_v1  ;;  %v1364_v60 = vadd.f32 %v3561_v5, %v5407_v9  ;;  %v3637_v44 = vadd.f32 %v3636_v43, %v3635_v19 }
 0x188   : > { %v3563_v41 = vpop.f32.mrf.mxu0  ;;  %v3638_v47 = vpop.f32.mrf.mxu1 }
 0x189   : > { %v5449_v42 = vadd.f32 %v3637_v44, %v1364_v60  ;;  %v3564_v38 = vadd.f32 %v3563_v41, %v3562_v20 }
 0x18a   : > { %v3565_v51 = vpop.f32.mrf.mxu0  ;;  %v3639_v57 = vpop.f32.mrf.mxu1 }
 0x18b   : > { %6154 = vst [vmem:[#allocation11_spill] sm:$0xff] %v5449_v42  ;;  %v1369_v7 = vadd.f32 %v3564_v38, %v5407_v9  ;;  %v3640_v14 = vadd.f32 %v3639_v57, %v3638_v47 }
 0x18c   : > { %v3566_v27 = vpop.f32.mrf.mxu0  ;;  %v3641_v31 = vpop.f32.mrf.mxu1 }
 0x18d   : > { %v5452_v59 = vadd.f32 %v3640_v14, %v1369_v7  ;;  %v3567_v2 = vadd.f32 %v3566_v27, %v3565_v51 }
 0x18e   : > { %v3568_v8 = vpop.f32.mrf.mxu0  ;;  %v3642_v30 = vpop.f32.mrf.mxu1 }
 0x18f   : > { %v1372_v34 = vadd.f32 %v3567_v2, %v5407_v9  ;;  %v3643_v46 = vadd.f32 %v3642_v30, %v3641_v31 }
 0x190   : > { %v3569_v58 = vpop.f32.mrf.mxu0  ;;  %v3644_v21 = vpop.f32.mrf.mxu1 }
 0x191   : > { %v5455_v40 = vadd.f32 %v3643_v46, %v1372_v34  ;;  %v3570_v61 = vadd.f32 %v3569_v58, %v3568_v8 }
 0x192   : > { %v3571_v4 = vpop.f32.mrf.mxu0  ;;  %v3645_v22 = vpop.f32.mrf.mxu1 }
 0x193   : > { %6155 = vst [vmem:[#allocation12_spill] sm:$0xff] %v5455_v40  ;;  %v1377_v63 = vadd.f32 %v3570_v61, %v5407_v9  ;;  %v3646_v24 = vadd.f32 %v3645_v22, %v3644_v21 }
 0x194   : > { %v3572_v26 = vpop.f32.mrf.mxu0  ;;  %v3647_v28 = vpop.f32.mrf.mxu1 }
 0x195   : > { %v5458_v10 = vadd.f32 %v3646_v24, %v1377_v63  ;;  %v3573_v29 = vadd.f32 %v3572_v26, %v3571_v4 }
 0x196   : > { %v3574_v32 = vpop.f32.mrf.mxu0  ;;  %v3648_v33 = vpop.f32.mrf.mxu1 }
 0x197   : > { %6156 = vst [vmem:[#allocation13_spill] sm:$0xff] %v5458_v10  ;;  %v1380_v35 = vadd.f32 %v3573_v29, %v5407_v9  ;;  %v3649_v45 = vadd.f32 %v3648_v33, %v3647_v28 }
 0x198   : > { %v3575_v48 = vpop.f32.mrf.mxu0  ;;  %v3650_v50 = vpop.f32.mrf.mxu1 }
 0x199   : > { %v5461_v55 = vadd.f32 %v3649_v45, %v1380_v35  ;;  %v3576_v56 = vadd.f32 %v3575_v48, %v3574_v32 }
 0x19a   : > { %v3577_v62 = vpop.f32.mrf.mxu0  ;;  %v3651_v12 = vpop.f32.mrf.mxu1 }
 0x19b   : > { %6157 = vst [vmem:[#allocation14_spill] sm:$0xff] %v5461_v55  ;;  %v1385_v18 = vadd.f32 %v3576_v56, %v5407_v9  ;;  %v3652_v3 = vadd.f32 %v3651_v12, %v3650_v50 }
 0x19c   : > { %v3578_v54 = vpop.f32.mrf.mxu0  ;;  %v3653_v0 = vpop.f32.mrf.mxu1 }
 0x19d   : > { %v5464_v11 = vadd.f32 %v3652_v3, %v1385_v18  ;;  %v3579_v16 = vadd.f32 %v3578_v54, %v3577_v62 }
 0x19e   : > { %v3654_v19 = vpop.f32.mrf.mxu1  ;;  %v3672_v5 = vpop.f32.mrf.mxu0 }
 0x19f   : > { %6158 = vst [vmem:[#allocation15_spill] sm:$0xff] %v5464_v11  ;;  %v1388_v20 = vadd.f32 %v3579_v16, %v5407_v9  ;;  %v3655_v43 = vadd.f32 %v3654_v19, %v3653_v0 }
 0x1a0   : > { %v3673_v60 = vpop.f32.mrf.mxu0  ;;  %v5467_v44 = vpop.f32.mrf.mxu1 }
 0x1a1   : > { %v5469_v41 = vadd.f32 %v3655_v43, %v1388_v20  ;;  %v3674_v47 = vadd.f32 %v3673_v60, %v3672_v5 }
 0x1a2   : > { %v3675_v38 = vpop.f32.mrf.mxu0  ;;  %v5471_v51 = vpop.f32.mrf.mxu1 }
 0x1a3   : > { %6159 = vst [vmem:[#allocation16_spill] sm:$0xff] %v5469_v41  ;;  %v5474_v57 = vadd.f32 %v3674_v47, %v5410_v53 }
 0x1a4   : > { %v3676_v7 = vpop.f32.mrf.mxu0  ;;  %v5476_v14 = vpop.f32.mrf.mxu1 }
 0x1a5   : > { %v3677_v27 = vadd.f32 %v3676_v7, %v3675_v38 }
 0x1a6   : > { %v3678_v31 = vpop.f32.mrf.mxu0  ;;  %v5478_v2 = vpop.f32.mrf.mxu1 }
 0x1a7   : > { %v5481_v9 = vadd.f32 %v3677_v27, %v5413_v23 }
 0x1a8   : > { %v3679_v8 = vpop.f32.mrf.mxu0  ;;  %v5483_v30 = vpop.f32.mrf.mxu1 }
 0x1a9   : > { %v3680_v34 = vadd.f32 %v3679_v8, %v3678_v31 }
 0x1aa   : > { %v3681_v46 = vpop.f32.mrf.mxu0  ;;  %v5485_v58 = vpop.f32.mrf.mxu1 }
 0x1ab   : > { %v5488_v53 = vadd.f32 %v3680_v34, %v5416_v13 }
 0x1ac   : > { %v3682_v21 = vpop.f32.mrf.mxu0  ;;  %v5490_v61 = vpop.f32.mrf.mxu1 }
 0x1ad   : > { %v3683_v4 = vadd.f32 %v3682_v21, %v3681_v46 }
 0x1ae   : > { %v3684_v22 = vpop.f32.mrf.mxu0  ;;  %v5492_v63 = vpop.f32.mrf.mxu1 }
 0x1af   : > { %v5495_v23 = vadd.f32 %v3683_v4, %v5419_v52 }
 0x1b0   : > { %v3685_v24 = vpop.f32.mrf.mxu0  ;;  %v5497_v26 = vpop.f32.mrf.mxu1 }
 0x1b1   : > { %v3686_v28 = vadd.f32 %v3685_v24, %v3684_v22 }
 0x1b2   : > { %v3687_v29 = vpop.f32.mrf.mxu0  ;;  %v5499_v32 = vpop.f32.mrf.mxu1 }
 0x1b3   : > { %v5502_v13 = vadd.f32 %v3686_v28, %v5422_v49 }
 0x1b4   : > { %v3688_v33 = vpop.f32.mrf.mxu0  ;;  %v5504_v35 = vpop.f32.mrf.mxu1 }
 0x1b5   : > { %v3689_v45 = vadd.f32 %v3688_v33, %v3687_v29 }
 0x1b6   : > { %v3690_v48 = vpop.f32.mrf.mxu0  ;;  %v5506_v50 = vpop.f32.mrf.mxu1 }
 0x1b7   : > { %v5509_v52 = vadd.f32 %v3689_v45, %v5425_v6 }
 0x1b8   : > { %v3691_v56 = vpop.f32.mrf.mxu0  ;;  %v3766_v62 = vpop.f32.mrf.mxu1 }
 0x1ba   : > { %v3693_v12 = vpop.f32.mrf.mxu0  ;;  %v3767_v18 = vpop.f32.mrf.mxu1 }
 0x1bc   : > { %v3694_v3 = vpop.f32.mrf.mxu0  ;;  %v5511_v54 = vpop.f32.mrf.mxu1 }
 0x1be   : > { %v5513_v0 = vpop.f32.mrf.mxu0  ;;  %v5515_v49 = vpop.f32.mrf.mxu1 }
 0x1c0   : > { %v5517_v16 = vpop.f32.mrf.mxu0  ;;  %v5519_v19 = vpop.f32.mrf.mxu1 }
 0x1c2   : > { %v5521_v5 = vpop.f32.mrf.mxu0  ;;  %v5523_v20 = vpop.f32.mrf.mxu1 }
 0x1c4   : > { %v5525_v6 = vpop.f32.mrf.mxu0  ;;  %v5527_v43 = vpop.f32.mrf.mxu1 }
 0x1c6   : > { %v3702_v60 = vpop.f32.mrf.mxu0  ;;  %v5529_v47 = vpop.f32.mrf.mxu1 }
 0x1c8   : > { %v3703_v38 = vpop.f32.mrf.mxu0  ;;  %v5531_v7 = vpop.f32.mrf.mxu1 }
 0x1ca   : > { %v5533_v27 = vpop.f32.mrf.mxu0  ;;  %v5535_v31 = vpop.f32.mrf.mxu1 }
 0x1cc   : > { %v5537_v8 = vpop.f32.mrf.mxu0  ;;  %v5539_v34 = vpop.f32.mrf.mxu1 }
 0x1ce   : > { %v5541_v46 = vpop.f32.mrf.mxu0  ;;  %v5543_v21 = vpop.f32.mrf.mxu1 }
 0x1d0   : > { %v5545_v4 = vpop.f32.mrf.mxu0  ;;  %v5547_v22 = vpop.f32.mrf.mxu1 }
 0x1d1   : > { %6160 = vst [vmem:[#allocation17_spill] sm:$0xff] %v5547_v22 }
 0x1d2   : > { %v5549_v24 = vpop.f32.mrf.mxu0  ;;  %v5551_v28 = vpop.f32.mrf.mxu1 }
 0x1d3   : > { %6161 = vst [vmem:[#allocation18_spill] sm:$0xff] %v5549_v24  ;;  %6162 = vst [vmem:[#allocation19_spill] sm:$0xff] %v5551_v28 }
 0x1d4   : > { %v5553_v29 = vpop.f32.mrf.mxu0  ;;  %v5555_v33 = vpop.f32.mrf.mxu1 }
 0x1d5   : > { %6163 = vst [vmem:[#allocation20_spill] sm:$0xff] %v5553_v29  ;;  %6164 = vst [vmem:[#allocation21_spill] sm:$0xff] %v5555_v33 }
 0x1d6   : > { %v5557_v45 = vpop.f32.mrf.mxu0  ;;  %v5561_v41 = vpop.f32.mrf.mxu1 }
 0x1d7   : > { %6165 = vst [vmem:[#allocation22_spill] sm:$0xff] %v5561_v41 }
 0x1d8   : > { %v5559_v55 = vpop.f32.mrf.mxu0  ;;  %v5567_v42 = vpop.f32.mrf.mxu1 }
 0x1da   : > { %v5563_v10 = vpop.f32.mrf.mxu0  ;;  %v5573_v28 = vpop.f32.mrf.mxu1 }
 0x1db   : > { %6166 = vst [vmem:[#allocation23_spill] sm:$0xff] %v5563_v10  ;;  %6170 = vst [vmem:[#allocation27_spill] sm:$0xff] %v5573_v28  ;;  %v3692_v28 = vadd.f32 %v3691_v56, %v3690_v48  ;;  %v3695_v48 = vadd.f32 %v3694_v3, %v3693_v12  ;;  %v3698_v3 = vadd.f32 %v5517_v16, %v5513_v0 }
 0x1dc   : > { %v5565_v11 = vpop.f32.mrf.mxu0  ;;  %v5579_v22 = vpop.f32.mrf.mxu1  ;;  %v3707_v0 = vadd.f32 %v5537_v8, %v5533_v27  ;;  %v3716_v8 = vadd.f32 %v5559_v55, %v5557_v45  ;;  %v3777_v55 = vadd.f32 %v5529_v47, %v5527_v43  ;;  %v6184_v43 = vld [vmem:[#allocation19_spill] sm:$0xff] }
 0x1dd   : > { %6167 = vst [vmem:[#allocation24_spill] sm:$0xff] %v5565_v11  ;;  %6173 = vst [vmem:[#allocation30_spill] sm:$0xff] %v5579_v22  ;;  %v3756_v11 = vadd.f32 %v5485_v58, %v5483_v30  ;;  %v3753_v30 = vadd.f32 %v5478_v2, %v5476_v14  ;;  %v3704_v2 = vadd.f32 %v3703_v38, %v3702_v60 }
 0x1de   : > { %v5569_v40 = vpop.f32.mrf.mxu0  ;;  %v5587_v10 = vpop.f32.mrf.mxu1  ;;  %v1566_v12 = vadd.f32 %v3695_v48, %v5431_v37 }
 0x1df   : > { %6168 = vst [vmem:[#allocation25_spill] sm:$0xff] %v5569_v40  ;;  %6176 = vst [vmem:[#allocation33_spill] sm:$0xff] %v5587_v10  ;;  %v1660_v22 = vadd.f32 %v3756_v11, %v5488_v53  ;;  %v1563_v10 = vadd.f32 %v3692_v28, %v5428_v36  ;;  %v3762_v53 = vadd.f32 %v5499_v32, %v5497_v26 }
 0x1e0   : > { %v5571_v24 = vpop.f32.mrf.mxu0  ;;  %v1579_v38 = vadd.f32 %v3704_v2, %v5440_v39  ;;  %v3701_v39 = vadd.f32 %v5525_v6, %v5521_v5  ;;  %v3710_v5 = vadd.f32 %v5545_v4, %v5541_v46 }
 0x1e1   : > { %6169 = vst [vmem:[#allocation26_spill] sm:$0xff] %v5571_v24  ;;  %v3750_v24 = vadd.f32 %v5471_v51, %v5467_v44  ;;  %v3768_v44 = vadd.f32 %v3767_v18, %v3766_v62  ;;  %v1668_v37 = vadd.f32 %v3762_v53, %v5502_v13 }
 0x1e2   : > { %v5575_v29 = vpop.f32.mrf.mxu0 }
 0x1e3   : > { %6171 = vst [vmem:[#allocation28_spill] sm:$0xff] %v5575_v29  ;;  %v1676_v62 = vadd.f32 %v3768_v44, %v1563_v10 }
 0x1e4   : > { %v5577_v33 = vpop.f32.mrf.mxu0 }
 0x1e5   : > { %6172 = vst [vmem:[#allocation29_spill] sm:$0xff] %v5577_v33  ;;  %v3759_v33 = vadd.f32 %v5492_v63, %v5490_v61 }
 0x1e6   : > { %v5581_v1 = vpop.f32.mrf.mxu0 }
 0x1e7   : > { %6174 = vst [vmem:[#allocation31_spill] sm:$0xff] %v5581_v1  ;;  %v5598_v1 = vpop.f32.mrf.mxu1  ;;  %v1663_v61 = vadd.f32 %v3759_v33, %v5495_v23 }
 0x1e8   : > { %v5583_v41 = vpop.f32.mrf.mxu0 }
 0x1e9   : > { %6175 = vst [vmem:[#allocation32_spill] sm:$0xff] %v5583_v41  ;;  %v5605_v63 = vpop.f32.mrf.mxu1 }
 0x1ea   : > { %v5589_v40 = vpop.f32.mrf.mxu0 }
 0x1eb   : > { %6177 = vst [vmem:[#allocation34_spill] sm:$0xff] %v5589_v40  ;;  %v1652_v40 = vadd.f32 %v3750_v24, %v5474_v57  ;;  %v1655_v57 = vadd.f32 %v3753_v30, %v5481_v9  ;;  %v5615_v26 = vpop.f32.mrf.mxu1  ;;  %v3765_v9 = vadd.f32 %v5506_v50, %v5504_v35  ;;  %v1571_v35 = vadd.f32 %v3698_v3, %v5434_v17 }
 0x1ec   : > { %v5593_v29 = vpop.f32.mrf.mxu0  ;;  %v3774_v50 = vadd.f32 %v5523_v20, %v5519_v19  ;;  %v1582_v17 = vadd.f32 %v3707_v0, %v5443_v15  ;;  %v3783_v19 = vadd.f32 %v5543_v21, %v5539_v34  ;;  %v6179_v34 = vld [vmem:[#allocation27_spill] sm:$0xff] }
 0x1ed   : > { %6178 = vst [vmem:[#allocation35_spill] sm:$0xff] %v5593_v29  ;;  %v5628_v28 = vpop.f32.mrf.mxu1  ;;  %v1671_v27 = vadd.f32 %v3765_v9, %v5509_v52  ;;  %v1574_v52 = vadd.f32 %v3701_v39, %v5437_v25  ;;  %v3792_v21 = vadd.f32 %v6179_v34, %v5567_v42  ;;  %v6182_v25 = vld [vmem:[#allocation10_spill] sm:$0xff]  ;;  %v6194_v39 = vld [vmem:[#allocation11_spill] sm:$0xff]  ;;  %v3798_v34 = vadd.f32 %v5605_v63, %v5598_v1 }
 0x1ee   : > { %v4116_v41 = vpop.f32.mrf.mxu0  ;;  %v1684_v44 = vadd.f32 %v3774_v50, %v1571_v35  ;;  %v1695_v53 = vadd.f32 %v3783_v19, %v1582_v17  ;;  %v6197_v17 = vld [vmem:[#allocation15_spill] sm:$0xff]  ;;  %v6204_v1 = vld [vmem:[#allocation14_spill] sm:$0xff] }
 0x1ef   : > { %v1773_v58 = vadd.f32 %v4116_v41, %v1660_v22  ;;  %v3802_v6 = vpop.f32.mrf.mxu1 }
 0x1f0   : > { %v1764_v51 = vpop.f32.mrf.mxu0 }
 0x1f1   : > { %v1845_v56 = vmax.f32 %v1773_v58, 0.0  ;;  %v1765_v29 = vadd.f32 %v1764_v51, %v1652_v40  ;;  %v3771_v40 = vadd.f32 %v5515_v49, %v5511_v54  ;;  %v3780_v54 = vadd.f32 %v5535_v31, %v5531_v7 }
 0x1f2   : > { %v4117_v11 = vpop.f32.mrf.mxu0  ;;  %v1595_v51 = vadd.f32 %v3716_v8, %v5452_v59  ;;  %v6186_v59 = vld [vmem:[#allocation20_spill] sm:$0xff] }
 0x1f3   : > { %1865 = vst [vmem:[#allocation3 + $0x19] sm:$0xff] %v1845_v56  ;;  %v1843_v14 = vmax.f32 %v1765_v29, 0.0  ;;  %v1776_v41 = vadd.f32 %v4117_v11, %v1663_v61  ;;  %v1679_v24 = vadd.f32 %v3771_v40, %v1566_v12  ;;  %v1692_v33 = vadd.f32 %v3780_v54, %v1579_v38  ;;  %v6180_v56 = vld [vmem:[#allocation23_spill] sm:$0xff]  ;;  %v6181_v61 = vld [vmem:[#allocation24_spill] sm:$0xff]  ;;  %v6191_v38 = vld [vmem:[#allocation33_spill] sm:$0xff] }
 0x1f4   : > { %v1767_v36 = vpop.f32.mrf.mxu0  ;;  %v3719_v46 = vadd.f32 %v6181_v61, %v6180_v56  ;;  %v1687_v40 = vadd.f32 %v3777_v55, %v1574_v52  ;;  %v1708_v9 = vadd.f32 %v3792_v21, %v1595_v51  ;;  %v6201_v56 = vld [vmem:[#allocation28_spill] sm:$0xff]  ;;  %v6202_v61 = vld [vmem:[#allocation29_spill] sm:$0xff] }
 0x1f5   : > { %1863 = vst [vmem:[#allocation3 + $0x1] sm:$0xff] %v1843_v14  ;;  %v1846_v23 = vmax.f32 %v1776_v41, 0.0  ;;  %v1768_v18 = vadd.f32 %v1767_v36, %v1655_v57  ;;  %v1587_v14 = vadd.f32 %v3710_v5, %v6182_v25  ;;  %v6183_v41 = vld [vmem:[#allocation17_spill] sm:$0xff]  ;;  %v3803_v57 = vpop.f32.mrf.mxu1  ;;  %v6185_v36 = vld [vmem:[#allocation18_spill] sm:$0xff] }
 0x1f6   : > { %v4120_v32 = vpop.f32.mrf.mxu0  ;;  %v3786_v47 = vadd.f32 %v6184_v43, %v6183_v41  ;;  %v6198_v5 = vld [vmem:[#allocation34_spill] sm:$0xff] }
 0x1f7   : > { %1866 = vst [vmem:[#allocation3 + $0x21] sm:$0xff] %v1846_v23  ;;  %v1844_v60 = vmax.f32 %v1768_v18, 0.0  ;;  %v1789_v10 = vadd.f32 %v4120_v32, %v1676_v62  ;;  %v3713_v62 = vadd.f32 %v6186_v59, %v6185_v36  ;;  %v6187_v23 = vld [vmem:[#allocation31_spill] sm:$0xff]  ;;  %v6188_v18 = vld [vmem:[#allocation32_spill] sm:$0xff]  ;;  %v3805_v35 = vpop.f32.mrf.mxu1  ;;  %v3801_v59 = vadd.f32 %v5628_v28, %v5615_v26 }
 0x1f8   : > { %v1780_v49 = vpop.f32.mrf.mxu0  ;;  %v3728_v3 = vadd.f32 %v6188_v18, %v6187_v23 }
 0x1f9   : > { %1864 = vst [vmem:[#allocation3 + $0x9] sm:$0xff] %v1844_v60  ;;  %v1849_v16 = vmax.f32 %v1789_v10, 0.0  ;;  %v1781_v22 = vadd.f32 %v1780_v49, %v1668_v37  ;;  %v6189_v60 = vld [vmem:[#allocation12_spill] sm:$0xff]  ;;  %v6190_v37 = vld [vmem:[#allocation30_spill] sm:$0xff]  ;;  %v3806_v21 = vpop.f32.mrf.mxu1 }
 0x1fa   : > { %v4121_v13 = vpop.f32.mrf.mxu0  ;;  %v1598_v10 = vadd.f32 %v3719_v46, %v6189_v60  ;;  %v3795_v54 = vadd.f32 %v6191_v38, %v6190_v37  ;;  %v1611_v19 = vadd.f32 %v3728_v3, %v6197_v17  ;;  %v3725_v46 = vadd.f32 %v6202_v61, %v6201_v56 }
 0x1fb   : > { %1869 = vst [vmem:[#allocation3 + $0x49] sm:$0xff] %v1849_v16  ;;  %v1847_v7 = vmax.f32 %v1781_v22, 0.0  ;;  %v1792_v31 = vadd.f32 %v4121_v13, %v1679_v24  ;;  %v6192_v16 = vld [vmem:[#allocation25_spill] sm:$0xff]  ;;  %v6193_v22 = vld [vmem:[#allocation26_spill] sm:$0xff]  ;;  %v1700_v13 = vadd.f32 %v3786_v47, %v1587_v14  ;;  %v6203_v14 = vld [vmem:[#allocation16_spill] sm:$0xff]  ;;  %v3807_v43 = vadd.f32 %v3806_v21, %v3805_v35 }
 0x1fc   : > { %v1783_v29 = vpop.f32.mrf.mxu0  ;;  %v3722_v24 = vadd.f32 %v6193_v22, %v6192_v16  ;;  %v1606_v63 = vadd.f32 %v3725_v46, %v6204_v1 }
 0x1fd   : > { %1867 = vst [vmem:[#allocation3 + $0x31] sm:$0xff] %v1847_v7  ;;  %v1850_v20 = vmax.f32 %v1792_v31, 0.0  ;;  %v1784_v30 = vadd.f32 %v1783_v29, %v1671_v27  ;;  %v1590_v7 = vadd.f32 %v3713_v62, %v6194_v39  ;;  %v6195_v31 = vld [vmem:[#allocation21_spill] sm:$0xff]  ;;  %v6196_v27 = vld [vmem:[#allocation22_spill] sm:$0xff] }
 0x1fe   : > { %v4124_v58 = vpop.f32.mrf.mxu0  ;;  %v3789_v8 = vadd.f32 %v6196_v27, %v6195_v31  ;;  %v1719_v60 = vadd.f32 %v3801_v59, %v1606_v63 }
 0x1ff   : > { %1870 = vst [vmem:[#allocation3 + $0x51] sm:$0xff] %v1850_v20  ;;  %v1848_v45 = vmax.f32 %v1784_v30, 0.0  ;;  %v1805_v15 = vadd.f32 %v4124_v58, %v1692_v33  ;;  %v3804_v20 = vadd.f32 %v3803_v57, %v3802_v6  ;;  %v6199_v58 = vld [vmem:[#allocation35_spill] sm:$0xff] }
 0x200   : > { %v1796_v48 = vpop.f32.mrf.mxu0 }
 0x201   : > { %1868 = vst [vmem:[#allocation3 + $0x39] sm:$0xff] %v1848_v45  ;;  %v1853_v4 = vmax.f32 %v1805_v15, 0.0  ;;  %v1797_v11 = vadd.f32 %v1796_v48, %v1684_v44  ;;  %v3731_v44 = vadd.f32 %v6199_v58, %v6198_v5  ;;  %v1711_v45 = vadd.f32 %v3795_v54, %v1598_v10  ;;  %v6200_v15 = vld [vmem:[#allocation13_spill] sm:$0xff] }
 0x202   : > { %v4125_v2 = vpop.f32.mrf.mxu0  ;;  %v1603_v51 = vadd.f32 %v3722_v24, %v6200_v15  ;;  %v1724_v25 = vadd.f32 %v3804_v20, %v1611_v19 }
 0x203   : > { %1873 = vst [vmem:[#allocation3 + $0x79] sm:$0xff] %v1853_v4  ;;  %v1851_v42 = vmax.f32 %v1797_v11, 0.0  ;;  %v1808_v12 = vadd.f32 %v4125_v2, %v1695_v53  ;;  %v1703_v11 = vadd.f32 %v3789_v8, %v1590_v7  ;;  %v1614_v41 = vadd.f32 %v3731_v44, %v6203_v14 }
 0x204   : > { %v1799_v32 = vpop.f32.mrf.mxu0  ;;  %v1716_v36 = vadd.f32 %v3798_v34, %v1603_v51 }
 0x205   : > { %1871 = vst [vmem:[#allocation3 + $0x61] sm:$0xff] %v1851_v42  ;;  %v1854_v49 = vmax.f32 %v1808_v12, 0.0  ;;  %v1800_v0 = vadd.f32 %v1799_v32, %v1687_v40  ;;  %v1727_v18 = vadd.f32 %v3807_v43, %v1614_v41 }
 0x206   : > { %v4128_v50 = vpop.f32.mrf.mxu0 }
 0x207   : > { %1874 = vst [vmem:[#allocation3 + $0x81] sm:$0xff] %v1854_v49  ;;  %v1852_v29 = vmax.f32 %v1800_v0, 0.0  ;;  %v1821_v33 = vadd.f32 %v4128_v50, %v1708_v9 }
 0x208   : > { %v1812_v30 = vpop.f32.mrf.mxu0 }
 0x209   : > { %1872 = vst [vmem:[#allocation3 + $0x69] sm:$0xff] %v1852_v29  ;;  %v1857_v52 = vmax.f32 %v1821_v33, 0.0  ;;  %v1813_v55 = vadd.f32 %v1812_v30, %v1700_v13 }
 0x20a   : > { %v4129_v48 = vpop.f32.mrf.mxu0 }
 0x20b   : > { %1877 = vst [vmem:[#allocation3 + $0xa9] sm:$0xff] %v1857_v52  ;;  %v1855_v6 = vmax.f32 %v1813_v55, 0.0  ;;  %v1824_v4 = vadd.f32 %v4129_v48, %v1711_v45 }
 0x20c   : > { %v1815_v53 = vpop.f32.mrf.mxu0 }
 0x20d   : > { %1875 = vst [vmem:[#allocation3 + $0x91] sm:$0xff] %v1855_v6  ;;  %v1858_v47 = vmax.f32 %v1824_v4, 0.0  ;;  %v1816_v57 = vadd.f32 %v1815_v53, %v1703_v11 }
 0x20e   : > { %v4132_v2 = vpop.f32.mrf.mxu0 }
 0x20f   : > { %1878 = vst [vmem:[#allocation3 + $0xb1] sm:$0xff] %v1858_v47  ;;  %v1856_v62 = vmax.f32 %v1816_v57, 0.0  ;;  %v1837_v42 = vadd.f32 %v4132_v2, %v1724_v25 }
 0x210   : > { %v1828_v12 = vpop.f32.mrf.mxu0 }
 0x211   : > { %1876 = vst [vmem:[#allocation3 + $0x99] sm:$0xff] %v1856_v62  ;;  %v1861_v40 = vmax.f32 %v1837_v42, 0.0  ;;  %v1829_v23 = vadd.f32 %v1828_v12, %v1716_v36 }
 0x212   : > { %v4133_v3 = vpop.f32.mrf.mxu0 }
 0x213   : > { %1881 = vst [vmem:[#allocation3 + $0xd9] sm:$0xff] %v1861_v40  ;;  %v1859_v32 = vmax.f32 %v1829_v23, 0.0  ;;  %v1840_v9 = vadd.f32 %v4133_v3, %v1727_v18 }
 0x214   : > { %v1831_v10 = vpop.f32.mrf.mxu0 }
 0x215   : > { %1879 = vst [vmem:[#allocation3 + $0xc1] sm:$0xff] %v1859_v32  ;;  %v1862_v37 = vmax.f32 %v1840_v9, 0.0  ;;  %v1832_v38 = vadd.f32 %v1831_v10, %v1719_v60  ;;  %1885 = sbr.rel (%p3344_p10) target bundleno = 541 (0x21d), region = 52 }
 0x217   : > { %1882 = vst [vmem:[#allocation3 + $0xe1] sm:$0xff] %v1862_v37  ;;  %v1860_v54 = vmax.f32 %v1832_v38, 0.0 }
 0x219   : > { %1880 = vst [vmem:[#allocation3 + $0xc9] sm:$0xff] %v1860_v54 }
 0x21a   : > { %v4527_v26 = vmov 0.0  }
 0x21b   : > { %1886 = vst [vmem:[#allocation3] sm:$0xff] %v4527_v26  ;;  %1887 = vst [vmem:[#allocation3 + $0x8] sm:$0xff] %v4527_v26 }
 0x21c   : > { %1888 = vst [vmem:[#allocation3 + $0x10] sm:$0x3] %v4527_v26 }
 0x21d PF: > { %p3421_p12 = scmp.ne.s32.totalorder %s4505_s21, 1 }
 0x21f   : > { %1892 = sbr.rel (%p3421_p12) target bundleno = 551 (0x227), region = 56 }
 0x224   : > { %v4528_v28 = vmov 0.0  }
 0x225   : > { %1894 = vst [vmem:[#allocation3 + $0xd8] sm:$0xff] %v4528_v28  ;;  %1895 = vst [vmem:[#allocation3 + $0xe0] sm:$0xff] %v4528_v28 }
 0x226   : > { %1896 = vst [vmem:[#allocation3 + $0xe8] sm:$0x3] %v4528_v28 }
 0x227 PF: > { %v4327_v49 = vld [vmem:[#allocation4 + $0x78] sm:$0xff]   ;;  %v4331_v24 = vld [vmem:[#allocation4 + $0x70] sm:$0xff]   ;;  %v4335_v39 = vld [vmem:[#allocation4 + $0x68] sm:$0xff]   ;;  %s3503_s16 = sshll.u32 %s4505_s21, 4  ;;  %s3498_s15 = sshll.u32 %s4509_s22, 5 }
 0x228   : > { %v4328_v0 = vld [vmem:[#allocation4 + $0x38] sm:$0xff]   ;;  %3826 = vmatprep.subr.bf16.mxu1 %v4327_v49  ;;  %v4332_v35 = vld [vmem:[#allocation4 + $0x30] sm:$0xff]   ;;  %v4336_v7 = vld [vmem:[#allocation4 + $0x28] sm:$0xff]   ;;  %s3241_s17 = sadd.s32 %s3503_s16, %s3498_s15  ;;  %s3244_s22 = sshll.u32 %s4672_s26, 4  ;;  %s6084_s22 = int_to_ptr.vmem [resolvable:$true] %s3244_s22 }
 0x229   : > { %v4329_v16 = vld [vmem:[#allocation4 + $0xf8] sm:$0xff]   ;;  %3827 = vmatpush3.bf16.msra.mxu1 %v4328_v0  ;;  %v4333_v50 = vld [vmem:[#allocation4 + $0xf0] sm:$0xff]   ;;  %v4337_v31 = vld [vmem:[#allocation4 + $0xe8] sm:$0xff]   ;;  %s3499_s21 = sshll.u32 %s3241_s17, 7  ;;  %s6255_s30 = sand.u32 1, %s4497_s19  }
 0x22a   : > { %v4330_v22 = vld [vmem:[#allocation4 + $0xb8] sm:$0xff]   ;;  %3890 = vmatprep.subr.bf16.mxu0 %v4329_v16  ;;  %3828 = vmatprep.subr.bf16.mxu1 %v4331_v24  ;;  %v4334_v13 = vld [vmem:[#allocation4 + $0xb0] sm:$0xff]   ;;  %v4338_v27 = vld [vmem:[#allocation4 + $0xa8] sm:$0xff]   ;;  %s6082_s27 = scalar_lea.hbm %s6146_s5, %s3499_s21  ;;  %s6090_s9 = scalar_lea.sflag [#allocation6], %s6255_s30 }
 0x22b   : > { %3891 = vmatpush3.bf16.msra.mxu0 %v4330_v22  ;;  %v4339_v8 = vld [vmem:[#allocation4 + $0x60] sm:$0xff]   ;;  %v4343_v19 = vld [vmem:[#allocation4 + $0x58] sm:$0xff]   ;;  %v4347_v58 = vld [vmem:[#allocation4 + $0x50] sm:$0xff]   ;;  %s4425_s10 = scalar_lea.vmem %s6084_s22, 2048  ;;  %s4529_s12 = smov [#allocation7]  }
 0x22c   : > { %3892 = vmatprep.subr.bf16.mxu0 %v4333_v50  ;;  %v4340_v29 = vld [vmem:[#allocation4 + $0x20] sm:$0xff]   ;;  %v4344_v20 = vld [vmem:[#allocation4 + $0x18] sm:$0xff]   ;;  %v4348_v44 = vld [vmem:[#allocation4 + $0x10] sm:$0xff]   ;;  %p4426_p0 = scmp.ne.s32.totalorder %s6084_s22, %s4425_s10  ;;  %s4429_s14 = sshll.u32 %s4529_s12, 4  ;;  %s4430_s14 = int_to_ptr.vmem [resolvable:$false] %s4429_s14 }
 0x22d   : > { %3829 = vmatpush3.bf16.msra.mxu1 %v4332_v35  ;;  %v4341_v33 = vld [vmem:[#allocation4 + $0xe0] sm:$0xff]   ;;  %v4345_v30 = vld [vmem:[#allocation4 + $0xd8] sm:$0xff]   ;;  %v4349_v52 = vld [vmem:[#allocation4 + $0xd0] sm:$0xff]   ;;  %s4431_s16 = scalar_lea.vmem %s4430_s14, 4096  ;;  %p4432_p4 = scmp.lt.s32.totalorder %s6084_s22, %s4430_s14 }
 0x22e   : > { %3830 = vmatprep.subr.bf16.mxu1 %v4335_v39  ;;  %v4342_v17 = vld [vmem:[#allocation4 + $0xa0] sm:$0xff]   ;;  %v4346_v5 = vld [vmem:[#allocation4 + $0x98] sm:$0xff]   ;;  %v4350_v55 = vld [vmem:[#allocation4 + $0x90] sm:$0xff]   ;;  %p4427_p1 = pnand %p4426_p0, %p4614_p3  ;;  %p4433_p5 = scmp.lt.s32.totalorder %s4431_s16, %s4425_s10 }
 0x22f   : > { %3893 = vmatpush3.bf16.msra.mxu0 %v4334_v13  ;;  %v4351_v45 = vld [vmem:[#allocation4 + $0x48] sm:$0xff]   ;;  %v4355_v21 = vld [vmem:[#allocation4 + $0x40] sm:$0xff]   ;;  %v1897_v61 = vld [vmem:[#allocation3] sm:$0xff] }
 0x230   : > { %3894 = vmatprep.subr.bf16.mxu0 %v4337_v31  ;;  %v4352_v15 = vld [vmem:[#allocation4 + $0x8] sm:$0xff]   ;;  %v4356_v48 = vld [vmem:[#allocation4] sm:$0xff]   ;;  %v1898_v46 = vld [vmem:[#allocation3 + $0x8] sm:$0xff]  ;;  %v1951_v4 = vrot.slane %v1897_v61, 1  ;;  %v2007_v41 = vrot.slane %v1897_v61, 2  ;;  %p4428_p2 = pneg %p4427_p1  ;;  %p4434_p6 = por %p4433_p5, %p4432_p4 }
 0x231   : > { %3831 = vmatpush3.bf16.msra.mxu1 %v4336_v7  ;;  %v4353_v51 = vld [vmem:[#allocation4 + $0xc8] sm:$0xff]   ;;  %v4357_v56 = vld [vmem:[#allocation4 + $0xc0] sm:$0xff]   ;;  %v1952_v11 = vrot.slane %v1898_v46, 1  ;;  %v2097_v57 = vpack.c.bf16 %v1898_v46, %v1897_v61  ;;  %v4359_v2 = vld [vmem:[#allocation4 + $0x178] sm:$0xff]   ;;  %v2008_v1 = vrot.slane %v1898_v46, 2 }
 0x232   : > { %3832 = vmatprep.subr.bf16.mxu1 %v4339_v8  ;;  %v4354_v34 = vld [vmem:[#allocation4 + $0x88] sm:$0xff]   ;;  %v1899_v6 = vld [vmem:[#allocation3 + $0x10] sm:$0x3]  ;;  %v1901_v59 = vld [vmem:[#allocation3 + $0x20] sm:$0xff]  ;;  %p4435_p7 = pnand %p4434_p6, %p4428_p2 }
 0x233   : > { %3895 = vmatpush3.bf16.msra.mxu0 %v4338_v27  ;;  %v1954_v53 = vrot.slane %v1899_v6, 1  ;;  %v2010_v25 = vrot.slane %v1899_v6, 2  ;;  %v4358_v14 = vld [vmem:[#allocation4 + $0x80] sm:$0xff]   ;;  %v1953_v43 = vsel %vm483_vm1, %v1951_v4, %v1952_v11  ;;  %v1900_v36 = vld [vmem:[#allocation3 + $0x18] sm:$0xff]  ;;  %v4360_v12 = vld [vmem:[#allocation4 + $0x138] sm:$0xff]   ;;  %v1957_v40 = vrot.slane %v1901_v59, 1 }
 0x234   : > { %3896 = vmatprep.subr.bf16.mxu0 %v4341_v33  ;;  %v1956_v62 = vrot.slane %v1900_v36, 1  ;;  %v2012_v42 = vrot.slane %v1900_v36, 2  ;;  %v2013_v23 = vrot.slane %v1901_v59, 2  ;;  %v2100_v18 = vpack.c.bf16 %v1901_v59, %v1900_v36  ;;  %v1902_v32 = vld [vmem:[#allocation3 + $0x28] sm:$0x3]  ;;  %v4361_v10 = vld [vmem:[#allocation4 + $0x170] sm:$0xff]  }
 0x235   : > { %3833 = vmatpush3.bf16.msra.mxu1 %v4340_v29  ;;  %v1955_v47 = vsel %vm483_vm1, %v1952_v11, %v1954_v53  ;;  %v2009_v3 = vsel %vm554_vm2, %v2007_v41, %v2008_v1  ;;  %v2011_v9 = vsel %vm554_vm2, %v2008_v1, %v2010_v25  ;;  %v1959_v60 = vrot.slane %v1902_v32, 1  ;;  %v1903_v54 = vld [vmem:[#allocation3 + $0x30] sm:$0xff]  ;;  %v1904_v26 = vld [vmem:[#allocation3 + $0x38] sm:$0xff]  ;;  %v4362_v16 = vld [vmem:[#allocation4 + $0x130] sm:$0xff]  }
 0x236   : > { %3834 = vmatprep.subr.bf16.mxu1 %v4343_v19  ;;  %v2098_v63 = vpack.c.bf16 %v1955_v47, %v1953_v43  ;;  %2839 = vmatprep.mubr.bf16.mxu0 %v2100_v18  ;;  %v2099_v37 = vpack.c.bf16 %v2011_v9, %v2009_v3  ;;  %v1958_v38 = vsel %vm483_vm1, %v1956_v62, %v1957_v40  ;;  %v2015_v28 = vrot.slane %v1902_v32, 2  ;;  %v1905_v22 = vld [vmem:[#allocation3 + $0x40] sm:$0x3]  ;;  %v4363_v31 = vld [vmem:[#allocation4 + $0x168] sm:$0xff]   ;;  %v5691_v27 = vld [vmem:[#allocation3 + $0x48] sm:$0xff] }
 0x237   : > { %3897 = vmatpush3.bf16.msra.mxu0 %v4342_v17  ;;  %v1960_v49 = vsel %vm483_vm1, %v1957_v40, %v1959_v60  ;;  %v5684_v0 = vpack.c.bf16 %v1904_v26, %v1903_v54  ;;  %v1961_v24 = vrot.slane %v1903_v54, 1  ;;  %v1962_v50 = vrot.slane %v1904_v26, 1  ;;  %v5696_v33 = vld [vmem:[#allocation3 + $0x50] sm:$0xff]  ;;  %v5712_v46 = vld [vmem:[#allocation3 + $0x60] sm:$0xff]  ;;  %v4369_v6 = vld [vmem:[#allocation4 + $0x158] sm:$0xff]  }
 0x238   : > { %3898 = vmatprep.subr.bf16.mxu0 %v4345_v30  ;;  %2742 = vmatprep.mubr.bf16.mxu1 %v2098_v63  ;;  %v5686_v35 = vpack.c.bf16 %v1960_v49, %v1958_v38  ;;  %v1964_v13 = vrot.slane %v1905_v22, 1  ;;  %v2014_v39 = vsel %vm554_vm2, %v2012_v42, %v2013_v23  ;;  %v2016_v7 = vsel %vm554_vm2, %v2013_v23, %v2015_v28  ;;  %v5717_v53 = vld [vmem:[#allocation3 + $0x68] sm:$0xff]  ;;  %v1911_v25 = vld [vmem:[#allocation3 + $0x70] sm:$0x3]  ;;  %v4372_v1 = vld [vmem:[#allocation4 + $0x1b0] sm:$0xff]  }
 0x239   : > { %3835 = vmatpush3.bf16.msra.mxu1 %v4344_v20  ;;  %v1963_v8 = vsel %vm483_vm1, %v1961_v24, %v1962_v50  ;;  %v2017_v17 = vrot.slane %v1903_v54, 2  ;;  %v4364_v20 = vld [vmem:[#allocation4 + $0x128] sm:$0xff]   ;;  %v2018_v30 = vrot.slane %v1904_v26, 2  ;;  %v4370_v41 = vld [vmem:[#allocation4 + $0x118] sm:$0xff]   ;;  %v1972_v47 = vrot.slane %v5717_v53, 1  ;;  %v4374_v23 = vld [vmem:[#allocation4 + $0x110] sm:$0xff]  }
 0x23a   : > { %3836 = vmatprep.subr.bf16.mxu1 %v4347_v58  ;;  %v1965_v29 = vsel %vm483_vm1, %v1962_v50, %v1964_v13  ;;  %v5700_v58 = vpack.c.bf16 %v2016_v7, %v2014_v39  ;;  %v1974_v36 = vrot.slane %v1911_v25, 1  ;;  %v5727_v63 = vpack.c.bf16 %v5717_v53, %v5712_v46  ;;  %v5733_v40 = vld [vmem:[#allocation3 + $0x88] sm:$0x3]  ;;  %v5738_v32 = vld [vmem:[#allocation3 + $0x78] sm:$0xff]  ;;  %v5740_v9 = vld [vmem:[#allocation3 + $0x80] sm:$0xff] }
 0x23b   : > { %3899 = vmatpush3.bf16.msra.mxu0 %v4346_v5  ;;  %v5698_v19 = vpack.c.bf16 %v1965_v29, %v1963_v8  ;;  %v1908_v5 = vld [vmem:[#allocation3 + $0x58] sm:$0x3]  ;;  %v2019_v4 = vsel %vm554_vm2, %v2017_v17, %v2018_v30  ;;  %v2022_v59 = vrot.slane %v5691_v27, 2  ;;  %v2023_v62 = vrot.slane %v5696_v33, 2  ;;  %v4377_v49 = vld [vmem:[#allocation4 + $0x1e0] sm:$0xff]  }
 0x23c   : > { %3900 = vmatprep.subr.bf16.mxu0 %v4349_v52  ;;  %v1967_v52 = vrot.slane %v5696_v33, 1  ;;  %v2025_v42 = vrot.slane %v1908_v5, 2  ;;  %v1975_v3 = vsel %vm483_vm1, %v1972_v47, %v1974_v36  ;;  %v2027_v60 = vrot.slane %v5712_v46, 2  ;;  %v4376_v26 = vld [vmem:[#allocation4 + $0x1a8] sm:$0xff]   ;;  %v4378_v39 = vld [vmem:[#allocation4 + $0x1a0] sm:$0xff]  }
 0x23d   : > { %3837 = vmatpush3.bf16.msra.mxu1 %v4348_v44  ;;  %v1966_v44 = vrot.slane %v5691_v27, 1  ;;  %v2028_v54 = vrot.slane %v5717_v53, 2  ;;  %v2030_v28 = vrot.slane %v1911_v25, 2  ;;  %v1977_v24 = vrot.slane %v5740_v9, 1  ;;  %v5761_v29 = vld [vmem:[#allocation3 + $0xa0] sm:$0x3] }
 0x23e   : > { %3838 = vmatprep.subr.bf16.mxu1 %v4351_v45  ;;  %v4365_v45 = vld [vmem:[#allocation4 + $0x160] sm:$0xff]   ;;  %v2026_v38 = vsel %vm554_vm2, %v2023_v62, %v2025_v42  ;;  %v1979_v13 = vrot.slane %v5733_v40, 1  ;;  %v5756_v7 = vpack.c.bf16 %v5740_v9, %v5738_v32  ;;  %v4387_v25 = vld [vmem:[#allocation4 + $0x1c8] sm:$0xff]  }
 0x23f   : > { %3901 = vmatpush3.bf16.msra.mxu0 %v4350_v55  ;;  %v1969_v55 = vrot.slane %v1908_v5, 1  ;;  %v2029_v8 = vsel %vm554_vm2, %v2027_v60, %v2028_v54  ;;  %v2031_v17 = vsel %vm554_vm2, %v2028_v54, %v2030_v28  ;;  %v5767_v5 = vld [vmem:[#allocation3 + $0x90] sm:$0xff]  ;;  %v1920_v42 = vld [vmem:[#allocation3 + $0xb8] sm:$0x3] }
 0x240   : > { %3902 = vmatprep.subr.bf16.mxu0 %v4353_v51  ;;  %v2020_v51 = vrot.slane %v1905_v22, 2  ;;  %v1976_v22 = vrot.slane %v5738_v32, 1  ;;  %v4386_v53 = vld [vmem:[#allocation4 + $0x100] sm:$0xff]   ;;  %v1989_v60 = vrot.slane %v1920_v42, 1 }
 0x241   : > { %3839 = vmatpush3.bf16.msra.mxu1 %v4352_v15  ;;  %v5706_v15 = vpack.c.bf16 %v5696_v33, %v5691_v27  ;;  %v1970_v61 = vsel %vm483_vm1, %v1967_v52, %v1969_v55  ;;  %v4380_v27 = vld [vmem:[#allocation4 + $0x108] sm:$0xff]   ;;  %v4381_v33 = vld [vmem:[#allocation4 + $0x1d8] sm:$0xff]   ;;  %v1919_v36 = vld [vmem:[#allocation3 + $0xb0] sm:$0xff] }
 0x242   : > { %3840 = vmatprep.subr.bf16.mxu1 %v4355_v21  ;;  %v4367_v21 = vld [vmem:[#allocation4 + $0x1f8] sm:$0xff]   ;;  %v2021_v11 = vsel %vm554_vm2, %v2018_v30, %v2020_v51  ;;  %v1980_v30 = vsel %vm483_vm1, %v1977_v24, %v1979_v13  ;;  %v1916_v55 = vld [vmem:[#allocation3 + $0x98] sm:$0xff] }
 0x243   : > { %3903 = vmatpush3.bf16.msra.mxu0 %v4354_v34  ;;  %v4366_v34 = vld [vmem:[#allocation4 + $0x120] sm:$0xff]  }
 0x244   : > { %3904 = vmatprep.subr.bf16.mxu0 %v4357_v56  ;;  %v1968_v56 = vsel %vm483_vm1, %v1966_v44, %v1967_v52  ;;  %v4382_v44 = vld [vmem:[#allocation4 + $0x198] sm:$0xff]   ;;  %v4383_v52 = vld [vmem:[#allocation4 + $0x1d0] sm:$0xff]  }
 0x245   : > { %3841 = vmatpush3.bf16.msra.mxu1 %v4356_v48  ;;  %v4368_v48 = vld [vmem:[#allocation4 + $0x1b8] sm:$0xff]   ;;  %v5720_v43 = vpack.c.bf16 %v1970_v61, %v1968_v56  ;;  %v1981_v56 = vrot.slane %v5767_v5, 1  ;;  %v1982_v61 = vrot.slane %v1916_v55, 1 }
 0x246   : > { %3954 = vmatprep.subr.bf16.mxu1 %v4359_v2  ;;  %v5723_v2 = vpack.c.bf16 %v2021_v11, %v2019_v4  ;;  %v5779_v4 = vpack.c.bf16 %v1916_v55, %v5767_v5  ;;  %v2035_v11 = vrot.slane %v5733_v40, 2  ;;  %v4391_v40 = vld [vmem:[#allocation4 + $0x238] sm:$0xff]  }
 0x247   : > { %3905 = vmatpush3.bf16.msra.mxu0 %v4358_v14  ;;  %v1971_v14 = vrot.slane %v5712_v46, 1  ;;  %v1984_v46 = vrot.slane %v5761_v29, 1 }
 0x248   : > { %2743 = vmatmul.mubr.bf16.vlgmr.msra.gmra.mxu1 %v2097_v57  ;;  %4018 = vmatprep.subr.bf16.mxu0 %v4367_v21  ;;  %v4371_v57 = vld [vmem:[#allocation4 + $0x1f0] sm:$0xff]  }
 0x249   : > { %3955 = vmatpush3.bf16.msra.mxu1 %v4360_v12  ;;  %2750 = vmatprep.mubr.bf16.mxu1 %v5686_v35  ;;  %v4373_v12 = vld [vmem:[#allocation4 + $0x150] sm:$0xff]  }
 0x24a   : > { %2840 = vmatmul.mubr.bf16.vlgmr.msra.gmra.mxu0 %v2099_v37  ;;  %3956 = vmatprep.subr.bf16.mxu1 %v4361_v10  ;;  %v4375_v10 = vld [vmem:[#allocation4 + $0x1e8] sm:$0xff]   ;;  %v2024_v37 = vsel %vm554_vm2, %v2022_v59, %v2023_v62  ;;  %v4384_v21 = vld [vmem:[#allocation4 + $0x190] sm:$0xff]  }
 0x24b   : > { %2847 = vmatprep.mubr.bf16.mxu0 %v5684_v0  ;;  %4019 = vmatpush3.bf16.msra.mxu0 %v4368_v48  ;;  %v5751_v50 = vpack.c.bf16 %v2026_v38, %v2024_v37  ;;  %v2033_v48 = vrot.slane %v5740_v9, 2  ;;  %v1987_v9 = vrot.slane %v1919_v36, 1  ;;  %v2038_v37 = vrot.slane %v1916_v55, 2  ;;  %v1924_v55 = vld [vmem:[#allocation3 + $0xd8] sm:$0xff] }
 0x24c   : > { %4020 = vmatprep.subr.bf16.mxu0 %v4371_v57  ;;  %v1918_v57 = vld [vmem:[#allocation3 + $0xa8] sm:$0xff]  ;;  %v2040_v38 = vrot.slane %v5761_v29, 2  ;;  %v2045_v29 = vrot.slane %v1920_v42, 2 }
 0x24d   : > { %3957 = vmatpush3.bf16.msra.mxu1 %v4362_v16  ;;  %v2036_v62 = vsel %vm554_vm2, %v2033_v48, %v2035_v11 }
 0x24e   : > { %3958 = vmatprep.subr.bf16.mxu1 %v4363_v31  ;;  %v4379_v31 = vld [vmem:[#allocation4 + $0x148] sm:$0xff]  }
 0x24f   : > { %4021 = vmatpush3.bf16.msra.mxu0 %v4372_v1  ;;  %v4389_v1 = vld [vmem:[#allocation4 + $0x1c0] sm:$0xff]  }
 0x250   : > { %2751 = vmatmul.mubr.bf16.gmra.mxu1 %v2100_v18  ;;  %v1973_v18 = vsel %vm483_vm1, %v1971_v14, %v1972_v47  ;;  %4022 = vmatprep.subr.bf16.mxu0 %v4375_v10  ;;  %v4388_v14 = vld [vmem:[#allocation4 + $0x188] sm:$0xff]   ;;  %v1985_v47 = vsel %vm483_vm1, %v1982_v61, %v1984_v46  ;;  %v5795_v10 = vpack.c.bf16 %v1919_v36, %v1918_v57  ;;  %v2083_v46 = vrot.slane %v1924_v55, 1 }
 0x251   : > { %2758 = vmatprep.mubr.bf16.mxu1 %v5698_v19  ;;  %3959 = vmatpush3.bf16.msra.mxu1 %v4364_v20  ;;  %v5747_v16 = vpack.c.bf16 %v1975_v3, %v1973_v18  ;;  %v1978_v20 = vsel %vm483_vm1, %v1976_v22, %v1977_v24  ;;  %v1986_v18 = vrot.slane %v1918_v57, 1  ;;  %v4390_v3 = vld [vmem:[#allocation4 + $0x180] sm:$0xff]   ;;  %v5806_v22 = vld [vmem:[#allocation3 + $0xc0] sm:$0xff]  ;;  %v5808_v24 = vld [vmem:[#allocation3 + $0xc8] sm:$0xff] }
 0x252   : > { %2848 = vmatmul.mubr.bf16.gmra.mxu0 %v5700_v58  ;;  %3960 = vmatprep.subr.bf16.mxu1 %v4365_v45  ;;  %v5770_v45 = vpack.c.bf16 %v2031_v17, %v2029_v8  ;;  %v5772_v51 = vpack.c.bf16 %v1980_v30, %v1978_v20  ;;  %v2043_v8 = vrot.slane %v1919_v36, 2  ;;  %v4392_v30 = vld [vmem:[#allocation4 + $0x230] sm:$0xff]   ;;  %v2090_v36 = vrot.slane %v1924_v55, 2 }
 0x253   : > { %2855 = vmatprep.mubr.bf16.mxu0 %v5706_v15  ;;  %4023 = vmatpush3.bf16.msra.mxu0 %v4376_v26  ;;  %v1988_v54 = vsel %vm483_vm1, %v1986_v18, %v1987_v9  ;;  %v1990_v26 = vsel %vm483_vm1, %v1987_v9, %v1989_v60 }
 0x254   : > { %4024 = vmatprep.subr.bf16.mxu0 %v4377_v49  ;;  %v2041_v49 = vsel %vm554_vm2, %v2038_v37, %v2040_v38  ;;  %v5810_v13 = vpack.c.bf16 %v1990_v26, %v1988_v54  ;;  %v2046_v17 = vsel %vm554_vm2, %v2043_v8, %v2045_v29 }
 0x255   : > { %3961 = vmatpush3.bf16.msra.mxu1 %v4366_v34  ;;  %v2032_v34 = vrot.slane %v5738_v32, 2 }
 0x256   : > { %3962 = vmatprep.subr.bf16.mxu1 %v4369_v6  ;;  %v4385_v6 = vld [vmem:[#allocation4 + $0x140] sm:$0xff]  }
 0x257   : > { %4025 = vmatpush3.bf16.msra.mxu0 %v4378_v39  ;;  %v2034_v59 = vsel %vm554_vm2, %v2032_v34, %v2033_v48  ;;  %v1925_v34 = vld [vmem:[#allocation3 + $0xe0] sm:$0xff]  ;;  %v2074_v48 = vrot.slane %v5808_v24, 2 }
 0x258   : > { %2759 = vmatmul.mubr.bf16.gmra.mxu1 %v5684_v0  ;;  %4026 = vmatprep.subr.bf16.mxu0 %v4381_v33  ;;  %v5793_v32 = vpack.c.bf16 %v2036_v62, %v2034_v59 }
 0x259   : > { %2766 = vmatprep.mubr.bf16.mxu1 %v5720_v43  ;;  %3963 = vmatpush3.bf16.msra.mxu1 %v4370_v41  ;;  %v1983_v41 = vsel %vm483_vm1, %v1981_v56, %v1982_v61 }
 0x25a   : > { %2856 = vmatmul.mubr.bf16.gmra.mxu0 %v5723_v2  ;;  %3964 = vmatprep.subr.bf16.mxu1 %v4373_v12  ;;  %v2037_v12 = vrot.slane %v5767_v5, 2  ;;  %v4393_v5 = vld [vmem:[#allocation4 + $0x228] sm:$0xff]  }
 0x25b   : > { %2863 = vmatprep.mubr.bf16.mxu0 %v5727_v63  ;;  %4027 = vmatpush3.bf16.msra.mxu0 %v4382_v44  ;;  %v4394_v44 = vld [vmem:[#allocation4 + $0x220] sm:$0xff]  }
 0x25c   : > { %4028 = vmatprep.subr.bf16.mxu0 %v4383_v52  ;;  %v2039_v28 = vsel %vm554_vm2, %v2037_v12, %v2038_v37 }
 0x25d   : > { %3965 = vmatpush3.bf16.msra.mxu1 %v4374_v23  ;;  %v5791_v23 = vpack.c.bf16 %v1985_v47, %v1983_v41  ;;  %v5812_v39 = vpack.c.bf16 %v2041_v49, %v2039_v28 }
 0x25e   : > { %3966 = vmatprep.subr.bf16.mxu1 %v4379_v31  ;;  %v5816_v31 = vpack.c.bf16 %v5808_v24, %v5806_v22 }
 0x25f   : > { %4029 = vmatpush3.bf16.msra.mxu0 %v4384_v21  ;;  %v1926_v21 = vld [vmem:[#allocation3 + $0xe8] sm:$0x3] }
 0x260   : > { %2767 = vmatmul.mubr.bf16.gmra.mxu1 %v5706_v15  ;;  %4030 = vmatprep.subr.bf16.mxu0 %v4387_v25  ;;  %v2093_v59 = vrot.slane %v1926_v21, 2 }
 0x261   : > { %2774 = vmatprep.mubr.bf16.mxu1 %v5747_v16  ;;  %3967 = vmatpush3.bf16.msra.mxu1 %v4380_v27  ;;  %v2042_v27 = vrot.slane %v1918_v57, 2  ;;  %v2124_v57 = vpack.c.bf16 %v1925_v34, %v1924_v55 }
 0x262   : > { %2864 = vmatmul.mubr.bf16.gmra.mxu0 %v5751_v50  ;;  %3968 = vmatprep.subr.bf16.mxu1 %v4385_v6  ;;  %v2084_v6 = vrot.slane %v1925_v34, 1 }
 0x263   : > { %2871 = vmatprep.mubr.bf16.mxu0 %v5756_v7  ;;  %4031 = vmatpush3.bf16.msra.mxu0 %v4388_v14  ;;  %v2044_v33 = vsel %vm554_vm2, %v2042_v27, %v2043_v8 }
 0x264   : > { %4032 = vmatprep.subr.bf16.mxu0 %v4389_v1  ;;  %v5824_v20 = vpack.c.bf16 %v2046_v17, %v2044_v33  ;;  %v2085_v25 = vsel %vm483_vm1, %v2083_v46, %v2084_v6  ;;  %v2091_v1 = vrot.slane %v1925_v34, 2 }
 0x265   : > { %3969 = vmatpush3.bf16.msra.mxu1 %v4386_v53 }
 0x266   : > { %4134 = vmatprep.subr.bf16.mxu1 %v4391_v40  ;;  %v2092_v62 = vsel %vm554_vm2, %v2090_v36, %v2091_v1  ;;  %v2094_v42 = vsel %vm554_vm2, %v2091_v1, %v2093_v59 }
 0x267   : > { %4033 = vmatpush3.bf16.msra.mxu0 %v4390_v3 }
 0x268   : > { %2775 = vmatmul.mubr.bf16.gmra.mxu1 %v5727_v63 }
 0x269   : > { %2782 = vmatprep.mubr.bf16.mxu1 %v5772_v51 }
 0x26a   : > { %2872 = vmatmul.mubr.bf16.gmra.mxu0 %v5770_v45 }
 0x26b   : > { %2879 = vmatprep.mubr.bf16.mxu0 %v5779_v4 }
 0x270   : > { %2783 = vmatmul.mubr.bf16.gmra.mxu1 %v5756_v7 }
 0x271   : > { %2790 = vmatprep.mubr.bf16.mxu1 %v5791_v23 }
 0x272   : > { %2880 = vmatmul.mubr.bf16.gmra.mxu0 %v5793_v32 }
 0x273   : > { %2887 = vmatprep.mubr.bf16.mxu0 %v5795_v10 }
 0x278   : > { %2791 = vmatmul.mubr.bf16.gmra.mxu1 %v5779_v4 }
 0x279   : > { %2798 = vmatprep.mubr.bf16.mxu1 %v5810_v13 }
 0x27a   : > { %2888 = vmatmul.mubr.bf16.gmra.mxu0 %v5812_v39 }
 0x27b   : > { %2895 = vmatprep.mubr.bf16.mxu0 %v5816_v31 }
 0x280   : > { %2799 = vmatmul.mubr.bf16.gmra.mxu1 %v5795_v10 }
 0x281   : > { %2936 = vmatprep.mubr.bf16.mxu1 %v5700_v58  ;;  %v4398_v58 = vld [vmem:[#allocation4 + $0x200] sm:$0xff]  }
 0x282   : > { %2896 = vmatmul.mubr.bf16.gmra.mxu0 %v5824_v20 }
 0x283   : > { %3033 = vmatprep.mubr.bf16.mxu0 %v5698_v19 }
 0x288   : > { %2937 = vmatmul.mubr.bf16.vlgmr.msra.gmra.mxu1 %v5686_v35  ;;  %v4395_v35 = vld [vmem:[#allocation4 + $0x218] sm:$0xff]  }
 0x289   : > { %4135 = vmatpush3.bf16.msra.mxu1 %v4391_v40  ;;  %2944 = vmatprep.mubr.bf16.mxu1 %v5723_v2 }
 0x28a   : > { %3034 = vmatmul.mubr.bf16.vlgmr.msra.gmra.mxu0 %v5684_v0  ;;  %4136 = vmatprep.subr.bf16.mxu1 %v4392_v30  ;;  %v4396_v0 = vld [vmem:[#allocation4 + $0x210] sm:$0xff]  }
 0x28b   : > { %3041 = vmatprep.mubr.bf16.mxu0 %v5720_v43 }
 0x28d   : > { %4137 = vmatpush3.bf16.msra.mxu1 %v4392_v30 }
 0x28e   : > { %4138 = vmatprep.subr.bf16.mxu1 %v4393_v5 }
 0x290   : > { %2945 = vmatmul.mubr.bf16.gmra.mxu1 %v5698_v19  ;;  %v4397_v19 = vld [vmem:[#allocation4 + $0x208] sm:$0xff]  }
 0x291   : > { %2952 = vmatprep.mubr.bf16.mxu1 %v5751_v50  ;;  %4139 = vmatpush3.bf16.msra.mxu1 %v4393_v5 }
 0x292   : > { %3042 = vmatmul.mubr.bf16.gmra.mxu0 %v5706_v15  ;;  %4140 = vmatprep.subr.bf16.mxu1 %v4394_v44  ;;  %v1923_v15 = vld [vmem:[#allocation3 + $0xd0] sm:$0x3] }
 0x293   : > { %3049 = vmatprep.mubr.bf16.mxu0 %v5747_v16  ;;  %v2069_v52 = vrot.slane %v1923_v15, 1  ;;  %v2076_v56 = vrot.slane %v1923_v15, 2 }
 0x295   : > { %4141 = vmatpush3.bf16.msra.mxu1 %v4394_v44  ;;  %v2077_v53 = vsel %vm554_vm2, %v2074_v48, %v2076_v56 }
 0x296   : > { %4142 = vmatprep.subr.bf16.mxu1 %v4395_v35 }
 0x298   : > { %2953 = vmatmul.mubr.bf16.gmra.mxu1 %v5720_v43  ;;  %v2066_v43 = vrot.slane %v5806_v22, 1 }
 0x299   : > { %2960 = vmatprep.mubr.bf16.mxu1 %v5770_v45  ;;  %4143 = vmatpush3.bf16.msra.mxu1 %v4395_v35 }
 0x29a   : > { %3050 = vmatmul.mubr.bf16.gmra.mxu0 %v5727_v63  ;;  %4144 = vmatprep.subr.bf16.mxu1 %v4396_v0  ;;  %v2067_v63 = vrot.slane %v5808_v24, 1 }
 0x29b   : > { %3057 = vmatprep.mubr.bf16.mxu0 %v5772_v51 }
 0x29d   : > { %4145 = vmatpush3.bf16.msra.mxu1 %v4396_v0 }
 0x29e   : > { %4146 = vmatprep.subr.bf16.mxu1 %v4397_v19 }
 0x2a0   : > { %2961 = vmatmul.mubr.bf16.gmra.mxu1 %v5747_v16  ;;  %v2068_v16 = vsel %vm483_vm1, %v2066_v43, %v2067_v63 }
 0x2a1   : > { %2968 = vmatprep.mubr.bf16.mxu1 %v5793_v32  ;;  %4147 = vmatpush3.bf16.msra.mxu1 %v4397_v19 }
 0x2a2   : > { %3058 = vmatmul.mubr.bf16.gmra.mxu0 %v5756_v7  ;;  %4148 = vmatprep.subr.bf16.mxu1 %v4398_v58  ;;  %v2070_v7 = vsel %vm483_vm1, %v2067_v63, %v2069_v52 }
 0x2a3   : > { %3065 = vmatprep.mubr.bf16.mxu0 %v5791_v23  ;;  %v2122_v61 = vpack.c.bf16 %v2070_v7, %v2068_v16 }
 0x2a5   : > { %4149 = vmatpush3.bf16.msra.mxu1 %v4398_v58 }
 0x2a8   : > { %2969 = vmatmul.mubr.bf16.gmra.mxu1 %v5772_v51  ;;  %v2073_v51 = vrot.slane %v5806_v22, 2 }
 0x2a9   : > { %2976 = vmatprep.mubr.bf16.mxu1 %v5812_v39 }
 0x2aa   : > { %3066 = vmatmul.mubr.bf16.gmra.mxu0 %v5779_v4  ;;  %v2086_v4 = vrot.slane %v1926_v21, 1  ;;  %v2075_v11 = vsel %vm554_vm2, %v2073_v51, %v2074_v48 }
 0x2ab   : > { %3073 = vmatprep.mubr.bf16.mxu0 %v5810_v13  ;;  %v2123_v41 = vpack.c.bf16 %v2077_v53, %v2075_v11 }
 0x2ac   : > { %v2087_v14 = vsel %vm483_vm1, %v2084_v6, %v2086_v4 }
 0x2ad   : > { %v2125_v47 = vpack.c.bf16 %v2087_v14, %v2085_v25 }
 0x2b0   : > { %2977 = vmatmul.mubr.bf16.gmra.mxu1 %v5791_v23 }
 0x2b1   : > { %2984 = vmatprep.mubr.bf16.mxu1 %v5824_v20 }
 0x2b2   : > { %3074 = vmatmul.mubr.bf16.gmra.mxu0 %v5795_v10 }
 0x2b3   : > { %3081 = vmatprep.mubr.bf16.mxu0 %v2122_v61 }
 0x2b8   : > { %2985 = vmatmul.mubr.bf16.gmra.mxu1 %v5810_v13 }
 0x2b9   : > { %2992 = vmatprep.mubr.bf16.mxu1 %v2123_v41 }
 0x2ba   : > { %3082 = vmatmul.mubr.bf16.gmra.mxu0 %v5816_v31 }
 0x2bb   : > { %3089 = vmatprep.mubr.bf16.mxu0 %v2125_v47 }
 0x2c0   : > { %2993 = vmatmul.mubr.bf16.gmra.mxu1 %v2122_v61 }
 0x2c1   : > { %4150 = vmatprep.mubr.bf16.mxu1 %v5723_v2  ;;  %v2126_v2 = vpack.c.bf16 %v2094_v42, %v2092_v62 }
 0x2c2   : > { %3090 = vmatmul.mubr.bf16.gmra.mxu0 %v2124_v57 }
 0x2c8   : > { %4151 = vmatmul.mubr.bf16.vlgmr.msra.gmra.mxu1 %v5751_v50  ;;  %v5876_v50 = vld [vmem:[%s6145_s4] ss:$0 sm:$0xff] }
 0x2c9   : > { %4154 = vmatprep.mubr.bf16.mxu1 %v5770_v45 }
 0x2d0   : > { %4155 = vmatmul.mubr.bf16.gmra.mxu1 %v5793_v32 }
 0x2d1   : > { %4158 = vmatprep.mubr.bf16.mxu1 %v5812_v39 }
 0x2d8   : > { %4159 = vmatmul.mubr.bf16.gmra.mxu1 %v5824_v20 }
 0x2d9   : > { %4162 = vmatprep.mubr.bf16.mxu1 %v2123_v41 }
 0x2e0   : > { %4163 = vmatmul.mubr.bf16.gmra.mxu1 %v2126_v2 }
 0x308   : > { %v3842_v12 = vpop.f32.mrf.mxu1 }
 0x30a   : > { %v3843_v45 = vpop.f32.mrf.mxu1  ;;  %v3906_v40 = vpop.f32.mrf.mxu0 }
 0x30b   : > { %v3844_v23 = vadd.f32 %v3843_v45, %v3842_v12 }
 0x30c   : > { %v3845_v18 = vpop.f32.mrf.mxu1  ;;  %v3907_v3 = vpop.f32.mrf.mxu0 }
 0x30d   : > { %v2745_v32 = vadd.f32 %v3844_v23, %v5876_v50  ;;  %v3908_v9 = vadd.f32 %v3907_v3, %v3906_v40 }
 0x30e   : > { %v3846_v60 = vpop.f32.mrf.mxu1  ;;  %v3909_v10 = vpop.f32.mrf.mxu0 }
 0x30f   : > { %v5879_v37 = vadd.f32 %v3908_v9, %v2745_v32  ;;  %v3847_v38 = vadd.f32 %v3846_v60, %v3845_v18 }
 0x310   : > { %v3848_v54 = vpop.f32.mrf.mxu1  ;;  %v3910_v26 = vpop.f32.mrf.mxu0 }
 0x311   : > { %v2748_v28 = vadd.f32 %v3847_v38, %v5876_v50  ;;  %v3911_v49 = vadd.f32 %v3910_v26, %v3909_v10 }
 0x312   : > { %v3849_v22 = vpop.f32.mrf.mxu1  ;;  %v3912_v24 = vpop.f32.mrf.mxu0 }
 0x313   : > { %v5882_v13 = vadd.f32 %v3911_v49, %v2748_v28  ;;  %v3850_v39 = vadd.f32 %v3849_v22, %v3848_v54 }
 0x314   : > { %v3851_v31 = vpop.f32.mrf.mxu1  ;;  %v3913_v27 = vpop.f32.mrf.mxu0 }
 0x315   : > { %v2753_v8 = vadd.f32 %v3850_v39, %v5876_v50  ;;  %v3914_v29 = vadd.f32 %v3913_v27, %v3912_v24 }
 0x316   : > { %v3852_v33 = vpop.f32.mrf.mxu1  ;;  %v3915_v17 = vpop.f32.mrf.mxu0 }
 0x317   : > { %v5885_v20 = vadd.f32 %v3914_v29, %v2753_v8  ;;  %v3853_v30 = vadd.f32 %v3852_v33, %v3851_v31 }
 0x318   : > { %v3854_v5 = vpop.f32.mrf.mxu1  ;;  %v3916_v44 = vpop.f32.mrf.mxu0 }
 0x319   : > { %v2756_v35 = vadd.f32 %v3853_v30, %v5876_v50  ;;  %v3917_v0 = vadd.f32 %v3916_v44, %v3915_v17 }
 0x31a   : > { %v3855_v19 = vpop.f32.mrf.mxu1  ;;  %v3918_v58 = vpop.f32.mrf.mxu0 }
 0x31b   : > { %v5888_v15 = vadd.f32 %v3917_v0, %v2756_v35  ;;  %v3856_v43 = vadd.f32 %v3855_v19, %v3854_v5 }
 0x31c   : > { %v3857_v63 = vpop.f32.mrf.mxu1  ;;  %v3919_v52 = vpop.f32.mrf.mxu0 }
 0x31d   : > { %v2761_v16 = vadd.f32 %v3856_v43, %v5876_v50  ;;  %v3920_v7 = vadd.f32 %v3919_v52, %v3918_v58 }
 0x31e   : > { %v3858_v55 = vpop.f32.mrf.mxu1  ;;  %v3921_v34 = vpop.f32.mrf.mxu0 }
 0x31f   : > { %v5891_v21 = vadd.f32 %v3920_v7, %v2761_v16  ;;  %v3859_v51 = vadd.f32 %v3858_v55, %v3857_v63 }
 0x320   : > { %v3860_v48 = vpop.f32.mrf.mxu1  ;;  %v3922_v56 = vpop.f32.mrf.mxu0 }
 0x321   : > { %v2764_v61 = vadd.f32 %v3859_v51, %v5876_v50  ;;  %v3923_v46 = vadd.f32 %v3922_v56, %v3921_v34 }
 0x322   : > { %v3861_v6 = vpop.f32.mrf.mxu1  ;;  %v3924_v4 = vpop.f32.mrf.mxu0 }
 0x323   : > { %v5894_v11 = vadd.f32 %v3923_v46, %v2764_v61  ;;  %v3862_v53 = vadd.f32 %v3861_v6, %v3860_v48 }
 0x324   : > { %v3863_v25 = vpop.f32.mrf.mxu1  ;;  %v3925_v14 = vpop.f32.mrf.mxu0 }
 0x325   : > { %v2769_v41 = vadd.f32 %v3862_v53, %v5876_v50  ;;  %v3926_v47 = vadd.f32 %v3925_v14, %v3924_v4 }
 0x326   : > { %v3864_v57 = vpop.f32.mrf.mxu1  ;;  %v3927_v36 = vpop.f32.mrf.mxu0 }
 0x327   : > { %v5897_v1 = vadd.f32 %v3926_v47, %v2769_v41  ;;  %v3865_v59 = vadd.f32 %v3864_v57, %v3863_v25 }
 0x328   : > { %v3866_v62 = vpop.f32.mrf.mxu1  ;;  %v3928_v42 = vpop.f32.mrf.mxu0 }
 0x329   : > { %v2772_v2 = vadd.f32 %v3865_v59, %v5876_v50  ;;  %v3929_v12 = vadd.f32 %v3928_v42, %v3927_v36 }
 0x32a   : > { %v3867_v45 = vpop.f32.mrf.mxu1  ;;  %v3930_v40 = vpop.f32.mrf.mxu0 }
 0x32b   : > { %v5900_v23 = vadd.f32 %v3929_v12, %v2772_v2  ;;  %v3868_v18 = vadd.f32 %v3867_v45, %v3866_v62 }
 0x32c   : > { %v3869_v3 = vpop.f32.mrf.mxu1  ;;  %v3931_v32 = vpop.f32.mrf.mxu0 }
 0x32d   : > { %v2777_v9 = vadd.f32 %v3868_v18, %v5876_v50  ;;  %v3932_v60 = vadd.f32 %v3931_v32, %v3930_v40 }
 0x32e   : > { %v3870_v10 = vpop.f32.mrf.mxu1  ;;  %v3933_v38 = vpop.f32.mrf.mxu0 }
 0x32f   : > { %v5903_v54 = vadd.f32 %v3932_v60, %v2777_v9  ;;  %v3871_v26 = vadd.f32 %v3870_v10, %v3869_v3 }
 0x330   : > { %v3872_v28 = vpop.f32.mrf.mxu1  ;;  %v3934_v49 = vpop.f32.mrf.mxu0 }
 0x331   : > { %6205 = vst [vmem:[#allocation27_spill] sm:$0xff] %v5903_v54  ;;  %v2780_v22 = vadd.f32 %v3871_v26, %v5876_v50  ;;  %v3935_v24 = vadd.f32 %v3934_v49, %v3933_v38 }
 0x332   : > { %v3873_v39 = vpop.f32.mrf.mxu1  ;;  %v3936_v31 = vpop.f32.mrf.mxu0 }
 0x333   : > { %v5906_v27 = vadd.f32 %v3935_v24, %v2780_v22  ;;  %v3874_v8 = vadd.f32 %v3873_v39, %v3872_v28 }
 0x334   : > { %v3875_v29 = vpop.f32.mrf.mxu1  ;;  %v3937_v33 = vpop.f32.mrf.mxu0 }
 0x335   : > { %6206 = vst [vmem:[#allocation23_spill] sm:$0xff] %v5906_v27  ;;  %v2785_v17 = vadd.f32 %v3874_v8, %v5876_v50  ;;  %v3938_v30 = vadd.f32 %v3937_v33, %v3936_v31 }
 0x336   : > { %v3876_v5 = vpop.f32.mrf.mxu1  ;;  %v3939_v44 = vpop.f32.mrf.mxu0 }
 0x337   : > { %v5909_v35 = vadd.f32 %v3938_v30, %v2785_v17  ;;  %v3877_v0 = vadd.f32 %v3876_v5, %v3875_v29 }
 0x338   : > { %v3878_v19 = vpop.f32.mrf.mxu1  ;;  %v3940_v58 = vpop.f32.mrf.mxu0 }
 0x339   : > { %v2788_v43 = vadd.f32 %v3877_v0, %v5876_v50  ;;  %v3941_v63 = vadd.f32 %v3940_v58, %v3939_v44 }
 0x33a   : > { %v3879_v52 = vpop.f32.mrf.mxu1  ;;  %v3942_v16 = vpop.f32.mrf.mxu0 }
 0x33b   : > { %v5912_v7 = vadd.f32 %v3941_v63, %v2788_v43  ;;  %v3880_v55 = vadd.f32 %v3879_v52, %v3878_v19 }
 0x33c   : > { %v3881_v34 = vpop.f32.mrf.mxu1  ;;  %v3943_v51 = vpop.f32.mrf.mxu0 }
 0x33d   : > { %6207 = vst [vmem:[#allocation24_spill] sm:$0xff] %v5912_v7  ;;  %v2793_v48 = vadd.f32 %v3880_v55, %v5876_v50  ;;  %v3944_v56 = vadd.f32 %v3943_v51, %v3942_v16 }
 0x33e   : > { %v3882_v61 = vpop.f32.mrf.mxu1  ;;  %v3945_v46 = vpop.f32.mrf.mxu0 }
 0x33f   : > { %v5915_v6 = vadd.f32 %v3944_v56, %v2793_v48  ;;  %v3883_v4 = vadd.f32 %v3882_v61, %v3881_v34 }
 0x340   : > { %v3884_v53 = vpop.f32.mrf.mxu1  ;;  %v3946_v25 = vpop.f32.mrf.mxu0 }
 0x341   : > { %6208 = vst [vmem:[#allocation10_spill] sm:$0xff] %v5915_v6  ;;  %v2796_v14 = vadd.f32 %v3883_v4, %v5876_v50  ;;  %v3947_v41 = vadd.f32 %v3946_v25, %v3945_v46 }
 0x342   : > { %v3885_v47 = vpop.f32.mrf.mxu1  ;;  %v5918_v57 = vpop.f32.mrf.mxu0 }
 0x343   : > { %v5920_v36 = vadd.f32 %v3947_v41, %v2796_v14  ;;  %v5922_v59 = vadd.f32 %v3885_v47, %v3884_v53 }
 0x344   : > { %v3887_v62 = vpop.f32.mrf.mxu1  ;;  %v5924_v42 = vpop.f32.mrf.mxu0 }
 0x345   : > { %6209 = vst [vmem:[#allocation17_spill] sm:$0xff] %v5920_v36 }
 0x346   : > { %v3888_v2 = vpop.f32.mrf.mxu1  ;;  %v5926_v12 = vpop.f32.mrf.mxu0 }
 0x347   : > { %6210 = vst [vmem:[#allocation19_spill] sm:$0xff] %v5926_v12  ;;  %v5928_v45 = vadd.f32 %v3888_v2, %v3887_v62 }
 0x348   : > { %v5930_v40 = vpop.f32.mrf.mxu0  ;;  %v3970_v18 = vpop.f32.mrf.mxu1 }
 0x349   : > { %6211 = vst [vmem:[#allocation18_spill] sm:$0xff] %v5928_v45  ;;  %6212 = vst [vmem:[#allocation20_spill] sm:$0xff] %v5930_v40 }
 0x34a   : > { %v3971_v3 = vpop.f32.mrf.mxu1  ;;  %v4034_v32 = vpop.f32.mrf.mxu0 }
 0x34c   : > { %v3973_v9 = vpop.f32.mrf.mxu1  ;;  %v4035_v60 = vpop.f32.mrf.mxu0 }
 0x34e   : > { %v3974_v10 = vpop.f32.mrf.mxu1  ;;  %v5932_v38 = vpop.f32.mrf.mxu0 }
 0x350   : > { %v3976_v26 = vpop.f32.mrf.mxu1  ;;  %v5934_v28 = vpop.f32.mrf.mxu0 }
 0x352   : > { %v3977_v49 = vpop.f32.mrf.mxu1  ;;  %v4040_v22 = vpop.f32.mrf.mxu0 }
 0x354   : > { %v3979_v24 = vpop.f32.mrf.mxu1  ;;  %v4041_v39 = vpop.f32.mrf.mxu0 }
 0x356   : > { %v3980_v31 = vpop.f32.mrf.mxu1  ;;  %v4043_v8 = vpop.f32.mrf.mxu0 }
 0x358   : > { %v3982_v29 = vpop.f32.mrf.mxu1  ;;  %v4044_v33 = vpop.f32.mrf.mxu0 }
 0x35a   : > { %v3983_v17 = vpop.f32.mrf.mxu1  ;;  %v5936_v30 = vpop.f32.mrf.mxu0 }
 0x35c   : > { %v5938_v5 = vpop.f32.mrf.mxu1  ;;  %v5940_v44 = vpop.f32.mrf.mxu0 }
 0x35e   : > { %v5942_v0 = vpop.f32.mrf.mxu1  ;;  %v5944_v19 = vpop.f32.mrf.mxu0 }
 0x360   : > { %v3988_v58 = vpop.f32.mrf.mxu1  ;;  %v5946_v43 = vpop.f32.mrf.mxu0 }
 0x362   : > { %v3989_v63 = vpop.f32.mrf.mxu1  ;;  %v4052_v52 = vpop.f32.mrf.mxu0 }
 0x364   : > { %v3991_v16 = vpop.f32.mrf.mxu1  ;;  %v4053_v55 = vpop.f32.mrf.mxu0 }
 0x366   : > { %v3992_v34 = vpop.f32.mrf.mxu1  ;;  %v5948_v51 = vpop.f32.mrf.mxu0 }
 0x368   : > { %v5950_v48 = vpop.f32.mrf.mxu1  ;;  %v5952_v56 = vpop.f32.mrf.mxu0 }
 0x36a   : > { %v5954_v61 = vpop.f32.mrf.mxu1  ;;  %v5956_v46 = vpop.f32.mrf.mxu0 }
 0x36b   : > { %6213 = vst [vmem:[#allocation31_spill] sm:$0xff] %v5956_v46  ;;  %v3972_v46 = vadd.f32 %v3971_v3, %v3970_v18  ;;  %v4045_v18 = vadd.f32 %v4044_v33, %v4043_v8 }
 0x36c   : > { %v5958_v4 = vpop.f32.mrf.mxu1  ;;  %v5960_v53 = vpop.f32.mrf.mxu0 }
 0x36d   : > { %6214 = vst [vmem:[#allocation32_spill] sm:$0xff] %v5958_v4  ;;  %6215 = vst [vmem:[#allocation12_spill] sm:$0xff] %v5960_v53 }
 0x36e   : > { %v5962_v25 = vpop.f32.mrf.mxu1  ;;  %v5964_v14 = vpop.f32.mrf.mxu0 }
 0x36f   : > { %6216 = vst [vmem:[#allocation30_spill] sm:$0xff] %v5962_v25  ;;  %6217 = vst [vmem:[#allocation33_spill] sm:$0xff] %v5964_v14  ;;  %v3978_v25 = vadd.f32 %v3977_v49, %v3976_v26  ;;  %v3990_v26 = vadd.f32 %v3989_v63, %v3988_v58 }
 0x370   : > { %v4000_v41 = vpop.f32.mrf.mxu1  ;;  %v5966_v47 = vpop.f32.mrf.mxu0 }
 0x371   : > { %6218 = vst [vmem:[#allocation25_spill] sm:$0xff] %v5966_v47 }
 0x372   : > { %v4001_v62 = vpop.f32.mrf.mxu1  ;;  %v5968_v2 = vpop.f32.mrf.mxu0 }
 0x374   : > { %v5970_v36 = vpop.f32.mrf.mxu1  ;;  %v5972_v6 = vpop.f32.mrf.mxu0 }
 0x375   : > { %6219 = vst [vmem:[#allocation26_spill] sm:$0xff] %v5970_v36 }
 0x376   : > { %v5974_v27 = vpop.f32.mrf.mxu1  ;;  %v5976_v40 = vpop.f32.mrf.mxu0 }
 0x377   : > { %6220 = vst [vmem:[#allocation11_spill] sm:$0xff] %v5974_v27  ;;  %6221 = vst [vmem:[#allocation21_spill] sm:$0xff] %v5976_v40  ;;  %v2947_v40 = vadd.f32 %v3978_v25, %v5885_v20  ;;  %v4042_v27 = vadd.f32 %v4041_v39, %v4040_v22  ;;  %v3993_v39 = vadd.f32 %v3992_v34, %v3991_v16 }
 0x378   : > { %v5978_v12 = vpop.f32.mrf.mxu1  ;;  %v5982_v7 = vpop.f32.mrf.mxu0  ;;  %v4051_v16 = vadd.f32 %v5946_v43, %v5944_v19  ;;  %v2801_v34 = vadd.f32 %v5922_v59, %v5876_v50  ;;  %v6233_v59 = vld [vmem:[#allocation31_spill] sm:$0xff] }
 0x379   : > { %6222 = vst [vmem:[#allocation22_spill] sm:$0xff] %v5978_v12  ;;  %6224 = vst [vmem:[#allocation34_spill] sm:$0xff] %v5982_v7  ;;  %v3981_v12 = vadd.f32 %v3980_v31, %v3979_v24  ;;  %v4036_v7 = vadd.f32 %v4035_v60, %v4034_v32  ;;  %v3044_v3 = vadd.f32 %v4042_v27, %v2947_v40 }
 0x37a   : > { %v5980_v45 = vpop.f32.mrf.mxu1  ;;  %v5988_v4 = vpop.f32.mrf.mxu0  ;;  %v4039_v24 = vadd.f32 %v5934_v28, %v5932_v38  ;;  %v4054_v60 = vadd.f32 %v4053_v55, %v4052_v52  ;;  %v2966_v58 = vadd.f32 %v3993_v39, %v5900_v23 }
 0x37b   : > { %6223 = vst [vmem:[#allocation15_spill] sm:$0xff] %v5980_v45  ;;  %6227 = vst [vmem:[#allocation28_spill] sm:$0xff] %v5988_v4  ;;  %v2950_v4 = vadd.f32 %v3981_v12, %v5888_v15 }
 0x37c   : > { %v5984_v14 = vpop.f32.mrf.mxu1  ;;  %v5995_v36 = vpop.f32.mrf.mxu0 }
 0x37d   : > { %6225 = vst [vmem:[#allocation35_spill] sm:$0xff] %v5984_v14  ;;  %v2939_v14 = vadd.f32 %v3972_v46, %v5879_v37  ;;  %v3047_v27 = vadd.f32 %v4045_v18, %v2950_v4 }
 0x37e   : > { %v5986_v47 = vpop.f32.mrf.mxu1  ;;  %v6231_v46 = vld [vmem:[#allocation11_spill] sm:$0xff]  ;;  %v6240_v39 = vld [vmem:[#allocation21_spill] sm:$0xff] }
 0x37f   : > { %6226 = vst [vmem:[#allocation13_spill] sm:$0xff] %v5986_v47  ;;  %v3975_v47 = vadd.f32 %v3974_v10, %v3973_v9  ;;  %v3036_v32 = vadd.f32 %v4036_v7, %v2939_v14  ;;  %v2963_v9 = vadd.f32 %v3990_v26, %v5897_v1  ;;  %v3987_v7 = vadd.f32 %v5942_v0, %v5938_v5  ;;  %v6232_v14 = vld [vmem:[#allocation27_spill] sm:$0xff]  ;;  %v6236_v26 = vld [vmem:[#allocation30_spill] sm:$0xff] }
 0x380   : > { %v5990_v53 = vpop.f32.mrf.mxu1  ;;  %v3996_v5 = vadd.f32 %v5954_v61, %v5950_v48 }
 0x381   : > { %6228 = vst [vmem:[#allocation29_spill] sm:$0xff] %v5990_v53  ;;  %v6003_v53 = vpop.f32.mrf.mxu0  ;;  %v2942_v22 = vadd.f32 %v3975_v47, %v5882_v13  ;;  %v4048_v13 = vadd.f32 %v5940_v44, %v5936_v30  ;;  %v2958_v52 = vadd.f32 %v3987_v7, %v5894_v11  ;;  %v6230_v11 = vld [vmem:[#allocation26_spill] sm:$0xff]  ;;  %v6234_v47 = vld [vmem:[#allocation12_spill] sm:$0xff]  ;;  %v6243_v7 = vld [vmem:[#allocation19_spill] sm:$0xff] }
 0x382   : > { %v5992_v54 = vpop.f32.mrf.mxu1  ;;  %v4005_v4 = vadd.f32 %v6231_v46, %v6230_v11  ;;  %v6250_v11 = vld [vmem:[#allocation10_spill] sm:$0xff] }
 0x383   : > { %6229 = vst [vmem:[#allocation16_spill] sm:$0xff] %v5992_v54  ;;  %v3984_v54 = vadd.f32 %v3983_v17, %v3982_v29  ;;  %v6012_v31 = vpop.f32.mrf.mxu0  ;;  %v3039_v28 = vadd.f32 %v4039_v24, %v2942_v22  ;;  %v4002_v29 = vadd.f32 %v4001_v62, %v4000_v41  ;;  %v3060_v17 = vadd.f32 %v4054_v60, %v2963_v9  ;;  %v6239_v60 = vld [vmem:[#allocation24_spill] sm:$0xff] }
 0x384   : > { %v5997_v45 = vpop.f32.mrf.mxu1  ;;  %v2971_v41 = vadd.f32 %v3996_v5, %v6232_v14  ;;  %v4060_v62 = vadd.f32 %v6234_v47, %v6233_v59  ;;  %v6248_v5 = vld [vmem:[#allocation33_spill] sm:$0xff] }
 0x385   : > { %v2955_v40 = vadd.f32 %v3984_v54, %v5891_v21  ;;  %v4057_v21 = vadd.f32 %v5952_v56, %v5948_v51  ;;  %v4076_v44 = vpop.f32.mrf.mxu0  ;;  %v3950_v51 = vadd.f32 %v5924_v42, %v5918_v57  ;;  %v2979_v48 = vadd.f32 %v4002_v29, %v5909_v35  ;;  %v6235_v35 = vld [vmem:[#allocation32_spill] sm:$0xff]  ;;  %v6246_v29 = vld [vmem:[#allocation15_spill] sm:$0xff] }
 0x386   : > { %v6000_v49 = vpop.f32.mrf.mxu1  ;;  %v4066_v56 = vadd.f32 %v5972_v6, %v5968_v2  ;;  %v3999_v18 = vadd.f32 %v6236_v26, %v6235_v35  ;;  %v6253_v14 = vld [vmem:[#allocation13_spill] sm:$0xff] }
 0x387   : > { %v3052_v63 = vadd.f32 %v4048_v13, %v2955_v40  ;;  %v3063_v25 = vadd.f32 %v4057_v21, %v2966_v58  ;;  %v4077_v57 = vpop.f32.mrf.mxu0  ;;  %v6242_v13 = vld [vmem:[#allocation18_spill] sm:$0xff]  ;;  %v3068_v21 = vadd.f32 %v4060_v62, %v2971_v41 }
 0x388   : > { %v4152_v20 = vpop.f32.mrf.mxu1  ;;  %v6237_v22 = vld [vmem:[#allocation29_spill] sm:$0xff]  ;;  %v3076_v9 = vadd.f32 %v4066_v56, %v2979_v48 }
 0x389   : > { %v3141_v37 = vadd.f32 %v4152_v20, %v3044_v3  ;;  %v3055_v3 = vadd.f32 %v4051_v16, %v2958_v52  ;;  %v2898_v20 = vadd.f32 %v3950_v51, %v2801_v34  ;;  %v4017_v34 = vadd.f32 %v6000_v49, %v5997_v45 }
 0x38a   : > { %v3132_v10 = vpop.f32.mrf.mxu1  ;;  %v6238_v24 = vld [vmem:[#allocation16_spill] sm:$0xff] }
 0x38b   : > { %v3197_v15 = vmax.f32 %v3141_v37, 0.0  ;;  %v3133_v12 = vadd.f32 %v3132_v10, %v3036_v32  ;;  %v4014_v37 = vadd.f32 %v6238_v24, %v6237_v22  ;;  %v2982_v10 = vadd.f32 %v4005_v4, %v6239_v60  ;;  %v6251_v4 = vld [vmem:[#allocation28_spill] sm:$0xff] }
 0x38c   : > { %v4153_v8 = vpop.f32.mrf.mxu1 }
 0x38d   : > { %3213 = vst [vmem:[%s4672_s26 + $0x10] sm:$0xff] %v3197_v15  ;;  %v3195_v1 = vmax.f32 %v3133_v12, 0.0  ;;  %v3144_v38 = vadd.f32 %v4153_v8, %v3047_v27  ;;  %v6241_v15 = vld [vmem:[#allocation34_spill] sm:$0xff]  ;;  %v2804_v8 = vadd.f32 %v6242_v13, %v5876_v50  ;;  %v4078_v50 = vadd.f32 %v4077_v57, %v4076_v44  ;;  %v6252_v44 = vld [vmem:[#allocation35_spill] sm:$0xff] }
 0x38e   : > { %v3135_v33 = vpop.f32.mrf.mxu1  ;;  %v4069_v12 = vadd.f32 %v6241_v15, %v6240_v39  ;;  %v4011_v41 = vadd.f32 %v6253_v14, %v6252_v44 }
 0x38f   : > { %3211 = vst [vmem:[%s4672_s26] sm:$0xff] %v3195_v1  ;;  %v3198_v54 = vmax.f32 %v3144_v38, 0.0  ;;  %v3136_v30 = vadd.f32 %v3135_v33, %v3039_v28  ;;  %v6244_v1 = vld [vmem:[#allocation20_spill] sm:$0xff]  ;;  %v6245_v28 = vld [vmem:[#allocation22_spill] sm:$0xff] }
 0x390   : > { %v4156_v0 = vpop.f32.mrf.mxu1  ;;  %v3953_v38 = vadd.f32 %v6244_v1, %v6243_v7  ;;  %v4008_v33 = vadd.f32 %v6246_v29, %v6245_v28  ;;  %v3079_v56 = vadd.f32 %v4069_v12, %v2982_v10 }
 0x391   : > { %3214 = vst [vmem:[%s4672_s26 + $0x18] sm:$0xff] %v3198_v54  ;;  %v3196_v23 = vmax.f32 %v3136_v30, 0.0  ;;  %v3157_v55 = vadd.f32 %v4156_v0, %v3060_v17  ;;  %v4079_v17 = vpop.f32.mrf.mxu0  ;;  %v6247_v54 = vld [vmem:[#allocation23_spill] sm:$0xff]  ;;  %v6249_v0 = vld [vmem:[#allocation25_spill] sm:$0xff] }
 0x392   : > { %v3148_v61 = vpop.f32.mrf.mxu1  ;;  %v2974_v30 = vadd.f32 %v3999_v18, %v6247_v54  ;;  %v2987_v46 = vadd.f32 %v4008_v33, %v6250_v11 }
 0x393   : > { %3212 = vst [vmem:[%s4672_s26 + $0x8] sm:$0xff] %v3196_v23  ;;  %v3201_v19 = vmax.f32 %v3157_v55, 0.0  ;;  %v3149_v43 = vadd.f32 %v3148_v61, %v3052_v63  ;;  %v4063_v63 = vadd.f32 %v6249_v0, %v6248_v5  ;;  %v2995_v23 = vadd.f32 %v4014_v37, %v2898_v20 }
 0x394   : > { %v4157_v42 = vpop.f32.mrf.mxu1  ;;  %v2901_v61 = vadd.f32 %v3953_v38, %v2804_v8 }
 0x395   : > { %3217 = vst [vmem:[%s4672_s26 + $0x30] sm:$0xff] %v3201_v19  ;;  %v3199_v6 = vmax.f32 %v3149_v43, 0.0  ;;  %v3160_v2 = vadd.f32 %v4157_v42, %v3063_v25  ;;  %v4072_v19 = vadd.f32 %v5995_v36, %v6251_v4  ;;  %v4080_v43 = vpop.f32.mrf.mxu0  ;;  %v3071_v59 = vadd.f32 %v4063_v63, %v2974_v30 }
 0x396   : > { %v3151_v32 = vpop.f32.mrf.mxu1  ;;  %v3092_v62 = vadd.f32 %v4078_v50, %v2995_v23  ;;  %v2998_v57 = vadd.f32 %v4017_v34, %v2901_v61  ;;  %v4081_v42 = vadd.f32 %v4080_v43, %v4079_v17 }
 0x397   : > { %3215 = vst [vmem:[%s4672_s26 + $0x20] sm:$0xff] %v3199_v6  ;;  %v3202_v27 = vmax.f32 %v3160_v2, 0.0  ;;  %v3152_v40 = vadd.f32 %v3151_v32, %v3055_v3  ;;  %v3084_v18 = vadd.f32 %v4072_v19, %v2987_v46  ;;  %v6254_v6 = vld [vmem:[#allocation17_spill] sm:$0xff]  ;;  %v4075_v3 = vadd.f32 %v6012_v31, %v6003_v53 }
 0x398   : > { %v4160_v58 = vpop.f32.mrf.mxu1  ;;  %v2990_v2 = vadd.f32 %v4011_v41, %v6254_v6 }
 0x399   : > { %3218 = vst [vmem:[%s4672_s26 + $0x38] sm:$0xff] %v3202_v27  ;;  %v3200_v52 = vmax.f32 %v3152_v40, 0.0  ;;  %v3173_v16 = vadd.f32 %v4160_v58, %v3076_v9  ;;  %v3095_v9 = vadd.f32 %v4081_v42, %v2998_v57 }
 0x39a   : > { %v3164_v55 = vpop.f32.mrf.mxu1  ;;  %v3087_v53 = vadd.f32 %v4075_v3, %v2990_v2 }
 0x39b   : > { %3216 = vst [vmem:[%s4672_s26 + $0x28] sm:$0xff] %v3200_v52  ;;  %v3205_v51 = vmax.f32 %v3173_v16, 0.0  ;;  %v3165_v48 = vadd.f32 %v3164_v55, %v3068_v21 }
 0x39c   : > { %v4161_v25 = vpop.f32.mrf.mxu1 }
 0x39d   : > { %3221 = vst [vmem:[%s4672_s26 + $0x50] sm:$0xff] %v3205_v51  ;;  %v3203_v45 = vmax.f32 %v3165_v48, 0.0  ;;  %v3176_v49 = vadd.f32 %v4161_v25, %v3079_v56 }
 0x39e   : > { %v3167_v47 = vpop.f32.mrf.mxu1 }
 0x39f   : > { %3219 = vst [vmem:[%s4672_s26 + $0x40] sm:$0xff] %v3203_v45  ;;  %v3206_v35 = vmax.f32 %v3176_v49, 0.0  ;;  %v3168_v26 = vadd.f32 %v3167_v47, %v3071_v59 }
 0x3a0   : > { %v4164_v36 = vpop.f32.mrf.mxu1 }
 0x3a1   : > { %3222 = vst [vmem:[%s4672_s26 + $0x58] sm:$0xff] %v3206_v35  ;;  %v3204_v20 = vmax.f32 %v3168_v26, 0.0  ;;  %v3189_v22 = vadd.f32 %v4164_v36, %v3092_v62 }
 0x3a2   : > { %v3180_v24 = vpop.f32.mrf.mxu1 }
 0x3a3   : > { %3220 = vst [vmem:[%s4672_s26 + $0x48] sm:$0xff] %v3204_v20  ;;  %v3209_v37 = vmax.f32 %v3189_v22, 0.0  ;;  %v3181_v32 = vadd.f32 %v3180_v24, %v3084_v18 }
 0x3a4   : > { %v4165_v60 = vpop.f32.mrf.mxu1 }
 0x3a5   : > { %3225 = vst [vmem:[%s4672_s26 + $0x70] sm:$0xff] %v3209_v37  ;;  %v3207_v10 = vmax.f32 %v3181_v32, 0.0  ;;  %v3192_v39 = vadd.f32 %v4165_v60, %v3095_v9 }
 0x3a6   : > { %v3183_v31 = vpop.f32.mrf.mxu1 }
 0x3a7   : > { %3223 = vst [vmem:[%s4672_s26 + $0x60] sm:$0xff] %v3207_v10  ;;  %v3210_v15 = vmax.f32 %v3192_v39, 0.0  ;;  %v3184_v12 = vadd.f32 %v3183_v31, %v3087_v53 }
 0x3a9   : > { %3226 = vst [vmem:[%s4672_s26 + $0x78] sm:$0xff] %v3210_v15  ;;  %v3208_v27 = vmax.f32 %v3184_v12, 0.0 }
 0x3ab   : > { %3224 = vst [vmem:[%s4672_s26 + $0x68] sm:$0xff] %v3208_v27 }
 0x3ac   : > { %4438 = shalt.err (!%p4435_p7)
}
 0x3ad   : > { %s4439_s26 = scalar_lea.hbm %s6082_s27, 2048  ;;  %s4443_s21 = scalar_lea.hbm %s6146_s5, 8192 }
 0x3ae   : > { %p4440_p9 = scmp.ne.s32.totalorder %s6082_s27, %s4439_s26  ;;  %p4444_p10 = scmp.lt.s32.totalorder %s6082_s27, %s6146_s5 }
 0x3af   : > { %p4445_p12 = scmp.lt.s32.totalorder %s4443_s21, %s4439_s26 }
 0x3b0   : > { %p4441_p11 = pnand %p4440_p9, %p4614_p3 }
 0x3b1   : > { %p4446_p0 = por %p4445_p12, %p4444_p10 }
 0x3b2   : > { %p4442_p13 = pneg %p4441_p11 }
 0x3b4   : > { %p4447_p1 = pnand %p4446_p0, %p4442_p13 }
 0x3b6   : > { %4450 = shalt.err (!%p4447_p1)
}
 0x3b7   : > { %s4530_s30 = smov 128   ;;  %s4531_s10 = smov 8  }
 0x3b8   : > { %4170 = dma.vmem_to_hbm [thread:$0]  (%p4614_p3), %s6084_s22, 2048, %s6082_s27, %s6090_s9, %s4530_s30, %s4530_s30, %s4531_s10  }
 0x3b9 PF: > { %p4182_p2 = scmp.ge.s32.totalorder %s4521_s25, 2  ;;  %s3259_s12 = sand.u32 1, %s4493_s18  }
 0x3ba   : > { %s3260_s14 = scalar_lea.sflag [#allocation6], %s3259_s12 }
 0x3bb   : > { %p4177_p4 = pnand %p4182_p2, %p4623_p8 }
 0x3bd   : > { %p4178_p5 = pneg %p4177_p4 }
 0x3bf   : > { %4488 = dma.done.wait (%p4178_p5), %s3260_s14, 2048  }
 0x3c0   : > { %4490 = vsyncadd (%p4178_p5), %s3260_s14, 4294965248  ;;  %s19_s25 = sadd.s32 1, %s4521_s25   ;;  %s6256_s18 = smov %s4497_s19 }
 0x3c1   : > { %p16_p6 = scmp.ge.s32.totalorder %s19_s25, 6   ;;  %s6257_s19 = smov %s4501_s20 }
 0x3c2   : > { %s6258_s20 = smov %s4641_s13  ;;  %s6259_s21 = smov %s4513_s23 }
 0x3c3   : > { %s6260_s22 = smov %s4517_s24  ;;  %s6261_s23 = smov %s6264_s28 }
 0x3c4   : > { %s6262_s24 = smov %s6268_s29  ;;  %18 = sbr.rel (!%p16_p6) target bundleno = 6 (0x6), region = 95 }
 0x3c9   :  { %3265 = vsyncpa [#allocation5], 1 }
 0x3ca   :  { %3267 = vsyncpa [#allocation5 + $0x1], 1 }
 0x3cb   :  { %3268 = vsyncpa [#allocation6], 1 }
 0x3cc   :  { %3270 = vsyncpa [#allocation6 + $0x1], 1 }

</bundles_post_ra>
